<compile_context>
chip_gen: v7x
topology: tpu7x:2x2x1
jax: 0.10.0
libtpu: 0.0.40
codegen_flags: <defaults>
</compile_context>

<pallas_src>
import math

import jax
import jax.numpy as jnp
from jax.experimental import pallas as pl
from jax.experimental.pallas import tpu as pltpu

# ----------------------------- configuration (small, synthetic) --------------
B = 2                    # batch
C_IN = 3                 # image channels
IMG = 16                 # image size
PATCH = 8                # patch size
GH = GW = IMG // PATCH   # patch grid
NP = GH * GW             # number of patches
L_V = NP + 1             # visual tokens (cls + patches)
W_V = 64                 # visual transformer width
H_V = 2                  # visual attention heads (synthetic)
CTX_DIM = 128            # text transformer width (ln_final dim)
H_T = CTX_DIM // 64      # text heads (CLIP convention)
TB_HEADS = CTX_DIM // 64 # TransBlock heads = ln_final dim // 64 (as in the module)
EMBED = 512              # joint embedding dim (hard-coded 512 in the module)
N_CTX = 4                # learnable context tokens
T = 8                    # text sequence length (stand-in for CLIP's 77)
SUFFIX_LEN = T - 1 - N_CTX
N_CLS = 10               # number of classes (Caltech101-style linear head)
ALPHA = 1.0
KEEP_RATE = 0.5          # TransBlock.Pruning keep rate
LEFT = math.ceil(KEEP_RATE * (L_V - 1)) + 1   # tokens kept by Pruning (=3)

HEAD_PAD = 128           # lane-dense padded width of the classification head
PF = C_IN * PATCH * PATCH

# misc vector slab row layout (f32, (MISC_ROWS, HEAD_PAD))
R_LNPRE_G = L_V          # rows 0..L_V-1 hold (pos_emb, row0 += class_emb)
R_LNPRE_B = L_V + 1
R_LNPOST_G = L_V + 2
R_LNPOST_B = L_V + 3
R_TBLN_G = L_V + 4
R_TBLN_B = L_V + 5
R_HEAD_B = L_V + 6
MISC_ROWS = 16

# Text branch is unused in the eval forward of the original module (its result
# is discarded); gate it off explicitly instead of relying on XLA DCE.
COMPUTE_TEXT_FEATURES = False


# ----------------------------- in-kernel helpers ------------------------------
def _ln(x, g, b, eps=1e-5):
    """LayerNorm over the last dim, f32 math."""
    mu = jnp.mean(x, axis=-1, keepdims=True)
    var = jnp.mean(jnp.square(x - mu), axis=-1, keepdims=True)
    return (x - mu) * jax.lax.rsqrt(var + eps) * g + b


def _mm(x, w):
    """bf16 MXU operands, f32 accumulation."""
    return jnp.dot(x.astype(jnp.bfloat16), w.astype(jnp.bfloat16),
                   preferred_element_type=jnp.float32)


def _quick_gelu(x):
    return x * jax.nn.sigmoid(1.702 * x)


def _attention(x, aw, ab, *, heads, causal):
    """Head-batched multi-head attention.

    x  : (seq, D) f32
    aw : (4*heads, D, D) bf16 -- rows [q_h..., k_h..., v_h...] are the QKV head
         weights zero-padded from hd to D lanes; rows [3*heads:4*heads] are the
         per-head out-projection zero-padded from hd to D rows.
    ab : (3*heads, 1, D) f32 -- QKV head bias, zero-padded to D lanes.

    No per-head lane slicing: all head separation happens on the leading batch
    axis of the dot_generals; the zero padding is mathematically inert.
    """
    seq, d = x.shape
    hd = d // heads
    xb = jnp.broadcast_to(x.astype(jnp.bfloat16), (3 * heads, seq, d))
    qkv = jax.lax.dot_general(xb, aw[0:3 * heads],
                              (((2,), (1,)), ((0,), (0,))),
                              preferred_element_type=jnp.float32) + ab  # (3H,seq,D)
    q = qkv[0:heads] * (hd ** -0.5)          # scale folded into Q
    k = qkv[heads:2 * heads]
    v = qkv[2 * heads:3 * heads]
    s = jax.lax.dot_general(q.astype(jnp.bfloat16), k.astype(jnp.bfloat16),
                            (((2,), (2,)), ((0,), (0,))),
                            preferred_element_type=jnp.float32)          # (H,seq,seq)
    if causal:
        row = jax.lax.broadcasted_iota(jnp.int32, (seq, seq), 0)
        col = jax.lax.broadcasted_iota(jnp.int32, (seq, seq), 1)
        s = jnp.where((col <= row)[None, :, :], s, -jnp.inf)
    s = s - jnp.max(s, axis=-1, keepdims=True)
    p = jnp.exp(s)
    p = p / jnp.sum(p, axis=-1, keepdims=True)                           # exact softmax
    o = jax.lax.dot_general(p.astype(jnp.bfloat16), v.astype(jnp.bfloat16),
                            (((2,), (1,)), ((0,), (0,))),
                            preferred_element_type=jnp.float32)          # (H,seq,D)
    out = jax.lax.dot_general(o.astype(jnp.bfloat16), aw[3 * heads:4 * heads],
                              (((2,), (1,)), ((0,), (0,))),
                              preferred_element_type=jnp.float32)        # (H,seq,D)
    return jnp.sum(out, axis=0)                                          # (seq, D)


def _resblock(x, aw, ab, mw, vb, *, heads, causal):
    """CLIP ResidualAttentionBlock with packed parameter slabs.

    mw : (5D, 4D) bf16 -- rows [0:D]=c_fc, rows [D:5D]=c_proj (zero-padded cols)
    vb : (8, 4D) f32   -- ln1_g, ln1_b, out_b, ln2_g, ln2_b, fc_b, proj_b, -
    """
    seq, d = x.shape
    ln1_g, ln1_b = vb[0:1, :d], vb[1:2, :d]
    out_b = vb[2:3, :d]
    ln2_g, ln2_b = vb[3:4, :d], vb[4:5, :d]
    fc_b = vb[5:6, :]
    pj_b = vb[6:7, :d]

    y = _ln(x, ln1_g, ln1_b)
    x = x + _attention(y, aw, ab, heads=heads, causal=causal) + out_b
    y = _ln(x, ln2_g, ln2_b)
    h = _quick_gelu(_mm(y, mw[0:d, :]) + fc_b)
    x = x + _mm(h, mw[d:5 * d, :d]) + pj_b
    return x


# ----------------------------- the fused eval-path kernel ---------------------
def _fwd_kernel(patch_ref, conv_ref, misc_ref,
                awv_ref, abv_ref, mwv_ref, vbv_ref,
                awt_ref, abt_ref, mwt_ref, vbt_ref,
                projs_ref, head_ref,
                logit_ref, tx_ref):
    """One grid step = one batch row; the whole eval forward in a single kernel."""
    # ---- patch embed (conv1 as matmul; row 0 of patch slab is zeros) ----------
    emb = _mm(patch_ref[0], conv_ref[...])                         # (L_V, W_V)
    x = emb + misc_ref[0:L_V, :W_V]                                # pos (+cls on row 0)
    x = _ln(x, misc_ref[R_LNPRE_G:R_LNPRE_G + 1, :W_V],
               misc_ref[R_LNPRE_B:R_LNPRE_B + 1, :W_V])

    # ---- visual residual attention block --------------------------------------
    x = _resblock(x, awv_ref[...], abv_ref[...], mwv_ref[...], vbv_ref[...],
                  heads=H_V, causal=False)

    # ---- ln_post + visual projection of the cls row ---------------------------
    cls_tok = _mm(_ln(x[0:1, :],
                      misc_ref[R_LNPOST_G:R_LNPOST_G + 1, :W_V],
                      misc_ref[R_LNPOST_B:R_LNPOST_B + 1, :W_V]),
                  projs_ref[0])                                    # (1, EMBED)

    # ---- TransBlock residual attention block ----------------------------------
    xt = _resblock(x, awt_ref[...], abt_ref[...], mwt_ref[...], vbt_ref[...],
                   heads=TB_HEADS, causal=False)

    # ---- Pruning: cls-attention scores over ALL tokens (matches cls_attn[:,0:])
    scores = jax.lax.dot_general(xt[0:1, :], xt, (((1,), (1,)), ((), ())),
                                 preferred_element_type=jnp.float32) * (W_V ** -0.5)

    # In-kernel top-k (k=LEFT) via iterative first-argmax; only the MEAN of the
    # selected rows is needed, so build a 0/1 selection row and use one matmul
    # (permutation-invariant -> identical to torch.topk + gather + mean).
    iota = jax.lax.broadcasted_iota(jnp.int32, (1, L_V), 1)
    sel = jnp.zeros((1, L_V), jnp.float32)
    remaining = scores
    for _ in range(LEFT):
        m = jnp.max(remaining, axis=-1, keepdims=True)
        first = jnp.min(jnp.where(remaining >= m, iota, L_V), axis=-1, keepdims=True)
        pick = (iota == first).astype(jnp.float32)
        sel = sel + pick
        remaining = jnp.where(pick > 0.0, -jnp.inf, remaining)
    feat = jax.lax.dot_general(sel, xt, (((1,), (0,)), ((), ())),
                               preferred_element_type=jnp.float32) * (1.0 / LEFT)

    # ---- tb ln_post + tb proj + (cls + alpha*trans_x) + padded class head -----
    feat = _ln(feat, misc_ref[R_TBLN_G:R_TBLN_G + 1, :W_V],
                     misc_ref[R_TBLN_B:R_TBLN_B + 1, :W_V])
    trans_x = _mm(feat, projs_ref[1])                              # (1, EMBED)
    img = cls_tok + ALPHA * trans_x                                # image_features
    logits = _mm(img, head_ref[...]) + misc_ref[R_HEAD_B:R_HEAD_B + 1, :]
    logit_ref[0] = logits                                          # (1, HEAD_PAD)
    tx_ref[0] = trans_x                                            # (1, EMBED)


# ----------------------------- gated text-branch kernels (dead at eval) -------
def _meta_kernel(x_ref, w1_ref, b1_ref, w2_ref, b2_ref, o_ref):
    """L2-normalize (with eps) + meta_net (linear1 -> relu -> linear2) fused."""
    x = x_ref[...]
    x = x * jax.lax.rsqrt(jnp.sum(x * x, axis=-1, keepdims=True) + 1e-12)
    h = jnp.maximum(_mm(x, w1_ref[...]) + b1_ref[...], 0.0)
    o_ref[...] = _mm(h, w2_ref[...]) + b2_ref[...]


def _text_block_kernel(x_ref, aw_ref, ab_ref, mw_ref, vb_ref, o_ref):
    """Causal text residual attention block (one batch row per grid step)."""
    o_ref[0] = _resblock(x_ref[0], aw_ref[...], ab_ref[...], mw_ref[...],
                         vb_ref[...], heads=H_T, causal=True)


def _lnproj_kernel(x_ref, g_ref, b_ref, w_ref, o_ref):
    """ln_final + text projection fused."""
    o_ref[...] = _mm(_ln(x_ref[...], g_ref[...], b_ref[...]), w_ref[...])


# ----------------------------- pallas_call plumbing ---------------------------
def _bcast_spec(shape):
    zeros = (0,) * len(shape)
    return pl.BlockSpec(shape, lambda *_: zeros)


def _batch_spec(shape):
    zeros = (0,) * (len(shape) - 1)
    return pl.BlockSpec(shape, lambda b: (b,) + zeros)


def _run_full(kernel, inputs, out_structs):
    """Single-invocation (grid-less) pallas_call with whole-array VMEM blocks."""
    return pl.pallas_call(
        kernel,
        out_shape=tuple(jax.ShapeDtypeStruct(s, d) for s, d in out_structs),
        in_specs=[_bcast_spec(x.shape) for x in inputs],
        out_specs=tuple(_bcast_spec(s) for s, _ in out_structs),
    )(*inputs)


# ----------------------------- forward ----------------------------------------
def custom_clip_forward(image, pk):
    """Eval forward of CustomCLIP -> logits (B, N_CLS).  One fused pallas_call."""
    Bb = image.shape[0]
    # patchify (NCHW -> (B, NP, C*ph*pw)); zero row 0 reserves the cls slot so
    # the in-kernel embed matmul needs no concatenate.
    x = image.reshape(Bb, C_IN, GH, PATCH, GW, PATCH)
    x = x.transpose(0, 2, 4, 1, 3, 5).reshape(Bb, NP, PF)
    patches = jnp.pad(x, ((0, 0), (1, 0), (0, 0)))                 # (B, L_V, PF)

    ins = [patches, pk["conv1_w"], pk["misc"],
           pk["vblk"]["aw"], pk["vblk"]["ab"], pk["vblk"]["mw"], pk["vblk"]["vb"],
           pk["tblk"]["aw"], pk["tblk"]["ab"], pk["tblk"]["mw"], pk["tblk"]["vb"],
           pk["projs"], pk["head_w"]]
    in_specs = [_batch_spec((1, L_V, PF))] + [_bcast_spec(a.shape) for a in ins[1:]]

    logits_pad, trans_x = pl.pallas_call(
        _fwd_kernel,
        grid=(Bb,),
        in_specs=in_specs,
        out_specs=(_batch_spec((1, 1, HEAD_PAD)), _batch_spec((1, 1, EMBED))),
        out_shape=(jax.ShapeDtypeStruct((Bb, 1, HEAD_PAD), jnp.float32),
                   jax.ShapeDtypeStruct((Bb, 1, EMBED), jnp.float32)),
        compiler_params=pltpu.CompilerParams(
            dimension_semantics=("parallel",),          # batch across TCs on v7x
            vmem_limit_bytes=16 * 1024 * 1024),
        cost_estimate=pl.CostEstimate(flops=4_000_000, transcendentals=6_000,
                                      bytes_accessed=2_000_000),
    )(*ins)

    if COMPUTE_TEXT_FEATURES:
        _ = text_features_path(trans_x.reshape(Bb, EMBED), pk, Bb)  # dead at eval

    return logits_pad[:, 0, :N_CLS]


def text_features_path(trans_x, pk, Bb):
    """PromptLearner + TextEncoder (result is unused at eval; gated off)."""
    (bias,) = _run_full(
        _meta_kernel,
        [trans_x, pk["meta_w1"], pk["meta_b1"], pk["meta_w2"], pk["meta_b2"]],
        [((Bb, CTX_DIM), jnp.float32)],
    )
    ctx_shifted = pk["ctx"][None, :, :] + bias[:, None, :]          # (B, N_CTX, CTX)
    prefix = jnp.broadcast_to(pk["token_prefix"], (Bb, 1, CTX_DIM))
    suffix = jnp.broadcast_to(pk["token_suffix"], (Bb, SUFFIX_LEN, CTX_DIM))
    prompts = jnp.concatenate([prefix, ctx_shifted, suffix], axis=1)  # (B, T, CTX)
    xt = prompts + pk["txt_pos"][None]

    tb = pk["txtblk"]
    (xt,) = pl.pallas_call(
        _text_block_kernel,
        grid=(Bb,),
        in_specs=[_batch_spec((1, T, CTX_DIM)), _bcast_spec(tb["aw"].shape),
                  _bcast_spec(tb["ab"].shape), _bcast_spec(tb["mw"].shape),
                  _bcast_spec(tb["vb"].shape)],
        out_specs=(_batch_spec((1, T, CTX_DIM)),),
        out_shape=(jax.ShapeDtypeStruct((Bb, T, CTX_DIM), jnp.float32),),
        compiler_params=pltpu.CompilerParams(dimension_semantics=("parallel",)),
    )(xt, tb["aw"], tb["ab"], tb["mw"], tb["vb"])

    tok = jnp.broadcast_to(pk["tokenized_prompts"], (Bb, T))
    eot = jnp.argmax(tok, axis=-1)                                  # (B,)
    pooled = xt[jnp.arange(Bb), eot]                                # (B, CTX)
    (tf,) = _run_full(
        _lnproj_kernel,
        [pooled, pk["ln_final_g"], pk["ln_final_b"], pk["text_proj"]],
        [((Bb, EMBED), jnp.float32)],
    )
    return tf


# ----------------------------- parameter packing ------------------------------
def pack_block(blk, D, heads):
    """Repack a ResidualAttentionBlock into head-batched, zero-padded slabs."""
    hd = D // heads
    in_w, in_b, out_w = blk["in_w"], blk["in_b"][0], blk["out_w"]
    aw, ab = [], []
    for t in range(3):                      # q, k, v
        for h in range(heads):
            c0 = t * D + h * hd
            aw.append(jnp.pad(in_w[:, c0:c0 + hd], ((0, 0), (0, D - hd))))
            ab.append(jnp.pad(in_b[c0:c0 + hd], (0, D - hd))[None, :])
    for h in range(heads):                  # per-head out-projection
        aw.append(jnp.pad(out_w[h * hd:(h + 1) * hd, :], ((0, D - hd), (0, 0))))
    aw = jnp.stack(aw).astype(jnp.bfloat16)                  # (4*heads, D, D)
    ab = jnp.stack(ab).astype(jnp.float32)                   # (3*heads, 1, D)
    mw = jnp.concatenate(
        [blk["fc_w"], jnp.pad(blk["cproj_w"], ((0, 0), (0, 3 * D)))],
        axis=0).astype(jnp.bfloat16)                          # (5D, 4D)
    vb = jnp.zeros((8, 4 * D), jnp.float32)
    vb = vb.at[0, :D].set(blk["ln1_g"][0]).at[1, :D].set(blk["ln1_b"][0])
    vb = vb.at[2, :D].set(blk["out_b"][0])
    vb = vb.at[3, :D].set(blk["ln2_g"][0]).at[4, :D].set(blk["ln2_b"][0])
    vb = vb.at[5, :].set(blk["fc_b"][0])
    vb = vb.at[6, :D].set(blk["cproj_b"][0])
    return dict(aw=aw, ab=ab, mw=mw, vb=vb)


def pack_params(p):
    pk = {}
    pk["conv1_w"] = p["conv1_w"].astype(jnp.bfloat16)
    misc = jnp.zeros((MISC_ROWS, HEAD_PAD), jnp.float32)
    tok_init = p["vis_pos"].at[0, :].add(p["class_emb"][0])   # pos (+cls on row 0)
    misc = misc.at[0:L_V, :W_V].set(tok_init)
    misc = misc.at[R_LNPRE_G, :W_V].set(p["ln_pre_g"][0])
    misc = misc.at[R_LNPRE_B, :W_V].set(p["ln_pre_b"][0])
    misc = misc.at[R_LNPOST_G, :W_V].set(p["ln_post_v_g"][0])
    misc = misc.at[R_LNPOST_B, :W_V].set(p["ln_post_v_b"][0])
    misc = misc.at[R_TBLN_G, :W_V].set(p["tb_lnp_g"][0])
    misc = misc.at[R_TBLN_B, :W_V].set(p["tb_lnp_b"][0])
    misc = misc.at[R_HEAD_B, :N_CLS].set(p["head_b"][0])
    pk["misc"] = misc
    pk["vblk"] = pack_block(p["vblk"], W_V, H_V)
    pk["tblk"] = pack_block(p["tb_atten"], W_V, TB_HEADS)
    pk["projs"] = jnp.stack([p["vis_proj"], p["tb_proj"]]).astype(jnp.bfloat16)
    pk["head_w"] = jnp.pad(p["head_w"], ((0, 0), (0, HEAD_PAD - N_CLS))).astype(jnp.bfloat16)
    # gated text path (dead at eval)
    pk["meta_w1"] = p["meta_w1"].astype(jnp.bfloat16)
    pk["meta_b1"] = p["meta_b1"]
    pk["meta_w2"] = p["meta_w2"].astype(jnp.bfloat16)
    pk["meta_b2"] = p["meta_b2"]
    pk["ctx"] = p["ctx"]
    pk["token_prefix"] = p["token_prefix"]
    pk["token_suffix"] = p["token_suffix"]
    pk["txt_pos"] = p["txt_pos"]
    pk["txtblk"] = pack_block(p["txtblk"], CTX_DIM, H_T)
    pk["ln_final_g"] = p["ln_final_g"]
    pk["ln_final_b"] = p["ln_final_b"]
    pk["text_proj"] = p["text_proj"].astype(jnp.bfloat16)
    pk["tokenized_prompts"] = p["tokenized_prompts"]
    return pk


# ----------------------------- deterministic parameter init ------------------
def init_params(key):
    keys = iter(jax.random.split(key, 64))

    def nrm(shape, std=0.02):
        return (std * jax.random.normal(next(keys), shape)).astype(jnp.float32)

    def blk(D):
        return dict(
            ln1_g=jnp.ones((1, D), jnp.float32), ln1_b=jnp.zeros((1, D), jnp.float32),
            in_w=nrm((D, 3 * D)), in_b=jnp.zeros((1, 3 * D), jnp.float32),
            out_w=nrm((D, D)), out_b=jnp.zeros((1, D), jnp.float32),
            ln2_g=jnp.ones((1, D), jnp.float32), ln2_b=jnp.zeros((1, D), jnp.float32),
            fc_w=nrm((D, 4 * D)), fc_b=jnp.zeros((1, 4 * D), jnp.float32),
            cproj_w=nrm((4 * D, D)), cproj_b=jnp.zeros((1, D), jnp.float32))

    p = {}
    # synthetic visual encoder
    p["conv1_w"] = nrm((PF, W_V))
    p["class_emb"] = nrm((1, W_V))
    p["vis_pos"] = nrm((L_V, W_V))
    p["ln_pre_g"] = jnp.ones((1, W_V), jnp.float32)
    p["ln_pre_b"] = jnp.zeros((1, W_V), jnp.float32)
    p["vblk"] = blk(W_V)
    p["ln_post_v_g"] = jnp.ones((1, W_V), jnp.float32)
    p["ln_post_v_b"] = jnp.zeros((1, W_V), jnp.float32)
    p["vis_proj"] = nrm((W_V, EMBED))
    # TransBlock
    p["tb_atten"] = blk(W_V)
    p["tb_lnp_g"] = jnp.ones((1, W_V), jnp.float32)
    p["tb_lnp_b"] = jnp.zeros((1, W_V), jnp.float32)
    p["tb_proj"] = nrm((W_V, EMBED), std=W_V ** -0.5)
    # PromptLearner (gated text path)
    p["ctx"] = nrm((N_CTX, CTX_DIM))
    p["meta_w1"] = nrm((EMBED, EMBED // 16))
    p["meta_b1"] = jnp.zeros((1, EMBED // 16), jnp.float32)
    p["meta_w2"] = nrm((EMBED // 16, CTX_DIM))
    p["meta_b2"] = jnp.zeros((1, CTX_DIM), jnp.float32)
    p["token_prefix"] = nrm((1, 1, CTX_DIM))
    p["token_suffix"] = nrm((1, SUFFIX_LEN, CTX_DIM))
    # TextEncoder (gated text path)
    p["txt_pos"] = nrm((T, CTX_DIM))
    p["txtblk"] = blk(CTX_DIM)
    p["ln_final_g"] = jnp.ones((1, CTX_DIM), jnp.float32)
    p["ln_final_b"] = jnp.zeros((1, CTX_DIM), jnp.float32)
    p["text_proj"] = nrm((CTX_DIM, EMBED))
    # classification head (linear-head dataset, e.g. Caltech101)
    p["head_w"] = nrm((EMBED, N_CLS))
    p["head_b"] = jnp.zeros((1, N_CLS), jnp.float32)
    # tokenized prompt stand-in: SOS, N_CTX ctx tokens, '.', EOT, pad
    p["tokenized_prompts"] = jnp.array(
        [[49406] + [343] * N_CTX + [269, 49407] + [0] * (T - N_CTX - 3)],
        dtype=jnp.int32)
    return p


# ----------------------------- main -------------------------------------------
if __name__ == "__main__":
    key = jax.random.PRNGKey(0)
    pkey, xkey = jax.random.split(key)
    params = pack_params(init_params(pkey))
    image = jax.random.normal(xkey, (B, C_IN, IMG, IMG), jnp.float32)  # NCHW

    logits = jax.jit(custom_clip_forward)(image, params)
    logits = jax.block_until_ready(logits)
    assert logits.shape == (B, N_CLS)
    assert bool(jnp.all(jnp.isfinite(logits)))
    print("KERNEL_OK")
</pallas_src>

<mosaic_0001>
module attributes {stable_mosaic.version = 11 : i64} {
  func.func @_fwd_kernel(%arg0: i32, %arg1: memref<1x5x192xf32, #tpu.memory_space<vmem>>, %arg2: memref<192x64xbf16, #tpu.memory_space<vmem>>, %arg3: memref<16x128xf32, #tpu.memory_space<vmem>>, %arg4: memref<8x64x64xbf16, #tpu.memory_space<vmem>>, %arg5: memref<6x1x64xf32, #tpu.memory_space<vmem>>, %arg6: memref<320x256xbf16, #tpu.memory_space<vmem>>, %arg7: memref<8x256xf32, #tpu.memory_space<vmem>>, %arg8: memref<8x64x64xbf16, #tpu.memory_space<vmem>>, %arg9: memref<6x1x64xf32, #tpu.memory_space<vmem>>, %arg10: memref<320x256xbf16, #tpu.memory_space<vmem>>, %arg11: memref<8x256xf32, #tpu.memory_space<vmem>>, %arg12: memref<2x64x512xbf16, #tpu.memory_space<vmem>>, %arg13: memref<512x128xbf16, #tpu.memory_space<vmem>>, %arg14: memref<1x1x128xf32, #tpu.memory_space<vmem>>, %arg15: memref<1x1x512xf32, #tpu.memory_space<vmem>>) attributes {dimension_semantics = [#tpu.dimension_semantics<parallel>], iteration_bounds = array<i64: 2>, scalar_prefetch = 0 : i64, scratch_operands = 0 : i64, tpu.core_type = #tpu.core_type<tc>, window_params = [{transform_indices = @transform_0, window_bounds = array<i64: 1, 5, 192>}, {pipeline_mode = #tpu.pipeline_mode<synchronous>, transform_indices = @transform_1, window_bounds = array<i64: 192, 64>}, {pipeline_mode = #tpu.pipeline_mode<synchronous>, transform_indices = @transform_2, window_bounds = array<i64: 16, 128>}, {pipeline_mode = #tpu.pipeline_mode<synchronous>, transform_indices = @transform_3, window_bounds = array<i64: 8, 64, 64>}, {pipeline_mode = #tpu.pipeline_mode<synchronous>, transform_indices = @transform_4, window_bounds = array<i64: 6, 1, 64>}, {pipeline_mode = #tpu.pipeline_mode<synchronous>, transform_indices = @transform_5, window_bounds = array<i64: 320, 256>}, {pipeline_mode = #tpu.pipeline_mode<synchronous>, transform_indices = @transform_6, window_bounds = array<i64: 8, 256>}, {pipeline_mode = #tpu.pipeline_mode<synchronous>, transform_indices = @transform_7, window_bounds = array<i64: 8, 64, 64>}, {pipeline_mode = #tpu.pipeline_mode<synchronous>, transform_indices = @transform_8, window_bounds = array<i64: 6, 1, 64>}, {pipeline_mode = #tpu.pipeline_mode<synchronous>, transform_indices = @transform_9, window_bounds = array<i64: 320, 256>}, {pipeline_mode = #tpu.pipeline_mode<synchronous>, transform_indices = @transform_10, window_bounds = array<i64: 8, 256>}, {pipeline_mode = #tpu.pipeline_mode<synchronous>, transform_indices = @transform_11, window_bounds = array<i64: 2, 64, 512>}, {pipeline_mode = #tpu.pipeline_mode<synchronous>, transform_indices = @transform_12, window_bounds = array<i64: 512, 128>}, {transform_indices = @transform_13, window_bounds = array<i64: 1, 1, 128>}, {transform_indices = @transform_14, window_bounds = array<i64: 1, 1, 512>}]} {
    %c0 = arith.constant 0 : index
    %c0_0 = arith.constant 0 : index
    %c0_1 = arith.constant 0 : index
    %0 = vector.load %arg1[%c0, %c0_0, %c0_1] : memref<1x5x192xf32, #tpu.memory_space<vmem>>, vector<1x5x192xf32>
    %1 = vector.shape_cast %0 : vector<1x5x192xf32> to vector<5x192xf32>
    %c0_2 = arith.constant 0 : index
    %c0_3 = arith.constant 0 : index
    %2 = vector.load %arg2[%c0_2, %c0_3] : memref<192x64xbf16, #tpu.memory_space<vmem>>, vector<192x64xbf16>
    %3 = arith.truncf %1 : vector<5x192xf32> to vector<5x192xbf16>
    %cst = arith.constant dense<0.000000e+00> : vector<5x64xf32>
    %4 = tpu.matmul %3, %2, %cst {dimension_numbers = #tpu.dot_dimension_numbers<[1], [0], [0], [1], [0, 0, 1, 1], [], []>} : vector<5x192xbf16>, vector<192x64xbf16>, vector<5x64xf32> -> vector<5x64xf32>
    %c0_4 = arith.constant 0 : index
    %c0_5 = arith.constant 0 : index
    %5 = vector.load %arg3[%c0_4, %c0_5] : memref<16x128xf32, #tpu.memory_space<vmem>>, vector<5x64xf32>
    %6 = arith.addf %4, %5 : vector<5x64xf32>
    %c5 = arith.constant 5 : index
    %c0_6 = arith.constant 0 : index
    %7 = vector.load %arg3[%c5, %c0_6] : memref<16x128xf32, #tpu.memory_space<vmem>>, vector<1x64xf32>
    %c6 = arith.constant 6 : index
    %c0_7 = arith.constant 0 : index
    %8 = vector.load %arg3[%c6, %c0_7] : memref<16x128xf32, #tpu.memory_space<vmem>>, vector<1x64xf32>
    %cst_8 = arith.constant dense<0.000000e+00> : vector<5xf32>
    %9 = vector.multi_reduction <add>, %6, %cst_8 [1] : vector<5x64xf32> to vector<5xf32>
    %10 = vector.shape_cast %9 : vector<5xf32> to vector<5x1xf32>
    %cst_9 = arith.constant 6.400000e+01 : f32
    %11 = vector.broadcast %cst_9 : f32 to vector<5x1xf32>
    %12 = arith.divf %10, %11 : vector<5x1xf32>
    %13 = vector.broadcast %12 : vector<5x1xf32> to vector<5x64xf32>
    %14 = arith.subf %6, %13 : vector<5x64xf32>
    %15 = arith.mulf %14, %14 : vector<5x64xf32>
    %cst_10 = arith.constant dense<0.000000e+00> : vector<5xf32>
    %16 = vector.multi_reduction <add>, %15, %cst_10 [1] : vector<5x64xf32> to vector<5xf32>
    %17 = vector.shape_cast %16 : vector<5xf32> to vector<5x1xf32>
    %cst_11 = arith.constant 6.400000e+01 : f32
    %18 = vector.broadcast %cst_11 : f32 to vector<5x1xf32>
    %19 = arith.divf %17, %18 : vector<5x1xf32>
    %20 = vector.broadcast %12 : vector<5x1xf32> to vector<5x64xf32>
    %21 = arith.subf %6, %20 : vector<5x64xf32>
    %cst_12 = arith.constant 9.99999974E-6 : f32
    %22 = vector.broadcast %cst_12 : f32 to vector<5x1xf32>
    %23 = arith.addf %19, %22 : vector<5x1xf32>
    %24 = math.rsqrt %23 : vector<5x1xf32>
    %25 = vector.broadcast %24 : vector<5x1xf32> to vector<5x64xf32>
    %26 = arith.mulf %21, %25 : vector<5x64xf32>
    %27 = vector.broadcast %7 : vector<1x64xf32> to vector<5x64xf32>
    %28 = arith.mulf %26, %27 : vector<5x64xf32>
    %29 = vector.broadcast %8 : vector<1x64xf32> to vector<5x64xf32>
    %30 = arith.addf %28, %29 : vector<5x64xf32>
    %c0_13 = arith.constant 0 : index
    %c0_14 = arith.constant 0 : index
    %c0_15 = arith.constant 0 : index
    %31 = vector.load %arg4[%c0_13, %c0_14, %c0_15] : memref<8x64x64xbf16, #tpu.memory_space<vmem>>, vector<8x64x64xbf16>
    %c0_16 = arith.constant 0 : index
    %c0_17 = arith.constant 0 : index
    %c0_18 = arith.constant 0 : index
    %32 = vector.load %arg5[%c0_16, %c0_17, %c0_18] : memref<6x1x64xf32, #tpu.memory_space<vmem>>, vector<6x1x64xf32>
    %c0_19 = arith.constant 0 : index
    %c0_20 = arith.constant 0 : index
    %33 = vector.load %arg6[%c0_19, %c0_20] : memref<320x256xbf16, #tpu.memory_space<vmem>>, vector<320x256xbf16>
    %c0_21 = arith.constant 0 : index
    %c0_22 = arith.constant 0 : index
    %34 = vector.load %arg7[%c0_21, %c0_22] : memref<8x256xf32, #tpu.memory_space<vmem>>, vector<8x256xf32>
    %35 = vector.extract_strided_slice %34 {offsets = [0, 0], sizes = [1, 64], strides = [1, 1]} : vector<8x256xf32> to vector<1x64xf32>
    %36 = vector.extract_strided_slice %34 {offsets = [1, 0], sizes = [1, 64], strides = [1, 1]} : vector<8x256xf32> to vector<1x64xf32>
    %37 = vector.extract_strided_slice %34 {offsets = [2, 0], sizes = [1, 64], strides = [1, 1]} : vector<8x256xf32> to vector<1x64xf32>
    %38 = vector.extract_strided_slice %34 {offsets = [3, 0], sizes = [1, 64], strides = [1, 1]} : vector<8x256xf32> to vector<1x64xf32>
    %39 = vector.extract_strided_slice %34 {offsets = [4, 0], sizes = [1, 64], strides = [1, 1]} : vector<8x256xf32> to vector<1x64xf32>
    %40 = vector.extract_strided_slice %34 {offsets = [5, 0], sizes = [1, 256], strides = [1, 1]} : vector<8x256xf32> to vector<1x256xf32>
    %41 = vector.extract_strided_slice %34 {offsets = [6, 0], sizes = [1, 64], strides = [1, 1]} : vector<8x256xf32> to vector<1x64xf32>
    %cst_23 = arith.constant dense<0.000000e+00> : vector<5xf32>
    %42 = vector.multi_reduction <add>, %30, %cst_23 [1] : vector<5x64xf32> to vector<5xf32>
    %43 = vector.shape_cast %42 : vector<5xf32> to vector<5x1xf32>
    %cst_24 = arith.constant 6.400000e+01 : f32
    %44 = vector.broadcast %cst_24 : f32 to vector<5x1xf32>
    %45 = arith.divf %43, %44 : vector<5x1xf32>
    %46 = vector.broadcast %45 : vector<5x1xf32> to vector<5x64xf32>
    %47 = arith.subf %30, %46 : vector<5x64xf32>
    %48 = arith.mulf %47, %47 : vector<5x64xf32>
    %cst_25 = arith.constant dense<0.000000e+00> : vector<5xf32>
    %49 = vector.multi_reduction <add>, %48, %cst_25 [1] : vector<5x64xf32> to vector<5xf32>
    %50 = vector.shape_cast %49 : vector<5xf32> to vector<5x1xf32>
    %cst_26 = arith.constant 6.400000e+01 : f32
    %51 = vector.broadcast %cst_26 : f32 to vector<5x1xf32>
    %52 = arith.divf %50, %51 : vector<5x1xf32>
    %53 = vector.broadcast %45 : vector<5x1xf32> to vector<5x64xf32>
    %54 = arith.subf %30, %53 : vector<5x64xf32>
    %cst_27 = arith.constant 9.99999974E-6 : f32
    %55 = vector.broadcast %cst_27 : f32 to vector<5x1xf32>
    %56 = arith.addf %52, %55 : vector<5x1xf32>
    %57 = math.rsqrt %56 : vector<5x1xf32>
    %58 = vector.broadcast %57 : vector<5x1xf32> to vector<5x64xf32>
    %59 = arith.mulf %54, %58 : vector<5x64xf32>
    %60 = vector.broadcast %35 : vector<1x64xf32> to vector<5x64xf32>
    %61 = arith.mulf %59, %60 : vector<5x64xf32>
    %62 = vector.broadcast %36 : vector<1x64xf32> to vector<5x64xf32>
    %63 = arith.addf %61, %62 : vector<5x64xf32>
    %64 = arith.truncf %63 : vector<5x64xf32> to vector<5x64xbf16>
    %65 = vector.shape_cast %64 : vector<5x64xbf16> to vector<1x5x64xbf16>
    %66 = vector.broadcast %65 : vector<1x5x64xbf16> to vector<6x5x64xbf16>
    %67 = vector.extract_strided_slice %31 {offsets = [0, 0, 0], sizes = [6, 64, 64], strides = [1, 1, 1]} : vector<8x64x64xbf16> to vector<6x64x64xbf16>
    %cst_28 = arith.constant dense<0.000000e+00> : vector<6x5x64xf32>
    %68 = tpu.matmul %66, %67, %cst_28 {dimension_numbers = #tpu.dot_dimension_numbers<[2], [1], [1], [2], [0, 0, 0, 1, 1, 2], [0], [0]>} : vector<6x5x64xbf16>, vector<6x64x64xbf16>, vector<6x5x64xf32> -> vector<6x5x64xf32>
    %69 = vector.broadcast %32 : vector<6x1x64xf32> to vector<6x5x64xf32>
    %70 = arith.addf %68, %69 : vector<6x5x64xf32>
    %71 = vector.extract_strided_slice %70 {offsets = [0, 0, 0], sizes = [2, 5, 64], strides = [1, 1, 1]} : vector<6x5x64xf32> to vector<2x5x64xf32>
    %cst_29 = arith.constant 0.176776692 : f32
    %72 = vector.broadcast %cst_29 : f32 to vector<2x5x64xf32>
    %73 = arith.mulf %71, %72 : vector<2x5x64xf32>
    %74 = vector.extract_strided_slice %70 {offsets = [2, 0, 0], sizes = [2, 5, 64], strides = [1, 1, 1]} : vector<6x5x64xf32> to vector<2x5x64xf32>
    %75 = vector.extract_strided_slice %70 {offsets = [4, 0, 0], sizes = [2, 5, 64], strides = [1, 1, 1]} : vector<6x5x64xf32> to vector<2x5x64xf32>
    %76 = arith.truncf %73 : vector<2x5x64xf32> to vector<2x5x64xbf16>
    %77 = arith.truncf %74 : vector<2x5x64xf32> to vector<2x5x64xbf16>
    %cst_30 = arith.constant dense<0.000000e+00> : vector<2x5x5xf32>
    %78 = tpu.matmul %76, %77, %cst_30 {dimension_numbers = #tpu.dot_dimension_numbers<[2], [2], [1], [1], [0, 0, 0, 1, 1, 1], [0], [0]>} : vector<2x5x64xbf16>, vector<2x5x64xbf16>, vector<2x5x5xf32> -> vector<2x5x5xf32>
    %cst_31 = arith.constant dense<0xFF800000> : vector<2x5xf32>
    %79 = vector.multi_reduction <maximumf>, %78, %cst_31 [2] : vector<2x5x5xf32> to vector<2x5xf32>
    %80 = vector.shape_cast %79 : vector<2x5xf32> to vector<2x5x1xf32>
    %81 = vector.broadcast %80 : vector<2x5x1xf32> to vector<2x5x5xf32>
    %82 = arith.subf %78, %81 : vector<2x5x5xf32>
    %83 = math.exp %82 : vector<2x5x5xf32>
    %cst_32 = arith.constant dense<0.000000e+00> : vector<2x5xf32>
    %84 = vector.multi_reduction <add>, %83, %cst_32 [2] : vector<2x5x5xf32> to vector<2x5xf32>
    %85 = vector.shape_cast %84 : vector<2x5xf32> to vector<2x5x1xf32>
    %86 = vector.broadcast %85 : vector<2x5x1xf32> to vector<2x5x5xf32>
    %87 = arith.divf %83, %86 : vector<2x5x5xf32>
    %88 = arith.truncf %87 : vector<2x5x5xf32> to vector<2x5x5xbf16>
    %89 = arith.truncf %75 : vector<2x5x64xf32> to vector<2x5x64xbf16>
    %cst_33 = arith.constant dense<0.000000e+00> : vector<2x5x64xf32>
    %90 = tpu.matmul %88, %89, %cst_33 {dimension_numbers = #tpu.dot_dimension_numbers<[2], [1], [1], [2], [0, 0, 0, 1, 1, 2], [0], [0]>} : vector<2x5x5xbf16>, vector<2x5x64xbf16>, vector<2x5x64xf32> -> vector<2x5x64xf32>
    %91 = arith.truncf %90 : vector<2x5x64xf32> to vector<2x5x64xbf16>
    %92 = vector.extract_strided_slice %31 {offsets = [6, 0, 0], sizes = [2, 64, 64], strides = [1, 1, 1]} : vector<8x64x64xbf16> to vector<2x64x64xbf16>
    %cst_34 = arith.constant dense<0.000000e+00> : vector<2x5x64xf32>
    %93 = tpu.matmul %91, %92, %cst_34 {dimension_numbers = #tpu.dot_dimension_numbers<[2], [1], [1], [2], [0, 0, 0, 1, 1, 2], [0], [0]>} : vector<2x5x64xbf16>, vector<2x64x64xbf16>, vector<2x5x64xf32> -> vector<2x5x64xf32>
    %cst_35 = arith.constant dense<0.000000e+00> : vector<5x64xf32>
    %94 = vector.multi_reduction <add>, %93, %cst_35 [0] : vector<2x5x64xf32> to vector<5x64xf32>
    %95 = arith.addf %30, %94 : vector<5x64xf32>
    %96 = vector.broadcast %37 : vector<1x64xf32> to vector<5x64xf32>
    %97 = arith.addf %95, %96 : vector<5x64xf32>
    %cst_36 = arith.constant dense<0.000000e+00> : vector<5xf32>
    %98 = vector.multi_reduction <add>, %97, %cst_36 [1] : vector<5x64xf32> to vector<5xf32>
    %99 = vector.shape_cast %98 : vector<5xf32> to vector<5x1xf32>
    %cst_37 = arith.constant 6.400000e+01 : f32
    %100 = vector.broadcast %cst_37 : f32 to vector<5x1xf32>
    %101 = arith.divf %99, %100 : vector<5x1xf32>
    %102 = vector.broadcast %101 : vector<5x1xf32> to vector<5x64xf32>
    %103 = arith.subf %97, %102 : vector<5x64xf32>
    %104 = arith.mulf %103, %103 : vector<5x64xf32>
    %cst_38 = arith.constant dense<0.000000e+00> : vector<5xf32>
    %105 = vector.multi_reduction <add>, %104, %cst_38 [1] : vector<5x64xf32> to vector<5xf32>
    %106 = vector.shape_cast %105 : vector<5xf32> to vector<5x1xf32>
    %cst_39 = arith.constant 6.400000e+01 : f32
    %107 = vector.broadcast %cst_39 : f32 to vector<5x1xf32>
    %108 = arith.divf %106, %107 : vector<5x1xf32>
    %109 = vector.broadcast %101 : vector<5x1xf32> to vector<5x64xf32>
    %110 = arith.subf %97, %109 : vector<5x64xf32>
    %cst_40 = arith.constant 9.99999974E-6 : f32
    %111 = vector.broadcast %cst_40 : f32 to vector<5x1xf32>
    %112 = arith.addf %108, %111 : vector<5x1xf32>
    %113 = math.rsqrt %112 : vector<5x1xf32>
    %114 = vector.broadcast %113 : vector<5x1xf32> to vector<5x64xf32>
    %115 = arith.mulf %110, %114 : vector<5x64xf32>
    %116 = vector.broadcast %38 : vector<1x64xf32> to vector<5x64xf32>
    %117 = arith.mulf %115, %116 : vector<5x64xf32>
    %118 = vector.broadcast %39 : vector<1x64xf32> to vector<5x64xf32>
    %119 = arith.addf %117, %118 : vector<5x64xf32>
    %120 = vector.extract_strided_slice %33 {offsets = [0, 0], sizes = [64, 256], strides = [1, 1]} : vector<320x256xbf16> to vector<64x256xbf16>
    %121 = arith.truncf %119 : vector<5x64xf32> to vector<5x64xbf16>
    %cst_41 = arith.constant dense<0.000000e+00> : vector<5x256xf32>
    %122 = tpu.matmul %121, %120, %cst_41 {dimension_numbers = #tpu.dot_dimension_numbers<[1], [0], [0], [1], [0, 0, 1, 1], [], []>} : vector<5x64xbf16>, vector<64x256xbf16>, vector<5x256xf32> -> vector<5x256xf32>
    %123 = vector.broadcast %40 : vector<1x256xf32> to vector<5x256xf32>
    %124 = arith.addf %122, %123 : vector<5x256xf32>
    %cst_42 = arith.constant 1.702000e+00 : f32
    %125 = vector.broadcast %cst_42 : f32 to vector<5x256xf32>
    %126 = arith.mulf %125, %124 : vector<5x256xf32>
    %127 = arith.negf %126 : vector<5x256xf32>
    %128 = math.exp %127 : vector<5x256xf32>
    %cst_43 = arith.constant 1.000000e+00 : f32
    %129 = vector.broadcast %cst_43 : f32 to vector<5x256xf32>
    %130 = arith.addf %129, %128 : vector<5x256xf32>
    %131 = arith.divf %129, %130 : vector<5x256xf32>
    %132 = arith.mulf %124, %131 : vector<5x256xf32>
    %133 = vector.extract_strided_slice %33 {offsets = [64, 0], sizes = [256, 64], strides = [1, 1]} : vector<320x256xbf16> to vector<256x64xbf16>
    %134 = arith.truncf %132 : vector<5x256xf32> to vector<5x256xbf16>
    %cst_44 = arith.constant dense<0.000000e+00> : vector<5x64xf32>
    %135 = tpu.matmul %134, %133, %cst_44 {dimension_numbers = #tpu.dot_dimension_numbers<[1], [0], [0], [1], [0, 0, 1, 1], [], []>} : vector<5x256xbf16>, vector<256x64xbf16>, vector<5x64xf32> -> vector<5x64xf32>
    %136 = arith.addf %97, %135 : vector<5x64xf32>
    %137 = vector.broadcast %41 : vector<1x64xf32> to vector<5x64xf32>
    %138 = arith.addf %136, %137 : vector<5x64xf32>
    %139 = vector.extract_strided_slice %138 {offsets = [0, 0], sizes = [1, 64], strides = [1, 1]} : vector<5x64xf32> to vector<1x64xf32>
    %c7 = arith.constant 7 : index
    %c0_45 = arith.constant 0 : index
    %140 = vector.load %arg3[%c7, %c0_45] : memref<16x128xf32, #tpu.memory_space<vmem>>, vector<1x64xf32>
    %c8 = arith.constant 8 : index
    %c0_46 = arith.constant 0 : index
    %141 = vector.load %arg3[%c8, %c0_46] : memref<16x128xf32, #tpu.memory_space<vmem>>, vector<1x64xf32>
    %cst_47 = arith.constant dense<0.000000e+00> : vector<1xf32>
    %142 = vector.multi_reduction <add>, %139, %cst_47 [1] : vector<1x64xf32> to vector<1xf32>
    %143 = vector.shape_cast %142 : vector<1xf32> to vector<1x1xf32>
    %cst_48 = arith.constant 6.400000e+01 : f32
    %144 = vector.broadcast %cst_48 : f32 to vector<1x1xf32>
    %145 = arith.divf %143, %144 : vector<1x1xf32>
    %146 = vector.broadcast %145 : vector<1x1xf32> to vector<1x64xf32>
    %147 = arith.subf %139, %146 : vector<1x64xf32>
    %148 = arith.mulf %147, %147 : vector<1x64xf32>
    %cst_49 = arith.constant dense<0.000000e+00> : vector<1xf32>
    %149 = vector.multi_reduction <add>, %148, %cst_49 [1] : vector<1x64xf32> to vector<1xf32>
    %150 = vector.shape_cast %149 : vector<1xf32> to vector<1x1xf32>
    %cst_50 = arith.constant 6.400000e+01 : f32
    %151 = vector.broadcast %cst_50 : f32 to vector<1x1xf32>
    %152 = arith.divf %150, %151 : vector<1x1xf32>
    %153 = vector.broadcast %145 : vector<1x1xf32> to vector<1x64xf32>
    %154 = arith.subf %139, %153 : vector<1x64xf32>
    %cst_51 = arith.constant 9.99999974E-6 : f32
    %155 = vector.broadcast %cst_51 : f32 to vector<1x1xf32>
    %156 = arith.addf %152, %155 : vector<1x1xf32>
    %157 = math.rsqrt %156 : vector<1x1xf32>
    %158 = vector.broadcast %157 : vector<1x1xf32> to vector<1x64xf32>
    %159 = arith.mulf %154, %158 : vector<1x64xf32>
    %160 = arith.mulf %159, %140 : vector<1x64xf32>
    %161 = arith.addf %160, %141 : vector<1x64xf32>
    %c0_52 = arith.constant 0 : index
    %c0_53 = arith.constant 0 : index
    %c0_54 = arith.constant 0 : index
    %162 = vector.load %arg12[%c0_52, %c0_53, %c0_54] : memref<2x64x512xbf16, #tpu.memory_space<vmem>>, vector<1x64x512xbf16>
    %163 = vector.shape_cast %162 : vector<1x64x512xbf16> to vector<64x512xbf16>
    %164 = arith.truncf %161 : vector<1x64xf32> to vector<1x64xbf16>
    %cst_55 = arith.constant dense<0.000000e+00> : vector<1x512xf32>
    %165 = tpu.matmul %164, %163, %cst_55 {dimension_numbers = #tpu.dot_dimension_numbers<[1], [0], [0], [1], [0, 0, 1, 1], [], []>} : vector<1x64xbf16>, vector<64x512xbf16>, vector<1x512xf32> -> vector<1x512xf32>
    %c0_56 = arith.constant 0 : index
    %c0_57 = arith.constant 0 : index
    %c0_58 = arith.constant 0 : index
    %166 = vector.load %arg8[%c0_56, %c0_57, %c0_58] : memref<8x64x64xbf16, #tpu.memory_space<vmem>>, vector<8x64x64xbf16>
    %c0_59 = arith.constant 0 : index
    %c0_60 = arith.constant 0 : index
    %c0_61 = arith.constant 0 : index
    %167 = vector.load %arg9[%c0_59, %c0_60, %c0_61] : memref<6x1x64xf32, #tpu.memory_space<vmem>>, vector<6x1x64xf32>
    %c0_62 = arith.constant 0 : index
    %c0_63 = arith.constant 0 : index
    %168 = vector.load %arg10[%c0_62, %c0_63] : memref<320x256xbf16, #tpu.memory_space<vmem>>, vector<320x256xbf16>
    %c0_64 = arith.constant 0 : index
    %c0_65 = arith.constant 0 : index
    %169 = vector.load %arg11[%c0_64, %c0_65] : memref<8x256xf32, #tpu.memory_space<vmem>>, vector<8x256xf32>
    %170 = vector.extract_strided_slice %169 {offsets = [0, 0], sizes = [1, 64], strides = [1, 1]} : vector<8x256xf32> to vector<1x64xf32>
    %171 = vector.extract_strided_slice %169 {offsets = [1, 0], sizes = [1, 64], strides = [1, 1]} : vector<8x256xf32> to vector<1x64xf32>
    %172 = vector.extract_strided_slice %169 {offsets = [2, 0], sizes = [1, 64], strides = [1, 1]} : vector<8x256xf32> to vector<1x64xf32>
    %173 = vector.extract_strided_slice %169 {offsets = [3, 0], sizes = [1, 64], strides = [1, 1]} : vector<8x256xf32> to vector<1x64xf32>
    %174 = vector.extract_strided_slice %169 {offsets = [4, 0], sizes = [1, 64], strides = [1, 1]} : vector<8x256xf32> to vector<1x64xf32>
    %175 = vector.extract_strided_slice %169 {offsets = [5, 0], sizes = [1, 256], strides = [1, 1]} : vector<8x256xf32> to vector<1x256xf32>
    %176 = vector.extract_strided_slice %169 {offsets = [6, 0], sizes = [1, 64], strides = [1, 1]} : vector<8x256xf32> to vector<1x64xf32>
    %cst_66 = arith.constant dense<0.000000e+00> : vector<5xf32>
    %177 = vector.multi_reduction <add>, %138, %cst_66 [1] : vector<5x64xf32> to vector<5xf32>
    %178 = vector.shape_cast %177 : vector<5xf32> to vector<5x1xf32>
    %cst_67 = arith.constant 6.400000e+01 : f32
    %179 = vector.broadcast %cst_67 : f32 to vector<5x1xf32>
    %180 = arith.divf %178, %179 : vector<5x1xf32>
    %181 = vector.broadcast %180 : vector<5x1xf32> to vector<5x64xf32>
    %182 = arith.subf %138, %181 : vector<5x64xf32>
    %183 = arith.mulf %182, %182 : vector<5x64xf32>
    %cst_68 = arith.constant dense<0.000000e+00> : vector<5xf32>
    %184 = vector.multi_reduction <add>, %183, %cst_68 [1] : vector<5x64xf32> to vector<5xf32>
    %185 = vector.shape_cast %184 : vector<5xf32> to vector<5x1xf32>
    %cst_69 = arith.constant 6.400000e+01 : f32
    %186 = vector.broadcast %cst_69 : f32 to vector<5x1xf32>
    %187 = arith.divf %185, %186 : vector<5x1xf32>
    %188 = vector.broadcast %180 : vector<5x1xf32> to vector<5x64xf32>
    %189 = arith.subf %138, %188 : vector<5x64xf32>
    %cst_70 = arith.constant 9.99999974E-6 : f32
    %190 = vector.broadcast %cst_70 : f32 to vector<5x1xf32>
    %191 = arith.addf %187, %190 : vector<5x1xf32>
    %192 = math.rsqrt %191 : vector<5x1xf32>
    %193 = vector.broadcast %192 : vector<5x1xf32> to vector<5x64xf32>
    %194 = arith.mulf %189, %193 : vector<5x64xf32>
    %195 = vector.broadcast %170 : vector<1x64xf32> to vector<5x64xf32>
    %196 = arith.mulf %194, %195 : vector<5x64xf32>
    %197 = vector.broadcast %171 : vector<1x64xf32> to vector<5x64xf32>
    %198 = arith.addf %196, %197 : vector<5x64xf32>
    %199 = arith.truncf %198 : vector<5x64xf32> to vector<5x64xbf16>
    %200 = vector.shape_cast %199 : vector<5x64xbf16> to vector<1x5x64xbf16>
    %201 = vector.broadcast %200 : vector<1x5x64xbf16> to vector<6x5x64xbf16>
    %202 = vector.extract_strided_slice %166 {offsets = [0, 0, 0], sizes = [6, 64, 64], strides = [1, 1, 1]} : vector<8x64x64xbf16> to vector<6x64x64xbf16>
    %cst_71 = arith.constant dense<0.000000e+00> : vector<6x5x64xf32>
    %203 = tpu.matmul %201, %202, %cst_71 {dimension_numbers = #tpu.dot_dimension_numbers<[2], [1], [1], [2], [0, 0, 0, 1, 1, 2], [0], [0]>} : vector<6x5x64xbf16>, vector<6x64x64xbf16>, vector<6x5x64xf32> -> vector<6x5x64xf32>
    %204 = vector.broadcast %167 : vector<6x1x64xf32> to vector<6x5x64xf32>
    %205 = arith.addf %203, %204 : vector<6x5x64xf32>
    %206 = vector.extract_strided_slice %205 {offsets = [0, 0, 0], sizes = [2, 5, 64], strides = [1, 1, 1]} : vector<6x5x64xf32> to vector<2x5x64xf32>
    %cst_72 = arith.constant 0.176776692 : f32
    %207 = vector.broadcast %cst_72 : f32 to vector<2x5x64xf32>
    %208 = arith.mulf %206, %207 : vector<2x5x64xf32>
    %209 = vector.extract_strided_slice %205 {offsets = [2, 0, 0], sizes = [2, 5, 64], strides = [1, 1, 1]} : vector<6x5x64xf32> to vector<2x5x64xf32>
    %210 = vector.extract_strided_slice %205 {offsets = [4, 0, 0], sizes = [2, 5, 64], strides = [1, 1, 1]} : vector<6x5x64xf32> to vector<2x5x64xf32>
    %211 = arith.truncf %208 : vector<2x5x64xf32> to vector<2x5x64xbf16>
    %212 = arith.truncf %209 : vector<2x5x64xf32> to vector<2x5x64xbf16>
    %cst_73 = arith.constant dense<0.000000e+00> : vector<2x5x5xf32>
    %213 = tpu.matmul %211, %212, %cst_73 {dimension_numbers = #tpu.dot_dimension_numbers<[2], [2], [1], [1], [0, 0, 0, 1, 1, 1], [0], [0]>} : vector<2x5x64xbf16>, vector<2x5x64xbf16>, vector<2x5x5xf32> -> vector<2x5x5xf32>
    %cst_74 = arith.constant dense<0xFF800000> : vector<2x5xf32>
    %214 = vector.multi_reduction <maximumf>, %213, %cst_74 [2] : vector<2x5x5xf32> to vector<2x5xf32>
    %215 = vector.shape_cast %214 : vector<2x5xf32> to vector<2x5x1xf32>
    %216 = vector.broadcast %215 : vector<2x5x1xf32> to vector<2x5x5xf32>
    %217 = arith.subf %213, %216 : vector<2x5x5xf32>
    %218 = math.exp %217 : vector<2x5x5xf32>
    %cst_75 = arith.constant dense<0.000000e+00> : vector<2x5xf32>
    %219 = vector.multi_reduction <add>, %218, %cst_75 [2] : vector<2x5x5xf32> to vector<2x5xf32>
    %220 = vector.shape_cast %219 : vector<2x5xf32> to vector<2x5x1xf32>
    %221 = vector.broadcast %220 : vector<2x5x1xf32> to vector<2x5x5xf32>
    %222 = arith.divf %218, %221 : vector<2x5x5xf32>
    %223 = arith.truncf %222 : vector<2x5x5xf32> to vector<2x5x5xbf16>
    %224 = arith.truncf %210 : vector<2x5x64xf32> to vector<2x5x64xbf16>
    %cst_76 = arith.constant dense<0.000000e+00> : vector<2x5x64xf32>
    %225 = tpu.matmul %223, %224, %cst_76 {dimension_numbers = #tpu.dot_dimension_numbers<[2], [1], [1], [2], [0, 0, 0, 1, 1, 2], [0], [0]>} : vector<2x5x5xbf16>, vector<2x5x64xbf16>, vector<2x5x64xf32> -> vector<2x5x64xf32>
    %226 = arith.truncf %225 : vector<2x5x64xf32> to vector<2x5x64xbf16>
    %227 = vector.extract_strided_slice %166 {offsets = [6, 0, 0], sizes = [2, 64, 64], strides = [1, 1, 1]} : vector<8x64x64xbf16> to vector<2x64x64xbf16>
    %cst_77 = arith.constant dense<0.000000e+00> : vector<2x5x64xf32>
    %228 = tpu.matmul %226, %227, %cst_77 {dimension_numbers = #tpu.dot_dimension_numbers<[2], [1], [1], [2], [0, 0, 0, 1, 1, 2], [0], [0]>} : vector<2x5x64xbf16>, vector<2x64x64xbf16>, vector<2x5x64xf32> -> vector<2x5x64xf32>
    %cst_78 = arith.constant dense<0.000000e+00> : vector<5x64xf32>
    %229 = vector.multi_reduction <add>, %228, %cst_78 [0] : vector<2x5x64xf32> to vector<5x64xf32>
    %230 = arith.addf %138, %229 : vector<5x64xf32>
    %231 = vector.broadcast %172 : vector<1x64xf32> to vector<5x64xf32>
    %232 = arith.addf %230, %231 : vector<5x64xf32>
    %cst_79 = arith.constant dense<0.000000e+00> : vector<5xf32>
    %233 = vector.multi_reduction <add>, %232, %cst_79 [1] : vector<5x64xf32> to vector<5xf32>
    %234 = vector.shape_cast %233 : vector<5xf32> to vector<5x1xf32>
    %cst_80 = arith.constant 6.400000e+01 : f32
    %235 = vector.broadcast %cst_80 : f32 to vector<5x1xf32>
    %236 = arith.divf %234, %235 : vector<5x1xf32>
    %237 = vector.broadcast %236 : vector<5x1xf32> to vector<5x64xf32>
    %238 = arith.subf %232, %237 : vector<5x64xf32>
    %239 = arith.mulf %238, %238 : vector<5x64xf32>
    %cst_81 = arith.constant dense<0.000000e+00> : vector<5xf32>
    %240 = vector.multi_reduction <add>, %239, %cst_81 [1] : vector<5x64xf32> to vector<5xf32>
    %241 = vector.shape_cast %240 : vector<5xf32> to vector<5x1xf32>
    %cst_82 = arith.constant 6.400000e+01 : f32
    %242 = vector.broadcast %cst_82 : f32 to vector<5x1xf32>
    %243 = arith.divf %241, %242 : vector<5x1xf32>
    %244 = vector.broadcast %236 : vector<5x1xf32> to vector<5x64xf32>
    %245 = arith.subf %232, %244 : vector<5x64xf32>
    %cst_83 = arith.constant 9.99999974E-6 : f32
    %246 = vector.broadcast %cst_83 : f32 to vector<5x1xf32>
    %247 = arith.addf %243, %246 : vector<5x1xf32>
    %248 = math.rsqrt %247 : vector<5x1xf32>
    %249 = vector.broadcast %248 : vector<5x1xf32> to vector<5x64xf32>
    %250 = arith.mulf %245, %249 : vector<5x64xf32>
    %251 = vector.broadcast %173 : vector<1x64xf32> to vector<5x64xf32>
    %252 = arith.mulf %250, %251 : vector<5x64xf32>
    %253 = vector.broadcast %174 : vector<1x64xf32> to vector<5x64xf32>
    %254 = arith.addf %252, %253 : vector<5x64xf32>
    %255 = vector.extract_strided_slice %168 {offsets = [0, 0], sizes = [64, 256], strides = [1, 1]} : vector<320x256xbf16> to vector<64x256xbf16>
    %256 = arith.truncf %254 : vector<5x64xf32> to vector<5x64xbf16>
    %cst_84 = arith.constant dense<0.000000e+00> : vector<5x256xf32>
    %257 = tpu.matmul %256, %255, %cst_84 {dimension_numbers = #tpu.dot_dimension_numbers<[1], [0], [0], [1], [0, 0, 1, 1], [], []>} : vector<5x64xbf16>, vector<64x256xbf16>, vector<5x256xf32> -> vector<5x256xf32>
    %258 = vector.broadcast %175 : vector<1x256xf32> to vector<5x256xf32>
    %259 = arith.addf %257, %258 : vector<5x256xf32>
    %cst_85 = arith.constant 1.702000e+00 : f32
    %260 = vector.broadcast %cst_85 : f32 to vector<5x256xf32>
    %261 = arith.mulf %260, %259 : vector<5x256xf32>
    %262 = arith.negf %261 : vector<5x256xf32>
    %263 = math.exp %262 : vector<5x256xf32>
    %cst_86 = arith.constant 1.000000e+00 : f32
    %264 = vector.broadcast %cst_86 : f32 to vector<5x256xf32>
    %265 = arith.addf %264, %263 : vector<5x256xf32>
    %266 = arith.divf %264, %265 : vector<5x256xf32>
    %267 = arith.mulf %259, %266 : vector<5x256xf32>
    %268 = vector.extract_strided_slice %168 {offsets = [64, 0], sizes = [256, 64], strides = [1, 1]} : vector<320x256xbf16> to vector<256x64xbf16>
    %269 = arith.truncf %267 : vector<5x256xf32> to vector<5x256xbf16>
    %cst_87 = arith.constant dense<0.000000e+00> : vector<5x64xf32>
    %270 = tpu.matmul %269, %268, %cst_87 {dimension_numbers = #tpu.dot_dimension_numbers<[1], [0], [0], [1], [0, 0, 1, 1], [], []>} : vector<5x256xbf16>, vector<256x64xbf16>, vector<5x64xf32> -> vector<5x64xf32>
    %271 = arith.addf %232, %270 : vector<5x64xf32>
    %272 = vector.broadcast %176 : vector<1x64xf32> to vector<5x64xf32>
    %273 = arith.addf %271, %272 : vector<5x64xf32>
    %274 = vector.extract_strided_slice %273 {offsets = [0, 0], sizes = [1, 64], strides = [1, 1]} : vector<5x64xf32> to vector<1x64xf32>
    %cst_88 = arith.constant dense<0.000000e+00> : vector<1x5xf32>
    %275 = tpu.matmul %274, %273, %cst_88 {dimension_numbers = #tpu.dot_dimension_numbers<[1], [1], [0], [0], [0, 0, 1, 0], [], []>} : vector<1x64xf32>, vector<5x64xf32>, vector<1x5xf32> -> vector<1x5xf32>
    %cst_89 = arith.constant 1.250000e-01 : f32
    %276 = vector.broadcast %cst_89 : f32 to vector<1x5xf32>
    %277 = arith.mulf %275, %276 : vector<1x5xf32>
    %278 = tpu.iota {dimensions = array<i32: 1>} : vector<1x5xi32>
    %cst_90 = arith.constant 0.000000e+00 : f32
    %279 = vector.broadcast %cst_90 : f32 to vector<1x5xf32>
    %cst_91 = arith.constant dense<0xFF800000> : vector<1xf32>
    %280 = vector.multi_reduction <maximumf>, %277, %cst_91 [1] : vector<1x5xf32> to vector<1xf32>
    %281 = vector.shape_cast %280 : vector<1xf32> to vector<1x1xf32>
    %282 = vector.broadcast %281 : vector<1x1xf32> to vector<1x5xf32>
    %283 = arith.cmpf oge, %277, %282 : vector<1x5xf32>
    %c5_i32 = arith.constant 5 : i32
    %284 = vector.broadcast %c5_i32 : i32 to vector<1x5xi32>
    %285 = arith.select %283, %278, %284 : vector<1x5xi1>, vector<1x5xi32>
    %cst_92 = arith.constant dense<2147483647> : vector<1xi32>
    %286 = vector.multi_reduction <minsi>, %285, %cst_92 [1] : vector<1x5xi32> to vector<1xi32>
    %287 = vector.shape_cast %286 : vector<1xi32> to vector<1x1xi32>
    %288 = vector.broadcast %287 : vector<1x1xi32> to vector<1x5xi32>
    %289 = arith.cmpi eq, %278, %288 : vector<1x5xi32>
    %290 = arith.extui %289 : vector<1x5xi1> to vector<1x5xi32>
    %291 = arith.sitofp %290 : vector<1x5xi32> to vector<1x5xf32>
    %292 = arith.addf %279, %291 : vector<1x5xf32>
    %cst_93 = arith.constant 0.000000e+00 : f32
    %293 = vector.broadcast %cst_93 : f32 to vector<1x5xf32>
    %294 = arith.cmpf ogt, %291, %293 : vector<1x5xf32>
    %cst_94 = arith.constant 0xFF800000 : f32
    %295 = vector.broadcast %cst_94 : f32 to vector<1x5xf32>
    %296 = arith.select %294, %295, %277 : vector<1x5xi1>, vector<1x5xf32>
    %cst_95 = arith.constant dense<0xFF800000> : vector<1xf32>
    %297 = vector.multi_reduction <maximumf>, %296, %cst_95 [1] : vector<1x5xf32> to vector<1xf32>
    %298 = vector.shape_cast %297 : vector<1xf32> to vector<1x1xf32>
    %299 = vector.broadcast %298 : vector<1x1xf32> to vector<1x5xf32>
    %300 = arith.cmpf oge, %296, %299 : vector<1x5xf32>
    %c5_i32_96 = arith.constant 5 : i32
    %301 = vector.broadcast %c5_i32_96 : i32 to vector<1x5xi32>
    %302 = arith.select %300, %278, %301 : vector<1x5xi1>, vector<1x5xi32>
    %cst_97 = arith.constant dense<2147483647> : vector<1xi32>
    %303 = vector.multi_reduction <minsi>, %302, %cst_97 [1] : vector<1x5xi32> to vector<1xi32>
    %304 = vector.shape_cast %303 : vector<1xi32> to vector<1x1xi32>
    %305 = vector.broadcast %304 : vector<1x1xi32> to vector<1x5xi32>
    %306 = arith.cmpi eq, %278, %305 : vector<1x5xi32>
    %307 = arith.extui %306 : vector<1x5xi1> to vector<1x5xi32>
    %308 = arith.sitofp %307 : vector<1x5xi32> to vector<1x5xf32>
    %309 = arith.addf %292, %308 : vector<1x5xf32>
    %cst_98 = arith.constant 0.000000e+00 : f32
    %310 = vector.broadcast %cst_98 : f32 to vector<1x5xf32>
    %311 = arith.cmpf ogt, %308, %310 : vector<1x5xf32>
    %cst_99 = arith.constant 0xFF800000 : f32
    %312 = vector.broadcast %cst_99 : f32 to vector<1x5xf32>
    %313 = arith.select %311, %312, %296 : vector<1x5xi1>, vector<1x5xf32>
    %cst_100 = arith.constant dense<0xFF800000> : vector<1xf32>
    %314 = vector.multi_reduction <maximumf>, %313, %cst_100 [1] : vector<1x5xf32> to vector<1xf32>
    %315 = vector.shape_cast %314 : vector<1xf32> to vector<1x1xf32>
    %316 = vector.broadcast %315 : vector<1x1xf32> to vector<1x5xf32>
    %317 = arith.cmpf oge, %313, %316 : vector<1x5xf32>
    %c5_i32_101 = arith.constant 5 : i32
    %318 = vector.broadcast %c5_i32_101 : i32 to vector<1x5xi32>
    %319 = arith.select %317, %278, %318 : vector<1x5xi1>, vector<1x5xi32>
    %cst_102 = arith.constant dense<2147483647> : vector<1xi32>
    %320 = vector.multi_reduction <minsi>, %319, %cst_102 [1] : vector<1x5xi32> to vector<1xi32>
    %321 = vector.shape_cast %320 : vector<1xi32> to vector<1x1xi32>
    %322 = vector.broadcast %321 : vector<1x1xi32> to vector<1x5xi32>
    %323 = arith.cmpi eq, %278, %322 : vector<1x5xi32>
    %324 = arith.extui %323 : vector<1x5xi1> to vector<1x5xi32>
    %325 = arith.sitofp %324 : vector<1x5xi32> to vector<1x5xf32>
    %326 = arith.addf %309, %325 : vector<1x5xf32>
    %cst_103 = arith.constant dense<0.000000e+00> : vector<1x64xf32>
    %327 = tpu.matmul %326, %273, %cst_103 {dimension_numbers = #tpu.dot_dimension_numbers<[1], [0], [0], [1], [0, 0, 1, 1], [], []>} : vector<1x5xf32>, vector<5x64xf32>, vector<1x64xf32> -> vector<1x64xf32>
    %cst_104 = arith.constant 0.333333343 : f32
    %328 = vector.broadcast %cst_104 : f32 to vector<1x64xf32>
    %329 = arith.mulf %327, %328 : vector<1x64xf32>
    %c9 = arith.constant 9 : index
    %c0_105 = arith.constant 0 : index
    %330 = vector.load %arg3[%c9, %c0_105] : memref<16x128xf32, #tpu.memory_space<vmem>>, vector<1x64xf32>
    %c10 = arith.constant 10 : index
    %c0_106 = arith.constant 0 : index
    %331 = vector.load %arg3[%c10, %c0_106] : memref<16x128xf32, #tpu.memory_space<vmem>>, vector<1x64xf32>
    %cst_107 = arith.constant dense<0.000000e+00> : vector<1xf32>
    %332 = vector.multi_reduction <add>, %329, %cst_107 [1] : vector<1x64xf32> to vector<1xf32>
    %333 = vector.shape_cast %332 : vector<1xf32> to vector<1x1xf32>
    %cst_108 = arith.constant 6.400000e+01 : f32
    %334 = vector.broadcast %cst_108 : f32 to vector<1x1xf32>
    %335 = arith.divf %333, %334 : vector<1x1xf32>
    %336 = vector.broadcast %335 : vector<1x1xf32> to vector<1x64xf32>
    %337 = arith.subf %329, %336 : vector<1x64xf32>
    %338 = arith.mulf %337, %337 : vector<1x64xf32>
    %cst_109 = arith.constant dense<0.000000e+00> : vector<1xf32>
    %339 = vector.multi_reduction <add>, %338, %cst_109 [1] : vector<1x64xf32> to vector<1xf32>
    %340 = vector.shape_cast %339 : vector<1xf32> to vector<1x1xf32>
    %cst_110 = arith.constant 6.400000e+01 : f32
    %341 = vector.broadcast %cst_110 : f32 to vector<1x1xf32>
    %342 = arith.divf %340, %341 : vector<1x1xf32>
    %343 = vector.broadcast %335 : vector<1x1xf32> to vector<1x64xf32>
    %344 = arith.subf %329, %343 : vector<1x64xf32>
    %cst_111 = arith.constant 9.99999974E-6 : f32
    %345 = vector.broadcast %cst_111 : f32 to vector<1x1xf32>
    %346 = arith.addf %342, %345 : vector<1x1xf32>
    %347 = math.rsqrt %346 : vector<1x1xf32>
    %348 = vector.broadcast %347 : vector<1x1xf32> to vector<1x64xf32>
    %349 = arith.mulf %344, %348 : vector<1x64xf32>
    %350 = arith.mulf %349, %330 : vector<1x64xf32>
    %351 = arith.addf %350, %331 : vector<1x64xf32>
    %c1 = arith.constant 1 : index
    %c0_112 = arith.constant 0 : index
    %c0_113 = arith.constant 0 : index
    %352 = vector.load %arg12[%c1, %c0_112, %c0_113] : memref<2x64x512xbf16, #tpu.memory_space<vmem>>, vector<1x64x512xbf16>
    %353 = vector.shape_cast %352 : vector<1x64x512xbf16> to vector<64x512xbf16>
    %354 = arith.truncf %351 : vector<1x64xf32> to vector<1x64xbf16>
    %cst_114 = arith.constant dense<0.000000e+00> : vector<1x512xf32>
    %355 = tpu.matmul %354, %353, %cst_114 {dimension_numbers = #tpu.dot_dimension_numbers<[1], [0], [0], [1], [0, 0, 1, 1], [], []>} : vector<1x64xbf16>, vector<64x512xbf16>, vector<1x512xf32> -> vector<1x512xf32>
    %cst_115 = arith.constant 1.000000e+00 : f32
    %356 = vector.broadcast %cst_115 : f32 to vector<1x512xf32>
    %357 = arith.mulf %356, %355 : vector<1x512xf32>
    %358 = arith.addf %165, %357 : vector<1x512xf32>
    %c0_116 = arith.constant 0 : index
    %c0_117 = arith.constant 0 : index
    %359 = vector.load %arg13[%c0_116, %c0_117] : memref<512x128xbf16, #tpu.memory_space<vmem>>, vector<512x128xbf16>
    %360 = arith.truncf %358 : vector<1x512xf32> to vector<1x512xbf16>
    %cst_118 = arith.constant dense<0.000000e+00> : vector<1x128xf32>
    %361 = tpu.matmul %360, %359, %cst_118 {dimension_numbers = #tpu.dot_dimension_numbers<[1], [0], [0], [1], [0, 0, 1, 1], [], []>} : vector<1x512xbf16>, vector<512x128xbf16>, vector<1x128xf32> -> vector<1x128xf32>
    %c11 = arith.constant 11 : index
    %c0_119 = arith.constant 0 : index
    %362 = vector.load %arg3[%c11, %c0_119] : memref<16x128xf32, #tpu.memory_space<vmem>>, vector<1x128xf32>
    %363 = arith.addf %361, %362 : vector<1x128xf32>
    %c0_120 = arith.constant 0 : index
    %c0_121 = arith.constant 0 : index
    %c0_122 = arith.constant 0 : index
    %364 = vector.load %arg14[%c0_120, %c0_121, %c0_122] : memref<1x1x128xf32, #tpu.memory_space<vmem>>, vector<1x1x128xf32>
    %365 = vector.shape_cast %364 : vector<1x1x128xf32> to vector<1x128xf32>
    %366 = vector.shape_cast %363 : vector<1x128xf32> to vector<1x1x128xf32>
    tpu.vector_store %arg14[%c0_120, %c0_121, %c0_122], %366 {strides = array<i32>} : memref<1x1x128xf32, #tpu.memory_space<vmem>>, vector<1x1x128xf32>,
    %c0_123 = arith.constant 0 : index
    %c0_124 = arith.constant 0 : index
    %c0_125 = arith.constant 0 : index
    %367 = vector.load %arg15[%c0_123, %c0_124, %c0_125] : memref<1x1x512xf32, #tpu.memory_space<vmem>>, vector<1x1x512xf32>
    %368 = vector.shape_cast %367 : vector<1x1x512xf32> to vector<1x512xf32>
    %369 = vector.shape_cast %355 : vector<1x512xf32> to vector<1x1x512xf32>
    tpu.vector_store %arg15[%c0_123, %c0_124, %c0_125], %369 {strides = array<i32>} : memref<1x1x512xf32, #tpu.memory_space<vmem>>, vector<1x1x512xf32>,
    return
  }
  func.func @transform_0(%arg0: i32) -> (i32, i32, i32) {
    %c0_i32 = arith.constant 0 : i32
    %c0_i32_0 = arith.constant 0 : i32
    %c0_i32_1 = arith.constant 0 : i32
    return %arg0, %c0_i32, %c0_i32_0 : i32, i32, i32
  }
  func.func @transform_1(%arg0: i32) -> (i32, i32) {
    %c0_i32 = arith.constant 0 : i32
    %c0_i32_0 = arith.constant 0 : i32
    %c0_i32_1 = arith.constant 0 : i32
    return %c0_i32, %c0_i32_0 : i32, i32
  }
  func.func @transform_2(%arg0: i32) -> (i32, i32) {
    %c0_i32 = arith.constant 0 : i32
    %c0_i32_0 = arith.constant 0 : i32
    %c0_i32_1 = arith.constant 0 : i32
    return %c0_i32, %c0_i32_0 : i32, i32
  }
  func.func @transform_3(%arg0: i32) -> (i32, i32, i32) {
    %c0_i32 = arith.constant 0 : i32
    %c0_i32_0 = arith.constant 0 : i32
    %c0_i32_1 = arith.constant 0 : i32
    %c0_i32_2 = arith.constant 0 : i32
    return %c0_i32, %c0_i32_0, %c0_i32_1 : i32, i32, i32
  }
  func.func @transform_4(%arg0: i32) -> (i32, i32, i32) {
    %c0_i32 = arith.constant 0 : i32
    %c0_i32_0 = arith.constant 0 : i32
    %c0_i32_1 = arith.constant 0 : i32
    %c0_i32_2 = arith.constant 0 : i32
    return %c0_i32, %c0_i32_0, %c0_i32_1 : i32, i32, i32
  }
  func.func @transform_5(%arg0: i32) -> (i32, i32) {
    %c0_i32 = arith.constant 0 : i32
    %c0_i32_0 = arith.constant 0 : i32
    %c0_i32_1 = arith.constant 0 : i32
    return %c0_i32, %c0_i32_0 : i32, i32
  }
  func.func @transform_6(%arg0: i32) -> (i32, i32) {
    %c0_i32 = arith.constant 0 : i32
    %c0_i32_0 = arith.constant 0 : i32
    %c0_i32_1 = arith.constant 0 : i32
    return %c0_i32, %c0_i32_0 : i32, i32
  }
  func.func @transform_7(%arg0: i32) -> (i32, i32, i32) {
    %c0_i32 = arith.constant 0 : i32
    %c0_i32_0 = arith.constant 0 : i32
    %c0_i32_1 = arith.constant 0 : i32
    %c0_i32_2 = arith.constant 0 : i32
    return %c0_i32, %c0_i32_0, %c0_i32_1 : i32, i32, i32
  }
  func.func @transform_8(%arg0: i32) -> (i32, i32, i32) {
    %c0_i32 = arith.constant 0 : i32
    %c0_i32_0 = arith.constant 0 : i32
    %c0_i32_1 = arith.constant 0 : i32
    %c0_i32_2 = arith.constant 0 : i32
    return %c0_i32, %c0_i32_0, %c0_i32_1 : i32, i32, i32
  }
  func.func @transform_9(%arg0: i32) -> (i32, i32) {
    %c0_i32 = arith.constant 0 : i32
    %c0_i32_0 = arith.constant 0 : i32
    %c0_i32_1 = arith.constant 0 : i32
    return %c0_i32, %c0_i32_0 : i32, i32
  }
  func.func @transform_10(%arg0: i32) -> (i32, i32) {
    %c0_i32 = arith.constant 0 : i32
    %c0_i32_0 = arith.constant 0 : i32
    %c0_i32_1 = arith.constant 0 : i32
    return %c0_i32, %c0_i32_0 : i32, i32
  }
  func.func @transform_11(%arg0: i32) -> (i32, i32, i32) {
    %c0_i32 = arith.constant 0 : i32
    %c0_i32_0 = arith.constant 0 : i32
    %c0_i32_1 = arith.constant 0 : i32
    %c0_i32_2 = arith.constant 0 : i32
    return %c0_i32, %c0_i32_0, %c0_i32_1 : i32, i32, i32
  }
  func.func @transform_12(%arg0: i32) -> (i32, i32) {
    %c0_i32 = arith.constant 0 : i32
    %c0_i32_0 = arith.constant 0 : i32
    %c0_i32_1 = arith.constant 0 : i32
    return %c0_i32, %c0_i32_0 : i32, i32
  }
  func.func @transform_13(%arg0: i32) -> (i32, i32, i32) {
    %c0_i32 = arith.constant 0 : i32
    %c0_i32_0 = arith.constant 0 : i32
    %c0_i32_1 = arith.constant 0 : i32
    return %arg0, %c0_i32, %c0_i32_0 : i32, i32, i32
  }
  func.func @transform_14(%arg0: i32) -> (i32, i32, i32) {
    %c0_i32 = arith.constant 0 : i32
    %c0_i32_0 = arith.constant 0 : i32
    %c0_i32_1 = arith.constant 0 : i32
    return %arg0, %c0_i32, %c0_i32_0 : i32, i32, i32
  }
}

</mosaic_0001>

<bundles_post_ra>
// kernel: custom_clip_forward.1
= control target key start
LH: loop header
LB: loop body
LE: loop exit
PB: predicated region body
PF: predicated region fallthrough
CT: control target
= control target key end

     0   :  { %s6459_s0 = inlined_call_operand.vmem [shape: f32[2,5,192], index: 0, kind: input, shape index: {}]   ;;  %s6460_s1 = inlined_call_operand.vmem [shape: bf16[192,64], index: 1, kind: input, shape index: {}]   ;;  %s6461_s2 = inlined_call_operand.vmem [shape: f32[16,128], index: 2, kind: input, shape index: {}]   ;;  %s6462_s3 = inlined_call_operand.vmem [shape: bf16[8,64,64], index: 3, kind: input, shape index: {}]   ;;  %s6463_s4 = inlined_call_operand.vmem [shape: f32[6,1,64], index: 4, kind: input, shape index: {}]   ;;  %s6464_s5 = inlined_call_operand.vmem [shape: bf16[320,256], index: 5, kind: input, shape index: {}]   ;;  %s6465_s6 = inlined_call_operand.vmem [shape: f32[8,256], index: 6, kind: input, shape index: {}]   ;;  %s6466_s7 = inlined_call_operand.hbm [shape: bf16[8,64,64], index: 7, kind: input, shape index: {}]   ;;  %s6467_s8 = inlined_call_operand.vmem [shape: f32[6,1,64], index: 8, kind: input, shape index: {}]   ;;  %s6468_s9 = inlined_call_operand.vmem [shape: bf16[320,256], index: 9, kind: input, shape index: {}]   ;;  %s6469_s10 = inlined_call_operand.vmem [shape: f32[8,256], index: 10, kind: input, shape index: {}]   ;;  %s6470_s11 = inlined_call_operand.hbm [shape: bf16[2,64,512], index: 11, kind: input, shape index: {}]   ;;  %s6471_s12 = inlined_call_operand.hbm [shape: bf16[512,128], index: 12, kind: input, shape index: {}]   ;;  %s6472_s13 = inlined_call_operand.hbm [shape: f32[2,1,128], index: 13, kind: output, shape index: {0}]   ;;  %s6473_s14 = inlined_call_operand.hbm [shape: f32[2,1,512], index: 14, kind: output, shape index: {1}]  }
   0x1   :  { %6487 = sst [smem:[#allocation22_spill]] %s6470_s11 }
   0x2   :  { %6488 = sst [smem:[#allocation23_spill]] %s6472_s13 }
   0x3   :  { %6489 = sst [smem:[#allocation24_spill]] %s6473_s14 }
   0x4   :  { %20 = vsyncpa [#allocation3], 0 }
   0x5   :  { %21 = vsyncpa [#allocation6], 0 }
   0x6   :  { %22 = vsyncpa [#allocation4], 0 }
   0x7   :  { %24 = vsyncpa [#allocation4 + $0x1], 0 }
   0x8   :  { %25 = vsyncpa [#allocation10], 0 }
   0x9   :  { %27 = vsyncpa [#allocation10 + $0x1], 0  ;;  %s5569_s29 = smov 0   ;;  %s5571_s30 = smov 0  }
   0xa   :  { %s5573_s15 = smov 0   ;;  %s5575_s16 = smov 0  }
   0xb LB: > { %6490 = sst [smem:[#allocation15_spill]] %s5466_s29  ;;  %s5590_s17 = sadd.s32 4294967295, %s5478_s16   ;;  %s5478_s16 = sphi %s5575_s16, %s6516_s16   ;;  %s5474_s15 = sphi %s5573_s15, %s6518_s15   ;;  %s5470_s30 = sphi %s5571_s30, %s6520_s30   ;;  %s5466_s29 = sphi %s5569_s29, %s6519_s29  }
   0xc   : > { %6491 = sst [smem:[#allocation16_spill]] %s5474_s15  ;;  %s4247_s18 = sadd.s32 4294967294, %s5478_s16  }
   0xd   : > { %6492 = sst [smem:[#allocation17_spill]] %s5478_s16  ;;  %s5594_s19 = sadd.s32 1, %s5478_s16  }
   0xe   : > { %6493 = sst [smem:[#allocation18_spill]] %s5594_s19  ;;  %s318_s20 = sadd.s32 1, %s5474_s15 }
   0xf   : > { %s315_s21 = ssub.s32 %s5478_s16, %s5594_s19  ;;  %p328_p0 = scmp.ne.s32.totalorder %s5474_s15, %s5470_s30 }
  0x10   : > { %p316_p1 = scmp.eq.s32.totalorder %s315_s21, 0  ;;  %p329_p2 = scmp.eq.s32.totalorder %s5590_s17, 1 }
  0x11   : > { %p334_p3 = scmp.ne.s32.totalorder %s5470_s30, %s5466_s29  ;;  %p335_p4 = scmp.eq.s32.totalorder %s4247_s18, 1 }
  0x12   : > { %s5605_s22 = scalar_select %p316_p1, %s5474_s15, %s318_s20  }
  0x13   : > { %p5607_p5 = por %p329_p2, %p328_p0  ;;  %p5611_p6 = por %p335_p4, %p334_p3 }
  0x14   : > { %6494 = sst [smem:[#allocation19_spill]] %s5605_s22  ;;  %p4248_p7 = scmp.ge.s32.totalorder %s5478_s16, 1 }
  0x15   : > { %s6495_s23 = scalar_select %p5607_p5, 1, 0 }
  0x16   : > { %s6497_s24 = scalar_select %p5611_p6, 1, 0 }
  0x17   : > { %6496 = sst [smem:[#allocation20_spill]] %s6495_s23  ;;  %p368_p8 = scmp.lt.s32.totalorder %s5478_s16, 3 }
  0x18   : > { %6498 = sst [smem:[#allocation21_spill]] %s6497_s24  ;;  %p6479_p9 = scmp.eq.s32.totalorder %s5590_s17, 0 }
  0x19   : > { %p5618_p10 = pnand %p4248_p7, %p368_p8  ;;  %s5480_s26 = smov [#allocation5]  }
  0x1a   : > { %s420_s27 = sshll.u32 %s5480_s26, 4  ;;  %s5481_s18 = smov [#allocation2]   ;;  %s421_s27 = int_to_ptr.vmem [resolvable:$true] %s420_s27 }
  0x1b   : > { %s6499_s25 = scalar_select %p5618_p10, 1, 0 }
  0x1c   : > { %p4966_p11 = pneg %p5618_p10  ;;  %s398_s20 = sshll.u32 %s5481_s18, 4  ;;  %s5630_s20 = int_to_ptr.vmem [resolvable:$true] %s398_s20 }
  0x1d   : > { %s6501_s11 = sld [smem:[#allocation22_spill]] }
  0x1e   : > { %p5626_p12 = pnand %p6479_p9, %p4966_p11 }
  0x20   : > { %p5640_p0 = pneg %p5626_p12 }
  0x23   : > { %s5292_s15 = scalar_lea.hbm %s6501_s11, 4096 }
  0x24   : > { %p5293_p13 = scmp.ne.s32.totalorder %s6501_s11, %s5292_s15  ;;  %p5299_p3 = scmp.lt.u32.totalorder %s5292_s15, %s6501_s11 }
  0x26   : > { %p5295_p1 = pnand %p5640_p0, %p5293_p13 }
  0x28   : > { %p5296_p2 = pneg %p5295_p1 }
  0x2a   : > { %p5301_p4 = pnand %p5299_p3, %p5296_p2 }
  0x2c   : > { %5304 = shalt.err (!%p5301_p4)
}
  0x2d   : > { %s5305_s22 = scalar_lea.vmem %s421_s27, 4096  ;;  %p5313_p9 = scmp.lt.s32.totalorder %s421_s27, %s421_s27 }
  0x2e   : > { %p5306_p7 = scmp.ne.s32.totalorder %s421_s27, %s5305_s22  ;;  %p5314_p6 = scmp.lt.s32.totalorder %s5305_s22, %s5305_s22 }
  0x30   : > { %p5308_p8 = pnand %p5306_p7, %p5640_p0  ;;  %p5315_p5 = por %p5314_p6, %p5313_p9 }
  0x32   : > { %p5309_p11 = pneg %p5308_p8 }
  0x34   : > { %p5316_p10 = pnand %p5315_p5, %p5309_p11 }
  0x36   : > { %5319 = shalt.err (!%p5316_p10)
}
  0x37   : > { %s5482_s19 = smov 256   ;;  %s5483_s24 = smov 16  }
  0x38   : > { %4972 = dma.hbm_to_vmem [thread:$0]  (!%p5626_p12), %s6501_s11, 4096, %s421_s27, [#allocation6], %s5482_s19, %s5482_s19, %s5483_s24  }
  0x39   : > { %s5320_s16 = scalar_lea.hbm %s6466_s7, 4096 }
  0x3a   : > { %p5321_p13 = scmp.ne.s32.totalorder %s6466_s7, %s5320_s16  ;;  %p5327_p9 = scmp.lt.u32.totalorder %s5320_s16, %s6466_s7 }
  0x3c   : > { %p5323_p5 = pnand %p5321_p13, %p5640_p0 }
  0x3e   : > { %p5324_p6 = pneg %p5323_p5 }
  0x40   : > { %p5329_p10 = pnand %p5327_p9, %p5324_p6 }
  0x42   : > { %5332 = shalt.err (!%p5329_p10)
}
  0x43   : > { %s5333_s27 = scalar_lea.vmem %s5630_s20, 4096  ;;  %p5341_p4 = scmp.lt.s32.totalorder %s5630_s20, %s5630_s20 }
  0x44   : > { %p5334_p1 = scmp.ne.s32.totalorder %s5630_s20, %s5333_s27  ;;  %p5342_p7 = scmp.lt.s32.totalorder %s5333_s27, %s5333_s27 }
  0x46   : > { %p5336_p2 = pnand %p5334_p1, %p5640_p0  ;;  %p5343_p8 = por %p5342_p7, %p5341_p4 }
  0x48   : > { %p5337_p3 = pneg %p5336_p2 }
  0x4a   : > { %p5344_p11 = pnand %p5343_p8, %p5337_p3 }
  0x4c   : > { %5347 = shalt.err (!%p5344_p11)
}
  0x4d   : > { %s5484_s13 = smov 64   ;;  %s5485_s14 = smov 4  }
  0x4e   : > { %4969 = dma.hbm_to_vmem [thread:$0]  (!%p5626_p12), %s6466_s7, 4096, %s5630_s20, [#allocation3], %s5484_s13, %s5484_s13, %s5485_s14  }
  0x4f   : > { %s5486_s19 = smov [#allocation7]   ;;  %s5348_s21 = scalar_lea.hbm %s6471_s12, 4096 }
  0x50   : > { %s433_s24 = sshll.u32 %s5486_s19, 4  ;;  %p5349_p13 = scmp.ne.s32.totalorder %s6471_s12, %s5348_s21  ;;  %s434_s24 = int_to_ptr.vmem [resolvable:$true] %s433_s24 }
  0x51   : > { %p5355_p9 = scmp.lt.u32.totalorder %s5348_s21, %s6471_s12 }
  0x52   : > { %p5351_p5 = pnand %p5349_p13, %p5640_p0 }
  0x54   : > { %p5352_p6 = pneg %p5351_p5 }
  0x56   : > { %p5357_p10 = pnand %p5355_p9, %p5352_p6 }
  0x58   : > { %5360 = shalt.err (!%p5357_p10)
}
  0x59   : > { %s5361_s20 = scalar_lea.vmem %s434_s24, 4096  ;;  %p5369_p4 = scmp.lt.s32.totalorder %s434_s24, %s434_s24 }
  0x5a   : > { %p5362_p1 = scmp.ne.s32.totalorder %s434_s24, %s5361_s20  ;;  %p5370_p7 = scmp.lt.s32.totalorder %s5361_s20, %s5361_s20 }
  0x5c   : > { %p5364_p2 = pnand %p5362_p1, %p5640_p0  ;;  %p5371_p8 = por %p5370_p7, %p5369_p4 }
  0x5e   : > { %p5365_p3 = pneg %p5364_p2 }
  0x60   : > { %p5372_p11 = pnand %p5371_p8, %p5365_p3 }
  0x62   : > { %5375 = shalt.err (!%p5372_p11)
}
  0x63   : > { %4975 = dma.hbm_to_vmem [thread:$0]  (!%p5626_p12), %s6471_s12, 4096, %s434_s24, [#allocation6], %s5484_s13, %s5484_s13, %s5485_s14  }
  0x64   : > { %p6503_p13 = scmp.ne.s32.totalorder %s6499_s25, 0 }
  0x65   : > { %p6504_p5 = scmp.eq.s32.totalorder (!%p6503_p13), %s5590_s17, 0 }
  0x66   : > { %457 = sbr.rel (%p6503_p13) target bundleno = 7871 (0x1ebf), region = 72 }
  0x6d   : > { %5449 = dma.done.wait (%p6504_p5), [#allocation3], 4096   ;;  %p6505_p0 = pmov %p6504_p5 }
  0x6f   : > { %5451 = vsyncadd (%p6505_p0), [#allocation3], 4294963200  ;;  %p6506_p6 = pmov %p6505_p0 }
  0x70   : > { %p6507_p9 = pmov %p6505_p0 }
  0x71   : > { %5453 = dma.done.wait (%p6506_p6), [#allocation6], 8192  }
  0x72   : > { %5455 = vsyncadd (%p6507_p9), [#allocation6], 4294959104  ;;  %v5487_v0 = vmov 0   ;;  %p515_p12 = scmp.lt.s32.totalorder %s5590_s17, 1  ;;  %v5034_v1 = vld [vmem:[%s6460_s1] sm:$0xff]   ;;  %v5035_v2 = vld [vmem:[%s6460_s1 + $0x8] sm:$0xff]   ;;  %v818_v55 = vlaneseq }
  0x73   : > { %626 = vmatprep.subr.bf16.mxu0 %v5487_v0  ;;  %v5036_v3 = vld [vmem:[%s6460_s1 + $0x10] sm:$0xff]   ;;  %v5037_v4 = vld [vmem:[%s6460_s1 + $0x18] sm:$0xff]   ;;  %v5038_v5 = vld [vmem:[%s6460_s1 + $0x20] sm:$0xff]   ;;  %vm622_vm0 = vcmask 523264   ;;  %vm668_vm1 = vcmask 520192   ;;  %v5488_v46 = vmov 0.0  }
  0x74   : > { %627 = vmatpush1.bf16.msra.mxu0 %v5034_v1  ;;  %s516_s13 = scalar_select %p515_p12, %s5590_s17, 1  ;;  %v5039_v8 = vld [vmem:[%s6460_s1 + $0x28] sm:$0xff]   ;;  %v5040_v9 = vld [vmem:[%s6460_s1 + $0x30] sm:$0xff]   ;;  %v5041_v10 = vld [vmem:[%s6460_s1 + $0x38] sm:$0xff]   ;;  %4700 = vmatprep.subr.bf16.mxu1 %v5488_v46  ;;  %vm5489_vm2 = vmmov 0   ;;  %v5821_v57 = vshrl.u32 %v818_v55, 7 }
  0x75   : > { %628 = vmatprep.subr.bf16.mxu0 %v5487_v0  ;;  %v5042_v11 = vld [vmem:[%s6460_s1 + $0x40] sm:$0xff]   ;;  %v5043_v12 = vld [vmem:[%s6460_s1 + $0x48] sm:$0xff]   ;;  %v5044_v13 = vld [vmem:[%s6460_s1 + $0x50] sm:$0xff]   ;;  %4708 = vmatprep.mubr.msk.bf16.mxu1 %vm5489_vm2, %v5488_v46  ;;  %vm1381_vm3 = vcmask 1041408   ;;  %vm1382_vm4 = vcmask 1042432   ;;  %vm1350_vm5 = vcmask 36864  }
  0x76   : > { %s4510_s24 = sshll.u32 %s516_s13, 4  ;;  %v5045_v14 = vld [vmem:[%s6460_s1 + $0x58] sm:$0xff]   ;;  %v549_v17 = vld [vmem:[%s6461_s2] sm:$0x1f]  ;;  %v4273_v33 = vld [vmem:[%s6461_s2 + $0x5] ss:$0 sm:$0xff] }
  0x77   : > { %s5724_s21 = scalar_lea.vmem %s6459_s0, %s4510_s24  ;;  %v4274_v35 = vld [vmem:[%s6461_s2 + $0x6] ss:$0 sm:$0xff]  ;;  %v5048_v47 = vld [vmem:[%s6462_s3 + $0x8] sm:$0xff]   ;;  %v5050_v49 = vld [vmem:[%s6462_s3 + $0x10] sm:$0xff]   ;;  %v820_v58 = vsub.s32 0, %v5821_v57  ;;  %v825_v60 = vsub.s32 1, %v5821_v57 }
  0x78   : > { %629 = vmatpush1.bf16.msra.mxu0 %v5035_v2  ;;  %v522_v6 = vld [vmem:[%s5724_s21 + $0x8] sm:$0x1f]  ;;  %v521_v15 = vld [vmem:[%s5724_s21] sm:$0x1f]  ;;  %v5051_v50 = vld [vmem:[%s6462_s3 + $0x70] sm:$0xff]   ;;  %vm1377_vm6 = vcmask 39936  }
  0x79   : > { %630 = vmatprep.subr.bf16.mxu0 %v5487_v0  ;;  %v548_v7 = vpack.c.bf16 %v522_v6, %v522_v6  ;;  %v547_v16 = vpack.c.bf16 %v521_v15, %v521_v15  ;;  %v5046_v44 = vld [vmem:[%s6462_s3] sm:$0xff]   ;;  %v5049_v48 = vld [vmem:[%s6462_s3 + $0x68] sm:$0xff]   ;;  %v5052_v51 = vld [vmem:[%s6462_s3 + $0x18] sm:$0xff]   ;;  %vm3282_vm7 = vcmask 1044480   ;;  %vm3202_vm8 = vcmask 32768   ;;  %s6380_s21 = sand.u32 1, %s5470_s30  }
  0x7a   : > { %v5047_v45 = vld [vmem:[%s6462_s3 + $0x60] sm:$0xff]   ;;  %4701 = vmatpush3.bf16.msra.mxu1 %v5046_v44  ;;  %v5053_v52 = vld [vmem:[%s6462_s3 + $0x78] sm:$0xff]   ;;  %v5064_v15 = vld [vmem:[%s6462_s3 + $0x50] sm:$0xff]   ;;  %s4257_s16 = sshll.u32 %s6380_s21, 2  ;;  %s6508_s11 = sld [smem:[#allocation20_spill]] }
  0x7b   : > { %4272 = vmatprep.mubr.msk.bf16.mxu0 %vm622_vm0, %v548_v7  ;;  %4702 = vmatprep.subr.bf16.mxu1 %v5488_v46  ;;  %v5827_v59 = vld [vmem:[%s6465_s6] sm:$0xff]  ;;  %v5056_v7 = vld [vmem:[%s6462_s3 + $0x28] sm:$0xff]   ;;  %s514_s23 = scalar_lea.vmem [#allocation9], %s4257_s16  ;;  %s4511_s25 = sshll.u32 %s5590_s17, 6 }
  0x7c   : > { %631 = vmatpush1.bf16.msra.mxu0 %v5036_v3  ;;  %v821_v61 = vrot.slane %v5827_v59, %v820_v58  ;;  %v826_v63 = vrot.slane %v5827_v59, %v825_v60  ;;  %s4129_s28 = sshll.u32 %s514_s23, 4  ;;  %s6509_s14 = sld [smem:[#allocation24_spill]]  ;;  %s4130_s28 = int_to_ptr.vmem [resolvable:$true] %s4129_s28 }
  0x7d   : > { %632 = vmatprep.subr.bf16.mxu0 %v5487_v0  ;;  %s4102_s24 = scalar_lea.sflag [#allocation10], %s6380_s21  ;;  %s5376_s29 = scalar_lea.vmem %s4130_s28, 64 }
  0x7e   : > { %4703 = vmatpush3.bf16.msra.mxu1 %v5048_v47  ;;  %p5377_p10 = scmp.ne.s32.totalorder %s4130_s28, %s5376_s29  ;;  %s5492_s15 = smov [#allocation9]  }
  0x7f   : > { %4704 = vmatprep.subr.bf16.mxu1 %v5488_v46  ;;  %s5380_s18 = sshll.u32 %s5492_s15, 4  ;;  %s5381_s18 = int_to_ptr.vmem [resolvable:$false] %s5380_s18 }
  0x80   : > { %633 = vmatpush1.bf16.msra.mxu0 %v5037_v4  ;;  %v5054_v4 = vld [vmem:[%s6462_s3 + $0x20] sm:$0xff]   ;;  %p6510_p1 = scmp.ne.s32.totalorder %s6508_s11, 0  ;;  %s5382_s22 = scalar_lea.vmem %s5381_s18, 128 }
  0x81   : > { %634 = vmatprep.subr.bf16.mxu0 %v5487_v0  ;;  %p5383_p4 = scmp.lt.s32.totalorder %s4130_s28, %s5381_s18  ;;  %p5384_p7 = scmp.lt.s32.totalorder %s5382_s22, %s5376_s29 }
  0x82   : > { %4705 = vmatpush3.bf16.msra.mxu1 %v5050_v49  ;;  %s6388_s19 = scalar_lea.hbm %s6509_s14, %s4511_s25  ;;  %p5378_p2 = pnand %p5377_p10, %p6510_p1 }
  0x83   : > { %4706 = vmatprep.subr.bf16.mxu1 %v5488_v46  ;;  %p5385_p8 = por %p5384_p7, %p5383_p4 }
  0x84   : > { %635 = vmatpush1.bf16.msra.mxu0 %v5038_v5  ;;  %v5055_v5 = vld [vmem:[%s6462_s3 + $0xa0] sm:$0xff]   ;;  %p5379_p3 = pneg %p5378_p2 }
  0x85   : > { %636 = vmatprep.subr.bf16.mxu0 %v5487_v0 }
  0x86   : > { %4707 = vmatpush3.bf16.msra.mxu1 %v5052_v51  ;;  %p5386_p11 = pnand %p5385_p8, %p5379_p3 }
  0x87   : > { %4712 = vmatprep.subr.bf16.mxu1 %v5488_v46 }
  0x88   : > { %637 = vmatpush1.bf16.msra.mxu0 %v5039_v8  ;;  %v5057_v8 = vld [vmem:[%s6462_s3 + $0xa8] sm:$0xff]  }
  0x89   : > { %638 = vmatprep.subr.bf16.mxu0 %v5487_v0 }
  0x8c   : > { %639 = vmatpush1.bf16.msra.mxu0 %v5040_v9  ;;  %v5058_v9 = vld [vmem:[%s6462_s3 + $0x30] sm:$0xff]  }
  0x8d   : > { %640 = vmatprep.subr.bf16.mxu0 %v5487_v0 }
  0x90   : > { %641 = vmatpush1.bf16.msra.mxu0 %v5041_v10  ;;  %v5059_v10 = vld [vmem:[%s6462_s3 + $0xb0] sm:$0xff]  }
  0x91   : > { %642 = vmatprep.subr.bf16.mxu0 %v5487_v0 }
  0x94   : > { %643 = vmatpush1.bf16.msra.mxu0 %v5042_v11  ;;  %v5060_v11 = vld [vmem:[%s6462_s3 + $0x38] sm:$0xff]  }
  0x95   : > { %644 = vmatprep.subr.bf16.mxu0 %v5487_v0 }
  0x98   : > { %645 = vmatpush1.bf16.msra.mxu0 %v5043_v12  ;;  %v5061_v12 = vld [vmem:[%s6462_s3 + $0xb8] sm:$0xff]  }
  0x99   : > { %646 = vmatprep.subr.bf16.mxu0 %v5487_v0 }
  0x9c   : > { %647 = vmatpush1.bf16.msra.mxu0 %v5044_v13  ;;  %v5062_v13 = vld [vmem:[%s6462_s3 + $0x40] sm:$0xff]  }
  0x9d   : > { %648 = vmatprep.subr.bf16.mxu0 %v5487_v0 }
  0xa0   : > { %649 = vmatpush1.bf16.msra.mxu0 %v5045_v14  ;;  %v5063_v14 = vld [vmem:[%s6462_s3 + $0x48] sm:$0xff]  }
  0xa1   : > { %4736 = vmatprep.subr.bf16.mxu0 %v5488_v46 }
  0xa3   : > { %659 = vmatmul.mubr.bf16.vlgmr.msra.gmra.mrb[0].mxu0 %v547_v16  ;;  %v5065_v16 = vld [vmem:[%s6462_s3 + $0x58] sm:$0xff]  }
  0xa4   : > { %4737 = vmatpush3.bf16.msra.mxu0 %v5047_v45  ;;  %4744 = vmatprep.mubr.msk.bf16.mxu0 %vm5489_vm2, %v5488_v46 }
  0xa5   : > { %4738 = vmatprep.subr.bf16.mxu0 %v5488_v46 }
  0xa8   : > { %4739 = vmatpush3.bf16.msra.mxu0 %v5049_v48 }
  0xa9   : > { %4740 = vmatprep.subr.bf16.mxu0 %v5488_v46 }
  0xac   : > { %4741 = vmatpush3.bf16.msra.mxu0 %v5051_v50 }
  0xad   : > { %4742 = vmatprep.subr.bf16.mxu0 %v5488_v46 }
  0xb0   : > { %4743 = vmatpush3.bf16.msra.mxu0 %v5053_v52  ;;  %v4276_v52 = vld [vmem:[%s6463_s4 + $0x1] ss:$0 sm:$0xff] }
  0xb1   : > { %4760 = vmatprep.subr.bf16.mxu0 %v5488_v46 }
 0x176   : > { %v660_v18 = vpop.f32.mrb[0].mxu0 }
 0x177   : > { %v661_v19 = vadd.f32 %v660_v18, %v549_v17  ;;  %v662_v20 = vpop.f32.mrb[1].mxu0  ;;  %v5066_v17 = vld [vmem:[%s6462_s3 + $0x80] sm:$0xff]   ;;  %v5067_v18 = vld [vmem:[%s6462_s3 + $0x88] sm:$0xff]  }
 0x178   : > { %v663_v21 = vpop.f32.mrb[2].mxu0  ;;  %v5069_v20 = vld [vmem:[%s6462_s3 + $0x98] sm:$0xff]  }
 0x179   : > { %v664_v22 = vpop.f32.mrb[3].mxu0  ;;  %v669_v23 = vsel %vm668_vm1, %v661_v19, 0.0 }
 0x17a   : > { %670 = vadd.xlane.f32.xlu0 %v669_v23 }
 0x207   : > { %v671_v24 = vpop.xlane.xlu0 %670 }
 0x208   : > { %v673_v25 = vmul.f32 0.015625, %v671_v24 }
 0x20a   : > { %v674_v26 = vsub.f32 %v661_v19, %v673_v25  ;;  %v5068_v19 = vld [vmem:[%s6462_s3 + $0x90] sm:$0xff]  }
 0x20c   : > { %v675_v27 = vmul.f32 %v674_v26, %v674_v26 }
 0x20e   : > { %v676_v28 = vsel %vm668_vm1, %v675_v27, 0.0 }
 0x20f   : > { %677 = vadd.xlane.f32.xlu0 %v676_v28 }
 0x29c   : > { %v678_v29 = vpop.xlane.xlu0 %677 }
 0x29d   : > { %v679_v30 = vmul.f32 0.015625, %v678_v29 }
 0x29f   : > { %v680_v31 = vadd.f32 1e-05, %v679_v30 }
 0x2a1   : > { %5246 = vrsqrt.f32 %v680_v31 }
 0x2ab   : > { %v5247_v32 = vpop.eup %5246 }
 0x2ac   : > { %v682_v34 = vmul.f32 %v5247_v32, %v674_v26 }
 0x2ae   : > { %v687_v36 = vmul.f32 %v4273_v33, %v682_v34 }
 0x2b0   : > { %v5776_v37 = vadd.f32 %v4274_v35, %v687_v36 }
 0x2b2   : > { %v805_v38 = vsel %vm668_vm1, %v5776_v37, 0.0 }
 0x2b3   : > { %806 = vadd.xlane.f32.xlu1 %v805_v38  ;;  %v4277_v38 = vld [vmem:[%s6463_s4 + $0x2] ss:$0 sm:$0xff] }
 0x340   : > { %v807_v39 = vpop.xlane.xlu1 %806 }
 0x341   : > { %v808_v40 = vmul.f32 0.015625, %v807_v39  ;;  %v4275_v39 = vld [vmem:[%s6463_s4] ss:$0 sm:$0xff] }
 0x343   : > { %v809_v41 = vsub.f32 %v5776_v37, %v808_v40 }
 0x345   : > { %v810_v42 = vmul.f32 %v809_v41, %v809_v41 }
 0x347   : > { %v811_v43 = vsel %vm668_vm1, %v810_v42, 0.0 }
 0x348   : > { %812 = vadd.xlane.f32.xlu1 %v811_v43  ;;  %v4278_v43 = vld [vmem:[%s6463_s4 + $0x3] ss:$0 sm:$0xff] }
 0x3d5   : > { %v813_v53 = vpop.xlane.xlu1 %812 }
 0x3d6   : > { %v814_v54 = vmul.f32 0.015625, %v813_v53 }
 0x3d8   : > { %v815_v56 = vadd.f32 1e-05, %v814_v54  ;;  %v4280_v54 = vld [vmem:[%s6463_s4 + $0x5] ss:$0 sm:$0xff] }
 0x3da   : > { %5248 = vrsqrt.f32 %v815_v56 }
 0x3e4   : > { %v5249_v62 = vpop.eup %5248 }
 0x3e5   : > { %v817_v1 = vmul.f32 %v5249_v62, %v809_v41 }
 0x3e7   : > { %v822_v2 = vmul.f32 %v821_v61, %v817_v1  ;;  %v5490_v1 = vmov 65535  }
 0x3e9   : > { %v827_v3 = vadd.f32 %v826_v63, %v822_v2  ;;  %v1383_v2 = vsel %vm1381_vm3, 4294967295, %v5490_v1 }
 0x3eb   : > { %v828_v6 = vpack.c.bf16 %v827_v3, %v827_v3  ;;  %v4279_v3 = vld [vmem:[%s6463_s4 + $0x4] ss:$0 sm:$0xff] }
 0x3ed   : > { %4709 = vmatmul.mubr.msk.bf16.vlgmr.msra.gmra.mrb[0].mxu1 %vm622_vm0, %v828_v6  ;;  %4745 = vmatmul.mubr.msk.bf16.vlgmr.msra.gmra.mrb[4].mxu0 %vm622_vm0, %v828_v6 }
 0x3ee   : > { %4713 = vmatpush3.bf16.msra.mxu1 %v5054_v4  ;;  %4761 = vmatpush3.bf16.msra.mxu0 %v5055_v5 }
 0x3ef   : > { %4714 = vmatprep.subr.bf16.mxu1 %v5488_v46  ;;  %4762 = vmatprep.subr.bf16.mxu0 %v5488_v46 }
 0x3f0   : > { %4720 = vmatprep.mubr.msk.bf16.mxu1 %vm5489_vm2, %v5488_v46  ;;  %4768 = vmatprep.mubr.msk.bf16.mxu0 %vm5489_vm2, %v5488_v46 }
 0x3f2   : > { %4715 = vmatpush3.bf16.msra.mxu1 %v5056_v7  ;;  %4763 = vmatpush3.bf16.msra.mxu0 %v5057_v8  ;;  %v5943_v7 = vsel %vm1382_vm4, %v1383_v2, 0  ;;  %vm1897_vm4 = vcmask 516096  }
 0x3f3   : > { %4716 = vmatprep.subr.bf16.mxu1 %v5488_v46  ;;  %4764 = vmatprep.subr.bf16.mxu0 %v5488_v46 }
 0x3f6   : > { %4717 = vmatpush3.bf16.msra.mxu1 %v5058_v9  ;;  %4765 = vmatpush3.bf16.msra.mxu0 %v5059_v10 }
 0x3f7   : > { %4718 = vmatprep.subr.bf16.mxu1 %v5488_v46  ;;  %4766 = vmatprep.subr.bf16.mxu0 %v5488_v46 }
 0x3fa   : > { %4719 = vmatpush3.bf16.msra.mxu1 %v5060_v11  ;;  %4767 = vmatpush3.bf16.msra.mxu0 %v5061_v12 }
 0x3fb   : > { %4724 = vmatprep.subr.bf16.mxu1 %v5488_v46  ;;  %4784 = vmatprep.subr.bf16.mxu0 %v5488_v46 }
 0x3fd   : > { %4721 = vmatmul.mubr.msk.bf16.vlgmr.msra.gmra.mrb[4].mxu1 %vm622_vm0, %v828_v6  ;;  %4769 = vmatmul.mubr.msk.bf16.vlgmr.msra.gmra.mrb[8].mxu0 %vm622_vm0, %v828_v6 }
 0x3fe   : > { %4725 = vmatpush3.bf16.msra.mxu1 %v5062_v13  ;;  %4732 = vmatprep.mubr.msk.bf16.mxu1 %vm5489_vm2, %v5488_v46 }
 0x3ff   : > { %4726 = vmatprep.subr.bf16.mxu1 %v5488_v46  ;;  %4786 = vmatprep.mubr.msk.bf16.mxu0 %vm5489_vm2, %v5488_v46 }
 0x402   : > { %4727 = vmatpush3.bf16.msra.mxu1 %v5063_v14 }
 0x403   : > { %4728 = vmatprep.subr.bf16.mxu1 %v5488_v46 }
 0x406   : > { %4729 = vmatpush3.bf16.msra.mxu1 %v5064_v15 }
 0x407   : > { %4730 = vmatprep.subr.bf16.mxu1 %v5488_v46 }
 0x40a   : > { %4731 = vmatpush3.bf16.msra.mxu1 %v5065_v16 }
 0x40b   : > { %4748 = vmatprep.subr.bf16.mxu1 %v5488_v46 }
 0x40d   : > { %4733 = vmatmul.mubr.msk.bf16.vlgmr.msra.gmra.mrb[8].mxu1 %vm622_vm0, %v828_v6 }
 0x40e   : > { %4749 = vmatpush3.bf16.msra.mxu1 %v5066_v17  ;;  %4756 = vmatprep.mubr.msk.bf16.mxu1 %vm5489_vm2, %v5488_v46 }
 0x40f   : > { %4750 = vmatprep.subr.bf16.mxu1 %v5488_v46 }
 0x412   : > { %4751 = vmatpush3.bf16.msra.mxu1 %v5067_v18 }
 0x413   : > { %4752 = vmatprep.subr.bf16.mxu1 %v5488_v46 }
 0x416   : > { %4753 = vmatpush3.bf16.msra.mxu1 %v5068_v19 }
 0x417   : > { %4754 = vmatprep.subr.bf16.mxu1 %v5488_v46 }
 0x41a   : > { %4755 = vmatpush3.bf16.msra.mxu1 %v5069_v20 }
 0x41b   : > { %4772 = vmatprep.subr.bf16.mxu1 %v5488_v46 }
 0x41d   : > { %4757 = vmatmul.mubr.msk.bf16.vlgmr.msra.gmra.mrb[12].mxu1 %vm622_vm0, %v828_v6 }
 0x41e   : > { %4774 = vmatprep.mubr.msk.bf16.mxu1 %vm5489_vm2, %v5488_v46 }
 0x4c0   : > { %v926_v21 = vpop.f32.mrb[0].mxu1  ;;  %v1118_v22 = vpop.f32.mrb[4].mxu0 }
 0x4c1   : > { %v4710_v23 = vpop.f32.mrb[1].mxu1  ;;  %v4746_v24 = vpop.f32.mrb[5].mxu0  ;;  %v927_v45 = vadd.f32 %v4275_v39, %v926_v21  ;;  %v1119_v49 = vadd.f32 %v4278_v43, %v1118_v22  ;;  %v5071_v43 = vld [vmem:[%s6462_s3 + $0xc8] sm:$0xff]  }
 0x4c2   : > { %v929_v25 = vpop.f32.mrb[2].mxu1  ;;  %v1121_v26 = vpop.f32.mrb[6].mxu0 }
 0x4c3   : > { %v4711_v27 = vpop.f32.mrb[3].mxu1  ;;  %v4747_v28 = vpop.f32.mrb[7].mxu0  ;;  %v1252_v51 = vmul.f32 0.17677669, %v927_v45  ;;  %v1257_v53 = vpack.c.bf16 %v1119_v49, %v1119_v49 }
 0x4c5   : > { %v1254_v56 = vpack.c.bf16 %v1252_v51, %v1252_v51  ;;  %v1308_v63 = vsel %vm622_vm0, %v1257_v53, 0  ;;  %v5075_v51 = vld [vmem:[%s6462_s3 + $0xe8] sm:$0xff]   ;;  %v5077_v53 = vld [vmem:[%s6462_s3 + $0xf8] sm:$0xff]  }
 0x4d0   : > { %v990_v29 = vpop.f32.mrb[4].mxu1  ;;  %v1246_v30 = vpop.f32.mrb[8].mxu0 }
 0x4d1   : > { %v4722_v31 = vpop.f32.mrb[5].mxu1  ;;  %v4770_v32 = vpop.f32.mrb[9].mxu0  ;;  %v991_v61 = vadd.f32 %v4276_v52, %v990_v29  ;;  %v1247_v62 = vadd.f32 %v4280_v54, %v1246_v30  ;;  %v5076_v52 = vld [vmem:[%s6462_s3 + $0xf0] sm:$0xff]  }
 0x4d2   : > { %v993_v33 = vpop.f32.mrb[6].mxu1  ;;  %v1249_v34 = vpop.f32.mrb[10].mxu0 }
 0x4d3   : > { %v4723_v35 = vpop.f32.mrb[7].mxu1  ;;  %v4771_v36 = vpop.f32.mrb[11].mxu0  ;;  %v1253_v4 = vmul.f32 0.17677669, %v991_v61  ;;  %v1376_v5 = vpack.c.bf16 %v1247_v62, %v1247_v62 }
 0x4d5   : > { %v1255_v11 = vpack.c.bf16 %v1253_v4, %v1253_v4  ;;  %v1432_v14 = vand.u32 %v5943_v7, %v1376_v5 }
 0x4e0   : > { %v1054_v40 = vpop.f32.mrb[8].mxu1 }
 0x4e1   : > { %v1055_v41 = vadd.f32 %v4277_v38, %v1054_v40  ;;  %v4734_v42 = vpop.f32.mrb[9].mxu1 }
 0x4e2   : > { %v1057_v44 = vpop.f32.mrb[10].mxu1 }
 0x4e3   : > { %v1256_v47 = vpack.c.bf16 %v1055_v41, %v1055_v41  ;;  %v4735_v48 = vpop.f32.mrb[11].mxu1  ;;  %v5070_v41 = vld [vmem:[%s6462_s3 + $0xc0] sm:$0xff]  }
 0x4e4   : > { %v5073_v48 = vld [vmem:[%s6462_s3 + $0xe0] sm:$0xff]  }
 0x4e5   : > { %v1262_v50 = vsel %vm622_vm0, %v1256_v47, 0  ;;  %v5072_v47 = vld [vmem:[%s6462_s3 + $0xd0] sm:$0xff]  }
 0x4e6   : > { %4773 = vmatpush3.bf16.xpose.msra.mxu1 %v1262_v50  ;;  %v5074_v50 = vld [vmem:[%s6462_s3 + $0xd8] sm:$0xff]  }
 0x4e7   : > { %4778 = vmatprep.subr.bf16.mxu1 %v5488_v46 }
 0x4ed   : > { %4775 = vmatmul.mubr.msk.bf16.vlgmr.msra.gmra.mrb[16].mxu1 %vm622_vm0, %v1254_v56 }
 0x4ee   : > { %4779 = vmatpush3.bf16.xpose.msra.mxu1 %v1308_v63  ;;  %4780 = vmatprep.mubr.msk.bf16.mxu1 %vm5489_vm2, %v5488_v46 }
 0x4ef   : > { %4790 = vmatprep.subr.bf16.mxu1 %v5488_v46 }
 0x4f0   : > { %v1182_v6 = vpop.f32.mrb[12].mxu1 }
 0x4f1   : > { %v1183_v8 = vadd.f32 %v4279_v3, %v1182_v6  ;;  %v4758_v9 = vpop.f32.mrb[13].mxu1 }
 0x4f2   : > { %v1185_v10 = vpop.f32.mrb[14].mxu1 }
 0x4f3   : > { %v1375_v12 = vpack.c.bf16 %v1183_v8, %v1183_v8  ;;  %v4759_v13 = vpop.f32.mrb[15].mxu1 }
 0x4f5   : > { %v1386_v15 = vand.u32 %v5943_v7, %v1375_v12  ;;  %4781 = vmatmul.mubr.msk.bf16.vlgmr.msra.gmra.mrb[20].mxu1 %vm622_vm0, %v1255_v11  ;;  %v1616_v11 = vsub.s32 2, %v5821_v57 }
 0x4f6   : > { %4791 = vmatpush3.bf16.msra.mxu1 %v1432_v14  ;;  %4792 = vmatprep.mubr.msk.bf16.mxu1 %vm5489_vm2, %v5488_v46 }
 0x4f7   : > { %4785 = vmatpush3.bf16.msra.mxu0 %v1386_v15  ;;  %4808 = vmatprep.subr.bf16.mxu1 %v5488_v46 }
 0x4f8   : > { %4796 = vmatprep.subr.bf16.mxu0 %v5488_v46 }
 0x5c0   : > { %v1298_v16 = vpop.f32.mrb[16].mxu1 }
 0x5c1   : > { %v4776_v17 = vpop.f32.mrb[17].mxu1  ;;  %v1351_v18 = vsel %vm1350_vm5, %v1298_v16, -inf }
 0x5c2   : > { %1352 = vmax.xlane.f32.xlu0 %v1351_v18  ;;  %v1301_v19 = vpop.f32.mrb[18].mxu1  ;;  %v1617_v18 = vrot.slane %v5827_v59, %v1616_v11 }
 0x5c3   : > { %v4777_v20 = vpop.f32.mrb[19].mxu1 }
 0x5c8   : > { %v1344_v21 = vpop.f32.mrb[20].mxu1 }
 0x5c9   : > { %v4782_v22 = vpop.f32.mrb[21].mxu1  ;;  %v1354_v23 = vsel %vm1350_vm5, %v1344_v21, -inf }
 0x5ca   : > { %1355 = vmax.xlane.f32.xlu1 %v1354_v23  ;;  %v1347_v24 = vpop.f32.mrb[22].mxu1 }
 0x5cb   : > { %v4783_v25 = vpop.f32.mrb[23].mxu1 }
 0x64f   : > { %v1353_v26 = vpop.xlane.xlu0 %1352 }
 0x650   : > { %v1357_v27 = vsub.f32 %v1298_v16, %v1353_v26 }
 0x652   : > { %v1359_v28 = vmul.f32 1.442695, %v1357_v27 }
 0x654   : > { %5250 = vpow2.f32 %v1359_v28  ;;  %v5080_v28 = vld [vmem:[%s6464_s5 + $0x4] ss:$8 sps:$4 sm:$0xff]  }
 0x657   : > { %v1356_v29 = vpop.xlane.xlu1 %1355 }
 0x658   : > { %v1358_v30 = vsub.f32 %v1344_v21, %v1356_v29  ;;  %v5083_v29 = vld [vmem:[%s6464_s5 + $0x14] ss:$8 sps:$4 sm:$0xff]  }
 0x65a   : > { %v1361_v31 = vmul.f32 1.442695, %v1358_v30  ;;  %v5081_v30 = vld [vmem:[%s6464_s5 + $0x10] ss:$8 sps:$4 sm:$0xff]  }
 0x65c   : > { %5252 = vpow2.f32 %v1361_v31  ;;  %v5086_v31 = vld [vmem:[%s6464_s5 + $0x24] ss:$8 sps:$4 sm:$0xff]  }
 0x65e   : > { %v5251_v32 = vpop.eup %5250 }
 0x65f   : > { %v1363_v33 = vsel %vm1350_vm5, %v5251_v32, 0.0 }
 0x660   : > { %1364 = vadd.xlane.f32.xlu0 %v1363_v33  ;;  %v5089_v33 = vld [vmem:[%s6464_s5 + $0x34] ss:$8 sps:$4 sm:$0xff]  }
 0x666   : > { %v5253_v34 = vpop.eup %5252 }
 0x667   : > { %v1366_v35 = vsel %vm1350_vm5, %v5253_v34, 0.0 }
 0x668   : > { %1367 = vadd.xlane.f32.xlu1 %v1366_v35 }
 0x6ed   : > { %v1365_v36 = vpop.xlane.xlu0 %1364 }
 0x6ee   : > { %5254 = vrcp.f32 %v1365_v36 }
 0x6f5   : > { %v1368_v38 = vpop.xlane.xlu1 %1367 }
 0x6f6   : > { %5256 = vrcp.f32 %v1368_v38 }
 0x6f8   : > { %v5255_v39 = vpop.eup %5254 }
 0x6f9   : > { %v1370_v40 = vmul.f32 %v5255_v39, %v5251_v32  ;;  %v5084_v32 = vld [vmem:[%s6464_s5 + $0x20] ss:$8 sps:$4 sm:$0xff]   ;;  %v1634_v39 = vsub.s32 3, %v5821_v57 }
 0x6fb   : > { %v1373_v42 = vpack.c.bf16 %v1370_v40, %v1370_v40  ;;  %v1639_v40 = vsub.s32 4, %v5821_v57 }
 0x6fd   : > { %4787 = vmatmul.mubr.msk.bf16.vlgmr.msra.gmra.mrb[12].mxu0 %vm1377_vm6, %v1373_v42 }
 0x6fe   : > { %4797 = vmatpush3.bf16.msra.mxu0 %v5070_v41  ;;  %4804 = vmatprep.mubr.msk.bf16.mxu0 %vm5489_vm2, %v5488_v46  ;;  %v1635_v41 = vrot.slane %v5827_v59, %v1634_v39 }
 0x6ff   : > { %4798 = vmatprep.subr.bf16.mxu0 %v5488_v46 }
 0x700   : > { %v5257_v44 = vpop.eup %5256 }
 0x701   : > { %v1372_v45 = vmul.f32 %v5257_v44, %v5253_v34  ;;  %v5087_v34 = vld [vmem:[%s6464_s5 + $0x30] ss:$8 sps:$4 sm:$0xff]   ;;  %v1640_v44 = vrot.slane %v5827_v59, %v1639_v40 }
 0x702   : > { %4799 = vmatpush3.bf16.msra.mxu0 %v5071_v43 }
 0x703   : > { %v1374_v49 = vpack.c.bf16 %v1372_v45, %v1372_v45  ;;  %4800 = vmatprep.subr.bf16.mxu0 %v5488_v46 }
 0x705   : > { %4793 = vmatmul.mubr.msk.bf16.vlgmr.msra.gmra.mrb[24].mxu1 %vm1377_vm6, %v1374_v49  ;;  %v5090_v49 = vld [vmem:[%s6464_s5 + $0xc0] ss:$8 sps:$4 sm:$0xff]  }
 0x706   : > { %4801 = vmatpush3.bf16.msra.mxu0 %v5072_v47  ;;  %4809 = vmatpush3.bf16.msra.mxu1 %v5073_v48 }
 0x707   : > { %4802 = vmatprep.subr.bf16.mxu0 %v5488_v46  ;;  %4810 = vmatprep.subr.bf16.mxu1 %v5488_v46 }
 0x708   : > { %4816 = vmatprep.mubr.msk.bf16.mxu1 %vm5489_vm2, %v5488_v46 }
 0x70a   : > { %4803 = vmatpush3.bf16.msra.mxu0 %v5074_v50  ;;  %4811 = vmatpush3.bf16.msra.mxu1 %v5075_v51  ;;  %v5091_v50 = vld [vmem:[%s6464_s5 + $0x40] ss:$8 sps:$4 sm:$0xff]   ;;  %v5092_v51 = vld [vmem:[%s6464_s5 + $0xd0] ss:$8 sps:$4 sm:$0xff]  }
 0x70b   : > { %4812 = vmatprep.subr.bf16.mxu1 %v5488_v46  ;;  %1694 = vmatprep.subr.bf16.mxu0 %v5080_v28 }
 0x70e   : > { %4813 = vmatpush3.bf16.msra.mxu1 %v5076_v52  ;;  %v5093_v52 = vld [vmem:[%s6464_s5 + $0x50] ss:$8 sps:$4 sm:$0xff]  }
 0x70f   : > { %4814 = vmatprep.subr.bf16.mxu1 %v5488_v46 }
 0x712   : > { %4815 = vmatpush3.bf16.msra.mxu1 %v5077_v53  ;;  %v5094_v53 = vld [vmem:[%s6464_s5 + $0xe0] ss:$8 sps:$4 sm:$0xff]  }
 0x713   : > { %4560 = vmatprep.subr.bf16.mxu1 %v5090_v49 }
 0x7d0   : > { %v1422_v54 = vpop.f32.mrb[12].mxu0 }
 0x7d1   : > { %v1474_v56 = vpack.c.bf16 %v1422_v54, %v1422_v54  ;;  %v4788_v61 = vpop.f32.mrb[13].mxu0  ;;  %v5095_v54 = vld [vmem:[%s6464_s5 + $0x60] ss:$8 sps:$4 sm:$0xff]  }
 0x7d2   : > { %v1425_v62 = vpop.f32.mrb[14].mxu0  ;;  %v5097_v61 = vld [vmem:[%s6464_s5 + $0x70] ss:$8 sps:$4 sm:$0xff]  }
 0x7d3   : > { %v4789_v63 = vpop.f32.mrb[15].mxu0  ;;  %4805 = vmatmul.mubr.msk.bf16.vlgmr.msra.gmra.mrb[16].mxu0 %vm622_vm0, %v1474_v56  ;;  %v5096_v56 = vld [vmem:[%s6464_s5 + $0xf0] ss:$8 sps:$4 sm:$0xff]   ;;  %v5098_v62 = vld [vmem:[%s6464_s5 + $0x100] ss:$8 sps:$4 sm:$0xff]  }
 0x7d4   : > { %1726 = vmatprep.mubr.bf16.mxu0 %v5487_v0  ;;  %v5099_v63 = vld [vmem:[%s6464_s5 + $0x80] ss:$8 sps:$4 sm:$0xff]  }
 0x7d8   : > { %v1468_v1 = vpop.f32.mrb[24].mxu1 }
 0x7d9   : > { %v1475_v2 = vpack.c.bf16 %v1468_v1, %v1468_v1  ;;  %v4794_v3 = vpop.f32.mrb[25].mxu1  ;;  %v5100_v1 = vld [vmem:[%s6464_s5 + $0x110] ss:$8 sps:$4 sm:$0xff]  }
 0x7da   : > { %v1471_v4 = vpop.f32.mrb[26].mxu1  ;;  %v5102_v3 = vld [vmem:[%s6464_s5 + $0x120] ss:$8 sps:$4 sm:$0xff]  }
 0x7db   : > { %v4795_v5 = vpop.f32.mrb[27].mxu1  ;;  %4817 = vmatmul.mubr.msk.bf16.vlgmr.msra.gmra.mrb[28].mxu1 %vm622_vm0, %v1475_v2  ;;  %v5101_v2 = vld [vmem:[%s6464_s5 + $0x90] ss:$8 sps:$4 sm:$0xff]   ;;  %v5103_v4 = vld [vmem:[%s6464_s5 + $0xa0] ss:$8 sps:$4 sm:$0xff]  }
 0x7dc   : > { %4561 = vmatpush3.bf16.msra.mxu1 %v5091_v50  ;;  %v5104_v5 = vld [vmem:[%s6464_s5 + $0x130] ss:$8 sps:$4 sm:$0xff]  }
 0x7dd   : > { %4562 = vmatprep.subr.bf16.mxu1 %v5092_v51 }
 0x7e0   : > { %4563 = vmatpush3.bf16.msra.mxu1 %v5093_v52  ;;  %v5106_v52 = vld [vmem:[#allocation2] sm:$0xff]  }
 0x7e1   : > { %4564 = vmatprep.subr.bf16.mxu1 %v5094_v53  ;;  %v5109_v53 = vld [vmem:[#allocation2 + $0x48] sm:$0xff]  }
 0x7e4   : > { %4565 = vmatpush3.bf16.msra.mxu1 %v5095_v54  ;;  %v5110_v54 = vld [vmem:[#allocation2 + $0x10] sm:$0xff]  }
 0x7e5   : > { %4566 = vmatprep.subr.bf16.mxu1 %v5096_v56  ;;  %v5111_v56 = vld [vmem:[#allocation2 + $0x50] sm:$0xff]  }
 0x7e8   : > { %4567 = vmatpush3.bf16.msra.mxu1 %v5097_v61  ;;  %v5112_v61 = vld [vmem:[#allocation2 + $0x18] sm:$0xff]  }
 0x7e9   : > { %4568 = vmatprep.subr.bf16.mxu1 %v5098_v62  ;;  %v5113_v62 = vld [vmem:[#allocation2 + $0x58] sm:$0xff]  }
 0x7ec   : > { %4569 = vmatpush3.bf16.msra.mxu1 %v5099_v63 }
 0x7ed   : > { %4570 = vmatprep.subr.bf16.mxu1 %v5100_v1 }
 0x7f0   : > { %4571 = vmatpush3.bf16.msra.mxu1 %v5101_v2 }
 0x7f1   : > { %4572 = vmatprep.subr.bf16.mxu1 %v5102_v3  ;;  %v6126_v3 = vld [vmem:[%s6469_s10] sm:$0xff] }
 0x7f4   : > { %4573 = vmatpush3.bf16.msra.mxu1 %v5103_v4  ;;  %v2058_v4 = vrot.slane %v6126_v3, %v820_v58  ;;  %v5118_v58 = vld [vmem:[#allocation2 + $0x30] sm:$0xff]  }
 0x7f5   : > { %4574 = vmatprep.subr.bf16.mxu1 %v5104_v5 }
 0x8a6   : > { %v1537_v6 = vpop.f32.mrb[16].mxu0 }
 0x8a7   : > { %v4806_v8 = vpop.f32.mrb[17].mxu0  ;;  %v1610_v13 = vsel %vm668_vm1, %v1537_v6, 0.0  ;;  %v5105_v6 = vld [vmem:[%s6464_s5 + $0xb0] ss:$8 sps:$4 sm:$0xff]  }
 0x8a8   : > { %v1540_v9 = vpop.f32.mrb[18].mxu0  ;;  %4575 = vmatpush3.bf16.msra.mxu1 %v5105_v6  ;;  %v6094_v8 = vsub.s32 5, %v5821_v57  ;;  %v2063_v6 = vrot.slane %v6126_v3, %v825_v60  ;;  %v5119_v60 = vld [vmem:[#allocation2 + $0x90] sm:$0xff]  }
 0x8a9   : > { %v4807_v10 = vpop.f32.mrb[19].mxu0  ;;  %4844 = vmatprep.subr.bf16.mxu1 %v5488_v46  ;;  %v804_v9 = vld [vmem:[%s6465_s6 + $0x8] sm:$0xff] }
 0x8aa   : > { %v1646_v10 = vrot.slane %v5827_v59, %v6094_v8 }
 0x8ae   : > { %v1604_v12 = vpop.f32.mrb[28].mxu1 }
 0x8af   : > { %v1611_v14 = vsel %vm668_vm1, %v1604_v12, 0.0  ;;  %v4818_v15 = vpop.f32.mrb[29].mxu1  ;;  %v1650_v12 = vrot.slane %v804_v9, %v6094_v8 }
 0x8b0   : > { %v1612_v16 = vadd.f32 %v1611_v14, %v1610_v13  ;;  %v1607_v17 = vpop.f32.mrb[30].mxu1 }
 0x8b1   : > { %v4819_v19 = vpop.f32.mrb[31].mxu1 }
 0x8b2   : > { %v1613_v20 = vadd.f32 %v1612_v16, %v5776_v37  ;;  %v5078_v37 = vld [vmem:[%s6464_s5] ss:$8 sps:$4 sm:$0xff]  }
 0x8b3   : > { %1695 = vmatpush1.bf16.msra.mxu0 %v5078_v37 }
 0x8b4   : > { %v6002_v21 = vadd.f32 %v1617_v18, %v1613_v20  ;;  %1696 = vmatprep.subr.bf16.mxu0 %v5083_v29 }
 0x8b6   : > { %v1619_v22 = vsel %vm668_vm1, %v6002_v21, 0.0 }
 0x8b7   : > { %1620 = vadd.xlane.f32.xlu0 %v1619_v22  ;;  %1697 = vmatpush1.bf16.msra.mxu0 %v5081_v30 }
 0x8b8   : > { %1698 = vmatprep.subr.bf16.mxu0 %v5086_v31 }
 0x8bb   : > { %1699 = vmatpush1.bf16.msra.mxu0 %v5084_v32 }
 0x8bc   : > { %1700 = vmatprep.subr.bf16.mxu0 %v5089_v33  ;;  %v1892_v33 = vsub.s32 6, %v5821_v57 }
 0x8bf   : > { %1701 = vmatpush1.bf16.msra.mxu0 %v5087_v34 }
 0x8c0   : > { %4820 = vmatprep.subr.bf16.mxu0 %v5488_v46 }
 0x944   : > { %v1621_v23 = vpop.xlane.xlu0 %1620 }
 0x945   : > { %v1622_v24 = vmul.f32 0.015625, %v1621_v23 }
 0x947   : > { %v1623_v25 = vsub.f32 %v6002_v21, %v1622_v24 }
 0x949   : > { %v1624_v26 = vmul.f32 %v1623_v25, %v1623_v25 }
 0x94b   : > { %v1625_v27 = vsel %vm668_vm1, %v1624_v26, 0.0 }
 0x94c   : > { %1626 = vadd.xlane.f32.xlu1 %v1625_v27 }
 0x9d9   : > { %v1627_v35 = vpop.xlane.xlu1 %1626 }
 0x9da   : > { %v1628_v36 = vmul.f32 0.015625, %v1627_v35 }
 0x9dc   : > { %v1629_v38 = vadd.f32 1e-05, %v1628_v36 }
 0x9de   : > { %5258 = vrsqrt.f32 %v1629_v38  ;;  %v1893_v38 = vrot.slane %v5827_v59, %v1892_v33  ;;  %v5107_v59 = vld [vmem:[#allocation2 + $0x40] sm:$0xff]  }
 0x9e8   : > { %v5259_v42 = vpop.eup %5258 }
 0x9e9   : > { %v1631_v43 = vmul.f32 %v5259_v42, %v1623_v25 }
 0x9eb   : > { %v1636_v45 = vmul.f32 %v1635_v41, %v1631_v43 }
 0x9ed   : > { %v1641_v47 = vadd.f32 %v1640_v44, %v1636_v45 }
 0x9ef   : > { %v1642_v48 = vpack.c.bf16 %v1641_v47, %v1641_v47 }
 0x9f1   : > { %4333 = vmatmul.mubr.msk.bf16.vlgmr.msra.gmra.mrb[20].mxu0 %vm622_vm0, %v1642_v48 }
 0x9f2   : > { %4828 = vmatprep.mubr.msk.bf16.mxu0 %vm5489_vm2, %v5488_v46  ;;  %4821 = vmatpush3.bf16.msra.mxu0 %v5106_v52 }
 0x9f3   : > { %4822 = vmatprep.subr.bf16.mxu0 %v5488_v46 }
 0xac4   : > { %v1728_v13 = vpop.f32.mrb[20].mxu0 }
 0xac5   : > { %v1729_v14 = vadd.f32 %v1728_v13, %v1646_v10  ;;  %v1730_v15 = vpop.f32.mrb[21].mxu0  ;;  %v5114_v13 = vld [vmem:[#allocation2 + $0x20] sm:$0xff]  }
 0xac6   : > { %v1731_v16 = vadd.f32 %v1730_v15, %v1650_v12  ;;  %v1732_v17 = vpop.f32.mrb[22].mxu0 }
 0xac7   : > { %v4334_v18 = vmul.f32 -1.702, %v1729_v14  ;;  %v1733_v19 = vpop.f32.mrb[23].mxu0  ;;  %v5117_v17 = vld [vmem:[#allocation2 + $0x88] sm:$0xff]  }
 0xac8   : > { %v4335_v20 = vmul.f32 -1.702, %v1731_v16  ;;  %v5121_v19 = vld [vmem:[#allocation2 + $0x98] sm:$0xff]  }
 0xac9   : > { %v1739_v22 = vmul.f32 1.442695, %v4334_v18  ;;  %v5120_v18 = vld [vmem:[#allocation2 + $0x38] sm:$0xff]  }
 0xaca   : > { %v1741_v23 = vmul.f32 1.442695, %v4335_v20  ;;  %v5122_v20 = vld [vmem:[#allocation2 + $0x60] sm:$0xff]  }
 0xacb   : > { %5260 = vpow2.f32 %v1739_v22  ;;  %v5123_v22 = vld [vmem:[#allocation2 + $0x68] sm:$0xff]  }
 0xacc   : > { %5262 = vpow2.f32 %v1741_v23  ;;  %v5124_v23 = vld [vmem:[#allocation2 + $0x70] sm:$0xff]  }
 0xad5   : > { %v5261_v24 = vpop.eup %5260 }
 0xad6   : > { %v5263_v25 = vpop.eup %5262  ;;  %v1743_v26 = vadd.f32 1.0, %v5261_v24  ;;  %v5125_v24 = vld [vmem:[#allocation2 + $0x78] sm:$0xff]  }
 0xad7   : > { %v1744_v27 = vadd.f32 1.0, %v5263_v25  ;;  %v5126_v25 = vld [vmem:[#allocation2 + $0xa0] sm:$0xff]  }
 0xad8   : > { %5264 = vrcp.f32 %v1743_v26  ;;  %v5127_v26 = vld [vmem:[#allocation2 + $0xa8] sm:$0xff]  }
 0xad9   : > { %5266 = vrcp.f32 %v1744_v27  ;;  %v5128_v27 = vld [vmem:[#allocation2 + $0xb0] sm:$0xff]  }
 0xae2   : > { %v5265_v28 = vpop.eup %5264 }
 0xae3   : > { %v5267_v37 = vpop.eup %5266  ;;  %v1749_v29 = vmul.f32 %v5265_v28, %v1729_v14  ;;  %v5115_v14 = vld [vmem:[#allocation2 + $0x80] sm:$0xff]   ;;  %v5129_v28 = vld [vmem:[#allocation2 + $0xb8] sm:$0xff]  }
 0xae4   : > { %v1750_v30 = vmul.f32 %v5267_v37, %v1731_v16  ;;  %v5116_v16 = vld [vmem:[#allocation2 + $0x28] sm:$0xff]   ;;  %v4354_v37 = vld [vmem:[%s6467_s8 + $0x2] ss:$0 sm:$0xff] }
 0xae5   : > { %v1751_v32 = vpack.c.bf16 %v1749_v29, %v1749_v29  ;;  %v4352_v29 = vld [vmem:[%s6467_s8] ss:$0 sm:$0xff] }
 0xae6   : > { %v1752_v31 = vpack.c.bf16 %v1750_v30, %v1750_v30 }
 0xae8   : > { %1881 = vmatprep.mubr.bf16.mxu1 %v1752_v31 }
 0xae9   : > { %1882 = vmatmul.mubr.bf16.vlgmr.msra.gmra.mrb[32].mxu1 %v1751_v32 }
 0xaea   : > { %4852 = vmatprep.mubr.msk.bf16.mxu1 %vm5489_vm2, %v5488_v46  ;;  %4845 = vmatpush3.bf16.msra.mxu1 %v5107_v59 }
 0xaeb   : > { %4846 = vmatprep.subr.bf16.mxu1 %v5488_v46 }
 0xaee   : > { %4847 = vmatpush3.bf16.msra.mxu1 %v5109_v53 }
 0xaef   : > { %4848 = vmatprep.subr.bf16.mxu1 %v5488_v46 }
 0xaf2   : > { %4849 = vmatpush3.bf16.msra.mxu1 %v5111_v56 }
 0xaf3   : > { %4850 = vmatprep.subr.bf16.mxu1 %v5488_v46 }
 0xaf6   : > { %4851 = vmatpush3.bf16.msra.mxu1 %v5113_v62 }
 0xaf7   : > { %4868 = vmatprep.subr.bf16.mxu1 %v5488_v46 }
 0xbbc   : > { %v4576_v34 = vpop.f32.mrb[32].mxu1 }
 0xbbd   : > { %v4577_v35 = vpop.f32.mrb[33].mxu1 }
 0xbbe   : > { %v4578_v36 = vadd.f32 %v4577_v35, %v4576_v34  ;;  %v4579_v41 = vpop.f32.mrb[34].mxu1 }
 0xbbf   : > { %v4580_v42 = vpop.f32.mrb[35].mxu1 }
 0xbc0   : > { %v1889_v43 = vadd.f32 %v4578_v36, %v6002_v21  ;;  %v5108_v21 = vld [vmem:[#allocation2 + $0x8] sm:$0xff]  }
 0xbc1   : > { %4823 = vmatpush3.bf16.msra.mxu0 %v5108_v21 }
 0xbc2   : > { %v6109_v44 = vadd.f32 %v1893_v38, %v1889_v43  ;;  %4824 = vmatprep.subr.bf16.mxu0 %v5488_v46 }
 0xbc4   : > { %v2042_v45 = vsel %vm668_vm1, %v6109_v44, 0.0 }
 0xbc5   : > { %2043 = vadd.xlane.f32.xlu0 %v2042_v45  ;;  %4825 = vmatpush3.bf16.msra.mxu0 %v5110_v54 }
 0xbc6   : > { %4826 = vmatprep.subr.bf16.mxu0 %v5488_v46 }
 0xbc9   : > { %4827 = vmatpush3.bf16.msra.mxu0 %v5112_v61 }
 0xbca   : > { %4832 = vmatprep.subr.bf16.mxu0 %v5488_v46 }
 0xc52   : > { %v2044_v47 = vpop.xlane.xlu0 %2043 }
 0xc53   : > { %v2045_v48 = vmul.f32 0.015625, %v2044_v47 }
 0xc55   : > { %v2046_v49 = vsub.f32 %v6109_v44, %v2045_v48 }
 0xc57   : > { %v2047_v50 = vmul.f32 %v2046_v49, %v2046_v49 }
 0xc59   : > { %v2048_v51 = vsel %vm668_vm1, %v2047_v50, 0.0  ;;  %v4356_v50 = vld [vmem:[%s6467_s8 + $0x4] ss:$0 sm:$0xff] }
 0xc5a   : > { %2049 = vadd.xlane.f32.xlu1 %v2048_v51 }
 0xce7   : > { %v2050_v63 = vpop.xlane.xlu1 %2049 }
 0xce8   : > { %v2051_v1 = vmul.f32 0.015625, %v2050_v63 }
 0xcea   : > { %v2052_v2 = vadd.f32 1e-05, %v2051_v1 }
 0xcec   : > { %5268 = vrsqrt.f32 %v2052_v2  ;;  %v4355_v2 = vld [vmem:[%s6467_s8 + $0x3] ss:$0 sm:$0xff] }
 0xcf6   : > { %v5269_v5 = vpop.eup %5268 }
 0xcf7   : > { %v2054_v9 = vmul.f32 %v5269_v5, %v2046_v49 }
 0xcf9   : > { %v2059_v10 = vmul.f32 %v2058_v4, %v2054_v9  ;;  %v4353_v4 = vld [vmem:[%s6467_s8 + $0x1] ss:$0 sm:$0xff] }
 0xcfb   : > { %v2064_v12 = vadd.f32 %v2063_v6, %v2059_v10 }
 0xcfd   : > { %v2065_v15 = vpack.c.bf16 %v2064_v12, %v2064_v12 }
 0xcff   : > { %4829 = vmatmul.mubr.msk.bf16.vlgmr.msra.gmra.mrb[24].mxu0 %vm622_vm0, %v2065_v15  ;;  %4853 = vmatmul.mubr.msk.bf16.vlgmr.msra.gmra.mrb[36].mxu1 %vm622_vm0, %v2065_v15 }
 0xd00   : > { %4833 = vmatpush3.bf16.msra.mxu0 %v5114_v13  ;;  %4869 = vmatpush3.bf16.msra.mxu1 %v5115_v14 }
 0xd01   : > { %4834 = vmatprep.subr.bf16.mxu0 %v5488_v46  ;;  %4870 = vmatprep.subr.bf16.mxu1 %v5488_v46 }
 0xd02   : > { %4840 = vmatprep.mubr.msk.bf16.mxu0 %vm5489_vm2, %v5488_v46  ;;  %4876 = vmatprep.mubr.msk.bf16.mxu1 %vm5489_vm2, %v5488_v46 }
 0xd04   : > { %4835 = vmatpush3.bf16.msra.mxu0 %v5116_v16  ;;  %4871 = vmatpush3.bf16.msra.mxu1 %v5117_v17 }
 0xd05   : > { %4836 = vmatprep.subr.bf16.mxu0 %v5488_v46  ;;  %4872 = vmatprep.subr.bf16.mxu1 %v5488_v46 }
 0xd08   : > { %4837 = vmatpush3.bf16.msra.mxu0 %v5118_v58  ;;  %4873 = vmatpush3.bf16.msra.mxu1 %v5119_v60  ;;  %v4357_v58 = vld [vmem:[%s6467_s8 + $0x5] ss:$0 sm:$0xff] }
 0xd09   : > { %4838 = vmatprep.subr.bf16.mxu0 %v5488_v46  ;;  %4874 = vmatprep.subr.bf16.mxu1 %v5488_v46 }
 0xd0c   : > { %4839 = vmatpush3.bf16.msra.mxu0 %v5120_v18  ;;  %4875 = vmatpush3.bf16.msra.mxu1 %v5121_v19 }
 0xd0d   : > { %4856 = vmatprep.subr.bf16.mxu0 %v5488_v46  ;;  %4892 = vmatprep.subr.bf16.mxu1 %v5488_v46 }
 0xd0f   : > { %4841 = vmatmul.mubr.msk.bf16.vlgmr.msra.gmra.mrb[28].mxu0 %vm622_vm0, %v2065_v15  ;;  %4877 = vmatmul.mubr.msk.bf16.vlgmr.msra.gmra.mrb[40].mxu1 %vm622_vm0, %v2065_v15 }
 0xd10   : > { %4857 = vmatpush3.bf16.msra.mxu0 %v5122_v20  ;;  %4864 = vmatprep.mubr.msk.bf16.mxu0 %vm5489_vm2, %v5488_v46 }
 0xd11   : > { %4858 = vmatprep.subr.bf16.mxu0 %v5488_v46  ;;  %4894 = vmatprep.mubr.msk.bf16.mxu1 %vm5489_vm2, %v5488_v46 }
 0xd14   : > { %4859 = vmatpush3.bf16.msra.mxu0 %v5123_v22 }
 0xd15   : > { %4860 = vmatprep.subr.bf16.mxu0 %v5488_v46 }
 0xd18   : > { %4861 = vmatpush3.bf16.msra.mxu0 %v5124_v23 }
 0xd19   : > { %4862 = vmatprep.subr.bf16.mxu0 %v5488_v46 }
 0xd1c   : > { %4863 = vmatpush3.bf16.msra.mxu0 %v5125_v24 }
 0xd1d   : > { %4880 = vmatprep.subr.bf16.mxu0 %v5488_v46 }
 0xd1f   : > { %4865 = vmatmul.mubr.msk.bf16.vlgmr.msra.gmra.mrb[32].mxu0 %vm622_vm0, %v2065_v15 }
 0xd20   : > { %4881 = vmatpush3.bf16.msra.mxu0 %v5126_v25  ;;  %4888 = vmatprep.mubr.msk.bf16.mxu0 %vm5489_vm2, %v5488_v46 }
 0xd21   : > { %4882 = vmatprep.subr.bf16.mxu0 %v5488_v46 }
 0xd24   : > { %4883 = vmatpush3.bf16.msra.mxu0 %v5127_v26 }
 0xd25   : > { %4884 = vmatprep.subr.bf16.mxu0 %v5488_v46 }
 0xd28   : > { %4885 = vmatpush3.bf16.msra.mxu0 %v5128_v27 }
 0xd29   : > { %4886 = vmatprep.subr.bf16.mxu0 %v5488_v46 }
 0xd2c   : > { %4887 = vmatpush3.bf16.msra.mxu0 %v5129_v28 }
 0xd2d   : > { %4904 = vmatprep.subr.bf16.mxu0 %v5488_v46 }
 0xd2f   : > { %4889 = vmatmul.mubr.msk.bf16.vlgmr.msra.gmra.mrb[36].mxu0 %vm622_vm0, %v2065_v15 }
 0xd30   : > { %4906 = vmatprep.mubr.msk.bf16.mxu0 %vm5489_vm2, %v5488_v46 }
 0xdd2   : > { %v2163_v30 = vpop.f32.mrb[24].mxu0  ;;  %v2291_v31 = vpop.f32.mrb[36].mxu1 }
 0xdd3   : > { %v2292_v32 = vadd.f32 %v4354_v37, %v2291_v31  ;;  %v4830_v34 = vpop.f32.mrb[25].mxu0  ;;  %v4854_v35 = vpop.f32.mrb[37].mxu1  ;;  %v2164_v41 = vadd.f32 %v4352_v29, %v2163_v30 }
 0xdd4   : > { %v2166_v36 = vpop.f32.mrb[26].mxu0  ;;  %v2294_v38 = vpop.f32.mrb[38].mxu1 }
 0xdd5   : > { %v2493_v42 = vpack.c.bf16 %v2292_v32, %v2292_v32  ;;  %v4831_v43 = vpop.f32.mrb[27].mxu0  ;;  %v4855_v45 = vpop.f32.mrb[39].mxu1  ;;  %v2489_v48 = vmul.f32 0.17677669, %v2164_v41 }
 0xdd7   : > { %v2499_v47 = vsel %vm622_vm0, %v2493_v42, 0  ;;  %v2491_v49 = vpack.c.bf16 %v2489_v48, %v2489_v48 }
 0xdd8   : > { %4893 = vmatpush3.bf16.xpose.msra.mxu1 %v2499_v47 }
 0xdd9   : > { %4898 = vmatprep.subr.bf16.mxu1 %v5488_v46 }
 0xddf   : > { %4895 = vmatmul.mubr.msk.bf16.vlgmr.msra.gmra.mrb[44].mxu1 %vm622_vm0, %v2491_v49 }
 0xde0   : > { %4900 = vmatprep.mubr.msk.bf16.mxu1 %vm5489_vm2, %v5488_v46 }
 0xde2   : > { %v2227_v51 = vpop.f32.mrb[28].mxu0  ;;  %v2419_v52 = vpop.f32.mrb[40].mxu1 }
 0xde3   : > { %v2420_v59 = vadd.f32 %v4356_v50, %v2419_v52  ;;  %v4842_v21 = vpop.f32.mrb[29].mxu0  ;;  %v4878_v53 = vpop.f32.mrb[41].mxu1  ;;  %v2228_v12 = vadd.f32 %v4353_v4, %v2227_v51  ;;  %v5130_v52 = vld [vmem:[#allocation2 + $0xc0] sm:$0xff]   ;;  %v5136_v4 = vld [vmem:[#allocation2 + $0xf0] sm:$0xff]  }
 0xde4   : > { %v2230_v54 = vpop.f32.mrb[30].mxu0  ;;  %v2422_v56 = vpop.f32.mrb[42].mxu1  ;;  %v5131_v21 = vld [vmem:[#allocation2 + $0xc8] sm:$0xff]   ;;  %v5132_v53 = vld [vmem:[#allocation2 + $0xd0] sm:$0xff]  }
 0xde5   : > { %v2611_v61 = vpack.c.bf16 %v2420_v59, %v2420_v59  ;;  %v4843_v62 = vpop.f32.mrb[31].mxu0  ;;  %v4879_v63 = vpop.f32.mrb[43].mxu1  ;;  %v2490_v16 = vmul.f32 0.17677669, %v2228_v12 }
 0xde6   : > { %v5133_v63 = vld [vmem:[#allocation2 + $0xd8] sm:$0xff]  }
 0xde7   : > { %v2617_v1 = vand.u32 %v2611_v61, %v5943_v7  ;;  %v2492_v17 = vpack.c.bf16 %v2490_v16, %v2490_v16 }
 0xde9   : > { %4905 = vmatpush3.bf16.msra.mxu0 %v2617_v1  ;;  %v5134_v1 = vld [vmem:[#allocation2 + $0xe0] sm:$0xff]  }
 0xdea   : > { %4916 = vmatprep.subr.bf16.mxu0 %v5488_v46 }
 0xdf2   : > { %v2355_v5 = vpop.f32.mrb[32].mxu0 }
 0xdf3   : > { %v2356_v6 = vadd.f32 %v4355_v2, %v2355_v5  ;;  %v4866_v9 = vpop.f32.mrb[33].mxu0  ;;  %v5135_v2 = vld [vmem:[#allocation2 + $0xe8] sm:$0xff]   ;;  %v5137_v5 = vld [vmem:[#allocation2 + $0xf8] sm:$0xff]  }
 0xdf4   : > { %v2358_v10 = vpop.f32.mrb[34].mxu0 }
 0xdf5   : > { %v2494_v13 = vpack.c.bf16 %v2356_v6, %v2356_v6  ;;  %v4867_v14 = vpop.f32.mrb[35].mxu0 }
 0xdf7   : > { %v2545_v15 = vsel %vm622_vm0, %v2494_v13, 0 }
 0xdf8   : > { %4899 = vmatpush3.bf16.xpose.msra.mxu1 %v2545_v15 }
 0xdf9   : > { %4910 = vmatprep.subr.bf16.mxu1 %v5488_v46 }
 0xdff   : > { %4901 = vmatmul.mubr.msk.bf16.vlgmr.msra.gmra.mrb[48].mxu1 %vm622_vm0, %v2492_v17 }
 0xe00   : > { %4912 = vmatprep.mubr.msk.bf16.mxu1 %vm5489_vm2, %v5488_v46 }
 0xe02   : > { %v2483_v60 = vpop.f32.mrb[36].mxu0 }
 0xe03   : > { %v2484_v18 = vadd.f32 %v4357_v58, %v2483_v60  ;;  %v4890_v19 = vpop.f32.mrb[37].mxu0 }
 0xe04   : > { %v2486_v20 = vpop.f32.mrb[38].mxu0 }
 0xe05   : > { %v2612_v22 = vpack.c.bf16 %v2484_v18, %v2484_v18  ;;  %v4891_v23 = vpop.f32.mrb[39].mxu0 }
 0xe07   : > { %v2663_v24 = vand.u32 %v2612_v22, %v5943_v7 }
 0xe09   : > { %4911 = vmatpush3.bf16.msra.mxu1 %v2663_v24 }
 0xe0a   : > { %4928 = vmatprep.subr.bf16.mxu1 %v5488_v46 }
 0xeb2   : > { %v2535_v25 = vpop.f32.mrb[44].mxu1 }
 0xeb3   : > { %v4896_v26 = vpop.f32.mrb[45].mxu1  ;;  %v2587_v27 = vsel %vm1350_vm5, %v2535_v25, -inf }
 0xeb4   : > { %2588 = vmax.xlane.f32.xlu0 %v2587_v27  ;;  %v2538_v28 = vpop.f32.mrb[46].mxu1 }
 0xeb5   : > { %v4897_v37 = vpop.f32.mrb[47].mxu1  ;;  %v2848_v28 = vrot.slane %v6126_v3, %v1616_v11  ;;  %v5140_v11 = vld [vmem:[%s6468_s9 + $0x4] ss:$8 sps:$4 sm:$0xff]  }
 0xed2   : > { %v2581_v29 = vpop.f32.mrb[48].mxu1 }
 0xed3   : > { %v4902_v30 = vpop.f32.mrb[49].mxu1  ;;  %v2590_v31 = vsel %vm1350_vm5, %v2581_v29, -inf }
 0xed4   : > { %2591 = vmax.xlane.f32.xlu1 %v2590_v31  ;;  %v2584_v32 = vpop.f32.mrb[50].mxu1 }
 0xed5   : > { %v4903_v34 = vpop.f32.mrb[51].mxu1 }
 0xf41   : > { %v2589_v35 = vpop.xlane.xlu0 %2588 }
 0xf42   : > { %v2593_v36 = vsub.f32 %v2535_v25, %v2589_v35 }
 0xf44   : > { %v2595_v7 = vmul.f32 1.442695, %v2593_v36 }
 0xf46   : > { %5270 = vpow2.f32 %v2595_v7 }
 0xf50   : > { %v5271_v38 = vpop.eup %5270 }
 0xf51   : > { %v2599_v41 = vsel %vm1350_vm5, %v5271_v38, 0.0 }
 0xf52   : > { %2600 = vadd.xlane.f32.xlu0 %v2599_v41  ;;  %v5143_v41 = vld [vmem:[%s6468_s9 + $0x14] ss:$8 sps:$4 sm:$0xff]  }
 0xf61   : > { %v2592_v42 = vpop.xlane.xlu1 %2591 }
 0xf62   : > { %v2594_v43 = vsub.f32 %v2581_v29, %v2592_v42  ;;  %v5141_v42 = vld [vmem:[%s6468_s9 + $0x10] ss:$8 sps:$4 sm:$0xff]  }
 0xf64   : > { %v2597_v45 = vmul.f32 1.442695, %v2594_v43  ;;  %v5146_v43 = vld [vmem:[%s6468_s9 + $0x24] ss:$8 sps:$4 sm:$0xff]  }
 0xf66   : > { %5272 = vpow2.f32 %v2597_v45  ;;  %v5144_v45 = vld [vmem:[%s6468_s9 + $0x20] ss:$8 sps:$4 sm:$0xff]  }
 0xf70   : > { %v5273_v47 = vpop.eup %5272 }
 0xf71   : > { %v2602_v48 = vsel %vm1350_vm5, %v5273_v47, 0.0 }
 0xf72   : > { %2603 = vadd.xlane.f32.xlu1 %v2602_v48  ;;  %v5147_v48 = vld [vmem:[%s6468_s9 + $0x30] ss:$8 sps:$4 sm:$0xff]  }
 0xfdf   : > { %v2601_v49 = vpop.xlane.xlu0 %2600 }
 0xfe0   : > { %5274 = vrcp.f32 %v2601_v49 }
 0xfea   : > { %v5275_v50 = vpop.eup %5274 }
 0xfeb   : > { %v2606_v51 = vmul.f32 %v5275_v50, %v5271_v38  ;;  %v5138_v38 = vld [vmem:[%s6468_s9] ss:$8 sps:$4 sm:$0xff]  }
 0xfed   : > { %v2609_v59 = vpack.c.bf16 %v2606_v51, %v2606_v51 }
 0xfef   : > { %4907 = vmatmul.mubr.msk.bf16.vlgmr.msra.gmra.mrb[40].mxu0 %vm1377_vm6, %v2609_v59 }
 0xff0   : > { %4917 = vmatpush3.bf16.msra.mxu0 %v5130_v52  ;;  %4924 = vmatprep.mubr.msk.bf16.mxu0 %vm5489_vm2, %v5488_v46  ;;  %v2866_v52 = vrot.slane %v6126_v3, %v1634_v39  ;;  %v5151_v39 = vld [vmem:[%s6468_s9 + $0x40] ss:$8 sps:$4 sm:$0xff]  }
 0xff1   : > { %4918 = vmatprep.subr.bf16.mxu0 %v5488_v46 }
 0xff4   : > { %4919 = vmatpush3.bf16.msra.mxu0 %v5131_v21 }
 0xff5   : > { %4920 = vmatprep.subr.bf16.mxu0 %v5488_v46 }
 0xff8   : > { %4921 = vmatpush3.bf16.msra.mxu0 %v5132_v53  ;;  %v2871_v53 = vrot.slane %v6126_v3, %v1639_v40  ;;  %v5152_v40 = vld [vmem:[%s6468_s9 + $0xd0] ss:$8 sps:$4 sm:$0xff]  }
 0xff9   : > { %4922 = vmatprep.subr.bf16.mxu0 %v5488_v46 }
 0xffc   : > { %4923 = vmatpush3.bf16.msra.mxu0 %v5133_v63  ;;  %v5153_v63 = vld [vmem:[%s6468_s9 + $0x50] ss:$8 sps:$4 sm:$0xff]  }
 0xffd   : > { %2925 = vmatprep.subr.bf16.mxu0 %v5140_v11 }
 0xfff   : > { %v2604_v54 = vpop.xlane.xlu1 %2603 }
0x1000   : > { %5276 = vrcp.f32 %v2604_v54 }
0x100a   : > { %v5277_v56 = vpop.eup %5276 }
0x100b   : > { %v2608_v61 = vmul.f32 %v5277_v56, %v5273_v47  ;;  %v5149_v47 = vld [vmem:[%s6468_s9 + $0x34] ss:$8 sps:$4 sm:$0xff]  }
0x100d   : > { %v2610_v62 = vpack.c.bf16 %v2608_v61, %v2608_v61 }
0x100f   : > { %4913 = vmatmul.mubr.msk.bf16.vlgmr.msra.gmra.mrb[52].mxu1 %vm1377_vm6, %v2610_v62  ;;  %v5150_v62 = vld [vmem:[%s6468_s9 + $0xc0] ss:$8 sps:$4 sm:$0xff]  }
0x1010   : > { %4936 = vmatprep.mubr.msk.bf16.mxu1 %vm5489_vm2, %v5488_v46  ;;  %4929 = vmatpush3.bf16.msra.mxu1 %v5134_v1  ;;  %v5154_v1 = vld [vmem:[%s6468_s9 + $0xe0] ss:$8 sps:$4 sm:$0xff]  }
0x1011   : > { %4930 = vmatprep.subr.bf16.mxu1 %v5488_v46 }
0x1014   : > { %4931 = vmatpush3.bf16.msra.mxu1 %v5135_v2  ;;  %v5155_v2 = vld [vmem:[%s6468_s9 + $0x60] ss:$8 sps:$4 sm:$0xff]  }
0x1015   : > { %4932 = vmatprep.subr.bf16.mxu1 %v5488_v46 }
0x1018   : > { %4933 = vmatpush3.bf16.msra.mxu1 %v5136_v4  ;;  %v5156_v4 = vld [vmem:[%s6468_s9 + $0xf0] ss:$8 sps:$4 sm:$0xff]  }
0x1019   : > { %4934 = vmatprep.subr.bf16.mxu1 %v5488_v46 }
0x101c   : > { %4935 = vmatpush3.bf16.msra.mxu1 %v5137_v5  ;;  %v5157_v5 = vld [vmem:[%s6468_s9 + $0x70] ss:$8 sps:$4 sm:$0xff]  }
0x101d   : > { %4630 = vmatprep.subr.bf16.mxu1 %v5150_v62 }
0x10c2   : > { %v2653_v6 = vpop.f32.mrb[40].mxu0 }
0x10c3   : > { %v2705_v9 = vpack.c.bf16 %v2653_v6, %v2653_v6  ;;  %v4908_v10 = vpop.f32.mrb[41].mxu0  ;;  %v5158_v6 = vld [vmem:[%s6468_s9 + $0x100] ss:$8 sps:$4 sm:$0xff]  }
0x10c4   : > { %v2656_v12 = vpop.f32.mrb[42].mxu0  ;;  %v5160_v10 = vld [vmem:[%s6468_s9 + $0x110] ss:$8 sps:$4 sm:$0xff]  }
0x10c5   : > { %v4909_v13 = vpop.f32.mrb[43].mxu0  ;;  %4925 = vmatmul.mubr.msk.bf16.vlgmr.msra.gmra.mrb[44].mxu0 %vm622_vm0, %v2705_v9  ;;  %v5159_v9 = vld [vmem:[%s6468_s9 + $0x80] ss:$8 sps:$4 sm:$0xff]   ;;  %v5161_v12 = vld [vmem:[%s6468_s9 + $0x90] ss:$8 sps:$4 sm:$0xff]  }
0x10c6   : > { %2957 = vmatprep.mubr.bf16.mxu0 %v5487_v0  ;;  %2926 = vmatpush1.bf16.msra.mxu0 %v5138_v38  ;;  %v5162_v13 = vld [vmem:[%s6468_s9 + $0x120] ss:$8 sps:$4 sm:$0xff]  }
0x10c7   : > { %2927 = vmatprep.subr.bf16.mxu0 %v5143_v41 }
0x10ca   : > { %2928 = vmatpush1.bf16.msra.mxu0 %v5141_v42 }
0x10cb   : > { %2929 = vmatprep.subr.bf16.mxu0 %v5146_v43  ;;  %v3124_v43 = vrot.slane %v6126_v3, %v1892_v33 }
0x10ce   : > { %2930 = vmatpush1.bf16.msra.mxu0 %v5144_v45 }
0x10cf   : > { %2931 = vmatprep.subr.bf16.mxu0 %v5149_v47 }
0x10d2   : > { %2932 = vmatpush1.bf16.msra.mxu0 %v5147_v48 }
0x10d3   : > { %4940 = vmatprep.subr.mxu0 %v5488_v46 }
0x10e2   : > { %v2699_v14 = vpop.f32.mrb[52].mxu1 }
0x10e3   : > { %v2706_v15 = vpack.c.bf16 %v2699_v14, %v2699_v14  ;;  %v4914_v16 = vpop.f32.mrb[53].mxu1  ;;  %v5163_v14 = vld [vmem:[%s6468_s9 + $0xa0] ss:$8 sps:$4 sm:$0xff]  }
0x10e4   : > { %v2702_v17 = vpop.f32.mrb[54].mxu1  ;;  %v5165_v16 = vld [vmem:[%s6468_s9 + $0xb0] ss:$8 sps:$4 sm:$0xff]  }
0x10e5   : > { %v4915_v58 = vpop.f32.mrb[55].mxu1  ;;  %4937 = vmatmul.mubr.msk.bf16.vlgmr.msra.gmra.mrb[56].mxu1 %vm622_vm0, %v2706_v15  ;;  %v5164_v15 = vld [vmem:[%s6468_s9 + $0x130] ss:$8 sps:$4 sm:$0xff]   ;;  %v2041_v17 = vld [vmem:[%s6469_s10 + $0x8] sm:$0xff] }
0x10e6   : > { %4631 = vmatpush3.bf16.msra.mxu1 %v5151_v39  ;;  %v2877_v58 = vrot.slane %v6126_v3, %v6094_v8 }
0x10e7   : > { %4632 = vmatprep.subr.bf16.mxu1 %v5152_v40 }
0x10ea   : > { %4633 = vmatpush3.bf16.msra.mxu1 %v5153_v63 }
0x10eb   : > { %4634 = vmatprep.subr.bf16.mxu1 %v5154_v1 }
0x10ee   : > { %4635 = vmatpush3.bf16.msra.mxu1 %v5155_v2 }
0x10ef   : > { %4636 = vmatprep.subr.bf16.mxu1 %v5156_v4 }
0x10f2   : > { %4637 = vmatpush3.bf16.msra.mxu1 %v5157_v5 }
0x10f3   : > { %4638 = vmatprep.subr.bf16.mxu1 %v5158_v6 }
0x10f6   : > { %4639 = vmatpush3.bf16.msra.mxu1 %v5159_v9 }
0x10f7   : > { %4640 = vmatprep.subr.bf16.mxu1 %v5160_v10 }
0x10fa   : > { %4641 = vmatpush3.bf16.msra.mxu1 %v5161_v12 }
0x10fb   : > { %4642 = vmatprep.subr.bf16.mxu1 %v5162_v13 }
0x10fe   : > { %4643 = vmatpush3.bf16.msra.mxu1 %v5163_v14 }
0x10ff   : > { %4644 = vmatprep.subr.bf16.mxu1 %v5164_v15 }
0x1102   : > { %4645 = vmatpush3.bf16.msra.mxu1 %v5165_v16 }
0x1198   : > { %v2768_v60 = vpop.f32.mrb[44].mxu0 }
0x1199   : > { %v4926_v18 = vpop.f32.mrb[45].mxu0  ;;  %v2841_v23 = vsel %vm668_vm1, %v2768_v60, 0.0  ;;  %v2881_v60 = vrot.slane %v2041_v17, %v6094_v8 }
0x119a   : > { %v2771_v19 = vpop.f32.mrb[46].mxu0 }
0x119b   : > { %v4927_v20 = vpop.f32.mrb[47].mxu0 }
0x11b8   : > { %v2835_v22 = vpop.f32.mrb[56].mxu1 }
0x11b9   : > { %v2842_v24 = vsel %vm668_vm1, %v2835_v22, 0.0  ;;  %v4938_v25 = vpop.f32.mrb[57].mxu1 }
0x11ba   : > { %v2843_v26 = vadd.f32 %v2842_v24, %v2841_v23  ;;  %v2838_v27 = vpop.f32.mrb[58].mxu1 }
0x11bb   : > { %v4939_v37 = vpop.f32.mrb[59].mxu1 }
0x11bc   : > { %v2844_v29 = vadd.f32 %v2843_v26, %v6109_v44 }
0x11be   : > { %v6225_v30 = vadd.f32 %v2848_v28, %v2844_v29 }
0x11c0   : > { %v2850_v31 = vsel %vm668_vm1, %v6225_v30, 0.0 }
0x11c1   : > { %2851 = vadd.xlane.f32.xlu0 %v2850_v31 }
0x124e   : > { %v2852_v32 = vpop.xlane.xlu0 %2851 }
0x124f   : > { %v2853_v34 = vmul.f32 0.015625, %v2852_v32 }
0x1251   : > { %v2854_v35 = vsub.f32 %v6225_v30, %v2853_v34 }
0x1253   : > { %v2855_v36 = vmul.f32 %v2854_v35, %v2854_v35 }
0x1255   : > { %v2856_v7 = vsel %vm668_vm1, %v2855_v36, 0.0 }
0x1256   : > { %2857 = vadd.xlane.f32.xlu1 %v2856_v7 }
0x12e3   : > { %v2858_v49 = vpop.xlane.xlu1 %2857 }
0x12e4   : > { %v2859_v50 = vmul.f32 0.015625, %v2858_v49 }
0x12e6   : > { %v2860_v51 = vadd.f32 1e-05, %v2859_v50 }
0x12e8   : > { %5278 = vrsqrt.f32 %v2860_v51 }
0x12f2   : > { %v5279_v59 = vpop.eup %5278 }
0x12f3   : > { %v2862_v21 = vmul.f32 %v5279_v59, %v2854_v35 }
0x12f5   : > { %v2867_v54 = vmul.f32 %v2866_v52, %v2862_v21 }
0x12f7   : > { %v2872_v56 = vadd.f32 %v2871_v53, %v2867_v54 }
0x12f9   : > { %v2873_v61 = vpack.c.bf16 %v2872_v56, %v2872_v56 }
0x12fb   : > { %4410 = vmatmul.mubr.msk.bf16.vlgmr.msra.gmra.mrb[48].mxu0 %vm622_vm0, %v2873_v61 }
0x12fc   : > { %4942 = vmatprep.mubr.msk.f32.mxu0 %vm5489_vm2, %v5488_v46 }
0x13ce   : > { %v2959_v18 = vpop.f32.mrb[48].mxu0 }
0x13cf   : > { %v2960_v19 = vadd.f32 %v2959_v18, %v2877_v58  ;;  %v2961_v20 = vpop.f32.mrb[49].mxu0 }
0x13d0   : > { %v2962_v22 = vadd.f32 %v2961_v20, %v2881_v60  ;;  %v2963_v23 = vpop.f32.mrb[50].mxu0 }
0x13d1   : > { %v4411_v24 = vmul.f32 -1.702, %v2960_v19  ;;  %v2964_v25 = vpop.f32.mrb[51].mxu0 }
0x13d2   : > { %v4412_v26 = vmul.f32 -1.702, %v2962_v22 }
0x13d3   : > { %v2970_v27 = vmul.f32 1.442695, %v4411_v24 }
0x13d4   : > { %v2972_v28 = vmul.f32 1.442695, %v4412_v26 }
0x13d5   : > { %5280 = vpow2.f32 %v2970_v27 }
0x13d6   : > { %5282 = vpow2.f32 %v2972_v28 }
0x13df   : > { %v5281_v37 = vpop.eup %5280 }
0x13e0   : > { %v5283_v29 = vpop.eup %5282  ;;  %v2974_v31 = vadd.f32 1.0, %v5281_v37 }
0x13e1   : > { %v2975_v32 = vadd.f32 1.0, %v5283_v29 }
0x13e2   : > { %5284 = vrcp.f32 %v2974_v31 }
0x13e3   : > { %5286 = vrcp.f32 %v2975_v32 }
0x13ec   : > { %v5285_v34 = vpop.eup %5284 }
0x13ed   : > { %v5287_v8 = vpop.eup %5286  ;;  %v2980_v35 = vmul.f32 %v5285_v34, %v2960_v19 }
0x13ee   : > { %v2981_v36 = vmul.f32 %v5287_v8, %v2962_v22 }
0x13ef   : > { %v2982_v11 = vpack.c.bf16 %v2980_v35, %v2980_v35 }
0x13f0   : > { %v2983_v7 = vpack.c.bf16 %v2981_v36, %v2981_v36  ;;  %v1898_v36 = vsel %vm1897_vm4, %v6109_v44, 0.0 }
0x13f2   : > { %3112 = vmatprep.mubr.bf16.mxu1 %v2983_v7 }
0x13f3   : > { %3113 = vmatmul.mubr.bf16.vlgmr.msra.gmra.mrb[60].mxu1 %v2982_v11 }
0x13f4   : > { %3547 = vmatprep.mubr.bf16.mxu1 %v5487_v0 }
0x14c6   : > { %v4646_v38 = vpop.f32.mrb[60].mxu1 }
0x14c7   : > { %v4647_v41 = vpop.f32.mrb[61].mxu1 }
0x14c8   : > { %v4648_v42 = vadd.f32 %v4647_v41, %v4646_v38  ;;  %v4649_v45 = vpop.f32.mrb[62].mxu1 }
0x14c9   : > { %v4650_v47 = vpop.f32.mrb[63].mxu1 }
0x14ca   : > { %v3120_v48 = vadd.f32 %v4648_v42, %v6225_v30  ;;  %v6331_v30 = vand.u32 127, %v818_v55 }
0x14cc   : > { %v3125_v49 = vadd.f32 %v3124_v43, %v3120_v48 }
0x14ce   : > { %4941 = vmatpush3.xpose.msk.msra.mxu0 %vm622_vm0, %v3125_v49 }
0x14cf   : > { %4945 = vmatprep.subr.mxu0 %v5488_v46 }
0x14d1   : > { %4943 = vmatmul.mubr.msk.f32.vlgmr.msra.gmra.mrb[52].mxu0 %vm622_vm0, %v3125_v49 }
0x14d2   : > { %4946 = vmatpush3.msk.msra.mxu0 %vm3282_vm7, %v3125_v49  ;;  %4947 = vmatprep.mubr.msk.f32.mxu0 %vm5489_vm2, %v5488_v46 }
0x15a4   : > { %v3195_v50 = vpop.f32.mrb[52].mxu0 }
0x15a5   : > { %v3199_v51 = vmul.f32 0.125, %v3195_v50  ;;  %v4944_v33 = vpop.f32.mrb[53].mxu0 }
0x15a7   : > { %v3203_v3 = vsel %vm3202_vm8, %v3199_v51, -inf }
0x15a8   : > { %3204 = vmax.xlane.f32.xlu0 %v3203_v3 }
0x1635   : > { %v3205_v52 = vpop.xlane.xlu0 %3204 }
0x1636   : > { %vm3206_vm9 = vcmp.ge.f32.partialorder %v3199_v51, %v3205_v52 }
0x1637   : > { %v3207_v59 = vsel %vm3206_vm9, %v6331_v30, 5 }
0x1638   : > { %v3208_v21 = vsel %vm3202_vm8, %v3207_v59, 2147483647 }
0x1639   : > { %v3210_v53 = vshra.s32 %v3208_v21, 16  ;;  %v3209_v56 = vand.u32 65535, %v3208_v21 }
0x163b   : > { %v3212_v54 = vcvt.s32.f32 %v3210_v53  ;;  %v3211_v62 = vcvt.s32.f32 %v3209_v56  ;;  %v5168_v56 = vld [vmem:[#allocation5 + $0x84] ss:$16 sps:$4 sm:$0xff]  }
0x163c   : > { %3474 = vmatprep.subr.bf16.mxu0 %v5168_v56  ;;  %v5224_v56 = vld [vmem:[#allocation7 + $0x10] sm:$0xff]  }
0x163d   : > { %3213 = vmin.xlane.f32.xlu1 %v3212_v54 }
0x16ca   : > { %v3214_v61 = vpop.xlane.xlu1 %3213 }
0x16cb   : > { %vm3215_vm10 = vcmp.eq.f32.partialorder %v3212_v54, %v3214_v61  ;;  %v3220_v40 = vcvt.f32.s32 %v3214_v61  ;;  %v5171_v61 = vld [vmem:[#allocation5 + $0x8c] ss:$16 sps:$4 sm:$0xff]  }
0x16cc   : > { %v3216_v39 = vsel %vm3215_vm10, %v3211_v62, inf  ;;  %v5166_v62 = vld [vmem:[#allocation5 + $0x80] ss:$16 sps:$4 sm:$0xff]   ;;  %3515 = vmatprep.subr.bf16.mxu1 %v5171_v61 }
0x16cd   : > { %3217 = vmin.xlane.f32.xlu0 %v3216_v39  ;;  %v3221_v1 = vshll.u32 %v3220_v40, 16  ;;  %v5169_v39 = vld [vmem:[#allocation5 + $0x88] ss:$16 sps:$4 sm:$0xff]   ;;  %v5174_v40 = vld [vmem:[#allocation5 + $0xa4] ss:$16 sps:$4 sm:$0xff]  }
0x16ce   : > { %3516 = vmatpush1.bf16.msra.mxu1 %v5169_v39  ;;  %v5225_v61 = vld [vmem:[#allocation7 + $0x90] sm:$0xff]   ;;  %v5227_v39 = vld [vmem:[#allocation7 + $0xd8] sm:$0xff]  }
0x175a   : > { %v3218_v63 = vpop.xlane.xlu0 %3217 }
0x175b   : > { %v3219_v2 = vcvt.f32.s32 %v3218_v63  ;;  %v5177_v63 = vld [vmem:[#allocation5 + $0xac] ss:$16 sps:$4 sm:$0xff]  }
0x175c   : > { %3517 = vmatprep.subr.bf16.mxu1 %v5177_v63  ;;  %v5229_v63 = vld [vmem:[#allocation7 + $0x98] sm:$0xff]  }
0x175d   : > { %v3222_v4 = vadd.s32 %v3221_v1, %v3219_v2  ;;  %v5172_v1 = vld [vmem:[#allocation5 + $0xa0] ss:$16 sps:$4 sm:$0xff]   ;;  %v5175_v2 = vld [vmem:[#allocation5 + $0xa8] ss:$16 sps:$4 sm:$0xff]  }
0x175e   : > { %3518 = vmatpush1.bf16.msra.mxu1 %v5175_v2  ;;  %v5231_v2 = vld [vmem:[#allocation7 + $0xe0] sm:$0xff]  }
0x175f   : > { %vm3223_vm11 = vcmp.eq.s32.totalorder %v6331_v30, %v3222_v4  ;;  %v5180_v4 = vld [vmem:[#allocation5 + $0xc4] ss:$16 sps:$4 sm:$0xff]  }
0x1760   : > { %v4431_v5 = vsel %vm3223_vm11, 1.0, %v5488_v46 }
0x1761   : > { %vm3227_vm12 = vcmp.gt.f32.partialorder %v4431_v5, 0.0 }
0x1762   : > { %v3228_v6 = vsel %vm3227_vm12, -inf, %v3199_v51 }
0x1763   : > { %v3229_v9 = vsel %vm3202_vm8, %v3228_v6, -inf }
0x1764   : > { %3230 = vmax.xlane.f32.xlu1 %v3229_v9  ;;  %v5181_v9 = vld [vmem:[#allocation5 + $0xc8] ss:$16 sps:$4 sm:$0xff]  }
0x17f1   : > { %v3231_v10 = vpop.xlane.xlu1 %3230 }
0x17f2   : > { %vm3232_vm13 = vcmp.ge.f32.partialorder %v3228_v6, %v3231_v10  ;;  %v5186_v10 = vld [vmem:[#allocation5 + $0xe4] ss:$16 sps:$4 sm:$0xff]  }
0x17f3   : > { %v3233_v12 = vsel %vm3232_vm13, %v6331_v30, 5 }
0x17f4   : > { %v3234_v13 = vsel %vm3202_vm8, %v3233_v12, 2147483647  ;;  %v5189_v12 = vld [vmem:[#allocation5 + $0xec] ss:$16 sps:$4 sm:$0xff]  }
0x17f5   : > { %v3236_v14 = vshra.s32 %v3234_v13, 16  ;;  %v3235_v16 = vand.u32 65535, %v3234_v13  ;;  %v5184_v13 = vld [vmem:[#allocation5 + $0xe0] ss:$16 sps:$4 sm:$0xff]  }
0x17f7   : > { %v3238_v15 = vcvt.s32.f32 %v3236_v14  ;;  %v3237_v58 = vcvt.s32.f32 %v3235_v16  ;;  %v5187_v14 = vld [vmem:[#allocation5 + $0xe8] ss:$16 sps:$4 sm:$0xff]   ;;  %v5195_v16 = vld [vmem:[#allocation5 + $0xc] ss:$16 sps:$4 sm:$0xff]  }
0x17f9   : > { %3239 = vmin.xlane.f32.xlu0 %v3238_v15 }
0x1886   : > { %v3240_v17 = vpop.xlane.xlu0 %3239 }
0x1887   : > { %vm3241_vm14 = vcmp.eq.f32.partialorder %v3238_v15, %v3240_v17  ;;  %v3246_v18 = vcvt.f32.s32 %v3240_v17  ;;  %v5192_v15 = vld [vmem:[#allocation5 + $0x4] ss:$16 sps:$4 sm:$0xff]  }
0x1888   : > { %v3242_v60 = vsel %vm3241_vm14, %v3237_v58, inf }
0x1889   : > { %3243 = vmin.xlane.f32.xlu1 %v3242_v60  ;;  %v3247_v20 = vshll.u32 %v3246_v18, 16 }
0x1916   : > { %v3244_v19 = vpop.xlane.xlu1 %3243 }
0x1917   : > { %v3245_v22 = vcvt.f32.s32 %v3244_v19 }
0x1919   : > { %v3248_v23 = vadd.s32 %v3247_v20, %v3245_v22 }
0x191b   : > { %vm3249_vm15 = vcmp.eq.s32.totalorder %v6331_v30, %v3248_v23  ;;  %v3356_v23 = vld [vmem:[%s6461_s2 + $0x9] sm:$0x1] }
0x191c   : > { %v4432_v24 = vsel %vm3249_vm15, 1.0, %v5488_v46 }
0x191d   : > { %vm3253_vm1 = vcmp.gt.f32.partialorder %v4432_v24, 0.0  ;;  %v3252_v45 = vadd.f32 %v4432_v24, %v4431_v5  ;;  %v5183_v5 = vld [vmem:[#allocation5 + $0xcc] ss:$16 sps:$4 sm:$0xff]  }
0x191e   : > { %v3254_v25 = vsel %vm3253_vm1, -inf, %v3228_v6  ;;  %v5178_v6 = vld [vmem:[#allocation5 + $0xc0] ss:$16 sps:$4 sm:$0xff]   ;;  %3519 = vmatprep.subr.bf16.mxu1 %v5183_v5 }
0x191f   : > { %v3255_v26 = vsel %vm3202_vm8, %v3254_v25, -inf  ;;  %3520 = vmatpush1.bf16.msra.mxu1 %v5181_v9  ;;  %v5233_v5 = vld [vmem:[#allocation7 + $0xa0] sm:$0xff]   ;;  %v5235_v9 = vld [vmem:[#allocation7 + $0xe8] sm:$0xff]  }
0x1920   : > { %3256 = vmax.xlane.f32.xlu0 %v3255_v26  ;;  %3521 = vmatprep.subr.bf16.mxu1 %v5189_v12  ;;  %v5237_v12 = vld [vmem:[#allocation7 + $0xa8] sm:$0xff]  }
0x1923   : > { %3522 = vmatpush1.bf16.msra.mxu1 %v5187_v14  ;;  %v5239_v14 = vld [vmem:[#allocation7 + $0xf0] sm:$0xff]  }
0x1924   : > { %3680 = vmatprep.subr.bf16.mxu1 %v5195_v16  ;;  %v5241_v16 = vld [vmem:[#allocation7 + $0xb0] sm:$0xff]  }
0x19ad   : > { %v3257_v27 = vpop.xlane.xlu0 %3256 }
0x19ae   : > { %vm3258_vm2 = vcmp.ge.f32.partialorder %v3254_v25, %v3257_v27  ;;  %v3357_v25 = vld [vmem:[%s6461_s2 + $0xa] sm:$0x1] }
0x19af   : > { %v3259_v28 = vsel %vm3258_vm2, %v6331_v30, 5 }
0x19b0   : > { %v3260_v37 = vsel %vm3202_vm8, %v3259_v28, 2147483647  ;;  %v5190_v28 = vld [vmem:[#allocation5] ss:$16 sps:$4 sm:$0xff]  }
0x19b1   : > { %v3262_v29 = vshra.s32 %v3260_v37, 16  ;;  %v3261_v32 = vand.u32 65535, %v3260_v37  ;;  %v5193_v37 = vld [vmem:[#allocation5 + $0x8] ss:$16 sps:$4 sm:$0xff]  }
0x19b3   : > { %v3264_v31 = vcvt.s32.f32 %v3262_v29  ;;  %v3263_v8 = vcvt.s32.f32 %v3261_v32  ;;  %v5201_v32 = vld [vmem:[#allocation5 + $0x2c] ss:$16 sps:$4 sm:$0xff]  }
0x19b5   : > { %3265 = vmin.xlane.f32.xlu1 %v3264_v31 }
0x1a42   : > { %v3266_v34 = vpop.xlane.xlu1 %3265 }
0x1a43   : > { %vm3267_vm3 = vcmp.eq.f32.partialorder %v3264_v31, %v3266_v34  ;;  %v3272_v7 = vcvt.f32.s32 %v3266_v34  ;;  %v5198_v31 = vld [vmem:[#allocation5 + $0x24] ss:$16 sps:$4 sm:$0xff]  }
0x1a44   : > { %v3268_v35 = vsel %vm3267_vm3, %v3263_v8, inf  ;;  %v5196_v8 = vld [vmem:[#allocation5 + $0x20] ss:$16 sps:$4 sm:$0xff]  }
0x1a45   : > { %3269 = vmin.xlane.f32.xlu0 %v3268_v35  ;;  %v3273_v38 = vshll.u32 %v3272_v7, 16  ;;  %v5199_v35 = vld [vmem:[#allocation5 + $0x28] ss:$16 sps:$4 sm:$0xff]   ;;  %v5204_v7 = vld [vmem:[#allocation5 + $0x44] ss:$16 sps:$4 sm:$0xff]  }
0x1a49   : > { %1899 = vadd.xlane.f32.xlu0 %v1898_v36 }
0x1ad2   : > { %v3270_v11 = vpop.xlane.xlu0 %3269 }
0x1ad3   : > { %v3271_v41 = vcvt.f32.s32 %v3270_v11  ;;  %v5207_v11 = vld [vmem:[#allocation5 + $0x4c] ss:$16 sps:$4 sm:$0xff]  }
0x1ad5   : > { %v3274_v42 = vadd.s32 %v3273_v38, %v3271_v41  ;;  %v1895_v38 = vld [vmem:[%s6461_s2 + $0x7] sm:$0x1]  ;;  %v5202_v41 = vld [vmem:[#allocation5 + $0x40] ss:$16 sps:$4 sm:$0xff]  }
0x1ad6   : > { %v1900_v43 = vpop.xlane.xlu0 %1899 }
0x1ad7   : > { %vm3275_vm5 = vcmp.eq.s32.totalorder %v6331_v30, %v3274_v42  ;;  %v1901_v47 = vmul.f32 0.015625, %v1900_v43  ;;  %v5205_v42 = vld [vmem:[#allocation5 + $0x48] ss:$16 sps:$4 sm:$0xff]  }
0x1ad8   : > { %v4433_v48 = vsel %vm3275_vm5, 1.0, %v5488_v46 }
0x1ad9   : > { %v3278_v49 = vadd.f32 %v4433_v48, %v3252_v45  ;;  %v6350_v50 = vsub.f32 %v6109_v44, %v1901_v47  ;;  %v5210_v45 = vld [vmem:[#allocation5 + $0x64] ss:$16 sps:$4 sm:$0xff]   ;;  %v5213_v47 = vld [vmem:[#allocation5 + $0x6c] ss:$16 sps:$4 sm:$0xff]   ;;  %v1896_v48 = vld [vmem:[%s6461_s2 + $0x8] sm:$0x1] }
0x1adb   : > { %4948 = vmatmul.mubr.msk.f32.vlgmr.msra.gmra.mrb[54].mxu0 %vm1377_vm6, %v3278_v49  ;;  %v1903_v51 = vmul.f32 %v6350_v50, %v6350_v50  ;;  %v5208_v49 = vld [vmem:[#allocation5 + $0x60] ss:$16 sps:$4 sm:$0xff]  }
0x1adc   : > { %3506 = vmatprep.mubr.bf16.mxu0 %v5487_v0  ;;  %3475 = vmatpush1.bf16.msra.mxu0 %v5166_v62  ;;  %v5226_v62 = vld [vmem:[#allocation7 + $0x58] sm:$0xff]  }
0x1add   : > { %v1904_v33 = vsel %vm1897_vm4, %v1903_v51, 0.0  ;;  %3476 = vmatprep.subr.bf16.mxu0 %v5174_v40  ;;  %v5214_v51 = vld [vmem:[#allocation7 + $0x40] sm:$0xff]   ;;  %v5228_v40 = vld [vmem:[#allocation7 + $0x18] sm:$0xff]  }
0x1ade   : > { %1905 = vadd.xlane.f32.xlu0 %v1904_v33  ;;  %v5215_v33 = vld [vmem:[#allocation7 + $0xc0] sm:$0xff]  }
0x1ae0   : > { %3477 = vmatpush1.bf16.msra.mxu0 %v5172_v1  ;;  %v5230_v1 = vld [vmem:[#allocation7 + $0x60] sm:$0xff]  }
0x1ae1   : > { %3478 = vmatprep.subr.bf16.mxu0 %v5180_v4  ;;  %v5232_v4 = vld [vmem:[#allocation7 + $0x20] sm:$0xff]  }
0x1ae4   : > { %3479 = vmatpush1.bf16.msra.mxu0 %v5178_v6  ;;  %v5234_v6 = vld [vmem:[#allocation7 + $0x68] sm:$0xff]  }
0x1ae5   : > { %3480 = vmatprep.subr.bf16.mxu0 %v5186_v10  ;;  %v5236_v10 = vld [vmem:[#allocation7 + $0x28] sm:$0xff]  }
0x1ae8   : > { %3481 = vmatpush1.bf16.msra.mxu0 %v5184_v13  ;;  %v5238_v13 = vld [vmem:[#allocation7 + $0x70] sm:$0xff]  }
0x1ae9   : > { %3639 = vmatprep.subr.bf16.mxu0 %v5192_v15  ;;  %v5240_v15 = vld [vmem:[#allocation7 + $0x30] sm:$0xff]  }
0x1b6b   : > { %v1906_v60 = vpop.xlane.xlu0 %1905 }
0x1b6c   : > { %v1907_v19 = vmul.f32 0.015625, %v1906_v60  ;;  %v5244_v60 = vld [vmem:[#allocation7 + $0x38] sm:$0xff]  }
0x1b6e   : > { %v1908_v20 = vadd.f32 1e-05, %v1907_v19  ;;  %v5491_v19 = vmov 1966171168  }
0x1bae   : > { %v3351_v3 = vpop.f32.mrb[54].mxu0 }
0x1baf   : > { %v3355_v52 = vmul.f32 0.33333334, %v3351_v3  ;;  %v4949_v30 = vpop.f32.mrb[55].mxu0  ;;  %v5216_v3 = vld [vmem:[#allocation7] sm:$0xff]  }
0x1bb1   : > { %v3358_v59 = vsel %vm1897_vm4, %v3355_v52, 0.0 }
0x1bb2   : > { %3359 = vadd.xlane.f32.xlu1 %v3358_v59  ;;  %v5218_v59 = vld [vmem:[#allocation7 + $0x48] sm:$0xff]  }
0x1c3f   : > { %v3360_v46 = vpop.xlane.xlu1 %3359 }
0x1c40   : > { %v3361_v21 = vmul.f32 0.015625, %v3360_v46  ;;  %v5219_v46 = vld [vmem:[#allocation7 + $0xc8] sm:$0xff]  }
0x1c42   : > { %v3362_v44 = vsub.f32 %v3355_v52, %v3361_v21  ;;  %v5217_v52 = vld [vmem:[#allocation7 + $0x80] sm:$0xff]   ;;  %v5220_v21 = vld [vmem:[#allocation7 + $0x8] sm:$0xff]  }
0x1c44   : > { %v3363_v53 = vmul.f32 %v3362_v44, %v3362_v44 }
0x1c46   : > { %v3364_v54 = vsel %vm1897_vm4, %v3363_v53, 0.0  ;;  %v5222_v53 = vld [vmem:[#allocation7 + $0x50] sm:$0xff]  }
0x1c47   : > { %3365 = vadd.xlane.f32.xlu1 %v3364_v54  ;;  %v5223_v54 = vld [vmem:[#allocation7 + $0xd0] sm:$0xff]  }
0x1cd4   : > { %v3366_v17 = vpop.xlane.xlu1 %3365 }
0x1cd5   : > { %v3367_v58 = vmul.f32 0.015625, %v3366_v17  ;;  %v5242_v17 = vld [vmem:[#allocation7 + $0x78] sm:$0xff]  }
0x1cd7   : > { %v3368_v18 = vadd.f32 1e-05, %v3367_v58  ;;  %v5243_v58 = vld [vmem:[#allocation7 + $0xf8] sm:$0xff]  }
0x1cd9   : > { %5288 = vrsqrt.f32 %v3368_v18  ;;  %v5245_v18 = vld [vmem:[#allocation7 + $0xb8] sm:$0xff]  }
0x1cda   : > { %5290 = vrsqrt.f32 %v1908_v20  ;;  %v4070_v20 = vunpack.c.l.s4 %v5491_v19 }
0x1ce3   : > { %v5289_v22 = vpop.eup %5288 }
0x1ce4   : > { %v3370_v24 = vmul.f32 %v5289_v22, %v3362_v44  ;;  %v5291_v34 = vpop.eup %5290  ;;  %v5221_v44 = vld [vmem:[#allocation7 + $0x88] sm:$0xff]   ;;  %v4071_v22 = vunpack.c.0.s8 %v4070_v20 }
0x1ce5   : > { %v1910_v36 = vmul.f32 %v5291_v34, %v6350_v50  ;;  %v5211_v50 = vld [vmem:[#allocation5 + $0x68] ss:$16 sps:$4 sm:$0xff]  }
0x1ce6   : > { %v3371_v26 = vmul.f32 %v3370_v24, %v3356_v23 }
0x1ce7   : > { %v1911_v43 = vmul.f32 %v1910_v36, %v1895_v38 }
0x1ce8   : > { %v3372_v27 = vadd.f32 %v3371_v26, %v3357_v25  ;;  %v4074_v25 = vsub.s32 %v4071_v22, %v5821_v57 }
0x1cea   : > { %v3390_v29 = vpack.c.bf16 %v3372_v27, %v3372_v27 }
0x1cec   : > { %4452 = vmatmul.mubr.msk.bf16.vlgmr.msra.gmra.mrb[56].mxu0 %vm622_vm0, %v3390_v29  ;;  %4453 = vmatmul.mubr.msk.bf16.vlgmr.msra.gmra.mrb[64].mxu1 %vm622_vm0, %v3390_v29 }
0x1ced   : > { %3640 = vmatpush1.bf16.msra.mxu0 %v5190_v28  ;;  %3681 = vmatpush1.bf16.msra.mxu1 %v5193_v37 }
0x1cee   : > { %3641 = vmatprep.subr.bf16.mxu0 %v5198_v31  ;;  %3682 = vmatprep.subr.bf16.mxu1 %v5201_v32 }
0x1cef   : > { %3671 = vmatprep.mubr.bf16.mxu0 %v5487_v0  ;;  %3712 = vmatprep.mubr.bf16.mxu1 %v5487_v0  ;;  %v1912_v0 = vadd.f32 %v1911_v43, %v1896_v48 }
0x1cf1   : > { %3642 = vmatpush1.bf16.msra.mxu0 %v5196_v8  ;;  %3683 = vmatpush1.bf16.msra.mxu1 %v5199_v35  ;;  %v1929_v30 = vpack.c.bf16 %v1912_v0, %v1912_v0 }
0x1cf2   : > { %3643 = vmatprep.subr.bf16.mxu0 %v5204_v7  ;;  %3684 = vmatprep.subr.bf16.mxu1 %v5207_v11 }
0x1cf5   : > { %3644 = vmatpush1.bf16.msra.mxu0 %v5202_v41  ;;  %3685 = vmatpush1.bf16.msra.mxu1 %v5205_v42 }
0x1cf6   : > { %3645 = vmatprep.subr.bf16.mxu0 %v5210_v45  ;;  %3686 = vmatprep.subr.bf16.mxu1 %v5213_v47 }
0x1cf9   : > { %3646 = vmatpush1.bf16.msra.mxu0 %v5208_v49  ;;  %3687 = vmatpush1.bf16.msra.mxu1 %v5211_v50 }
0x1cfa   : > { %4656 = vmatprep.subr.bf16.mxu0 %v5214_v51  ;;  %4678 = vmatprep.subr.bf16.mxu1 %v5215_v33 }
0x1cfc   : > { %4470 = vmatmul.mubr.msk.bf16.vlgmr.msra.gmra.mrb[60].mxu0 %vm622_vm0, %v1929_v30  ;;  %4471 = vmatmul.mubr.msk.bf16.vlgmr.msra.gmra.mrb[68].mxu1 %vm622_vm0, %v1929_v30  ;;  %vm4094_vm0 = vcmp.lt.s32.totalorder %v818_v55, 512 }
0x1cfd   : > { %4657 = vmatpush3.bf16.msra.mxu0 %v5216_v3  ;;  %4679 = vmatpush3.bf16.msra.mxu1 %v5217_v52 }
0x1cfe   : > { %4658 = vmatprep.subr.bf16.mxu0 %v5218_v59  ;;  %4680 = vmatprep.subr.bf16.mxu1 %v5219_v46 }
0x1d01   : > { %4659 = vmatpush3.bf16.msra.mxu0 %v5220_v21  ;;  %4681 = vmatpush3.bf16.msra.mxu1 %v5221_v44 }
0x1d02   : > { %4660 = vmatprep.subr.bf16.mxu0 %v5222_v53  ;;  %4682 = vmatprep.subr.bf16.mxu1 %v5223_v54 }
0x1d05   : > { %4661 = vmatpush3.bf16.msra.mxu0 %v5224_v56  ;;  %4683 = vmatpush3.bf16.msra.mxu1 %v5225_v61 }
0x1d06   : > { %4662 = vmatprep.subr.bf16.mxu0 %v5226_v62  ;;  %4684 = vmatprep.subr.bf16.mxu1 %v5227_v39 }
0x1d09   : > { %4663 = vmatpush3.bf16.msra.mxu0 %v5228_v40  ;;  %4685 = vmatpush3.bf16.msra.mxu1 %v5229_v63 }
0x1d0a   : > { %4664 = vmatprep.subr.bf16.mxu0 %v5230_v1  ;;  %4686 = vmatprep.subr.bf16.mxu1 %v5231_v2 }
0x1d0d   : > { %4665 = vmatpush3.bf16.msra.mxu0 %v5232_v4  ;;  %4687 = vmatpush3.bf16.msra.mxu1 %v5233_v5 }
0x1d0e   : > { %4666 = vmatprep.subr.bf16.mxu0 %v5234_v6  ;;  %4688 = vmatprep.subr.bf16.mxu1 %v5235_v9 }
0x1d11   : > { %4667 = vmatpush3.bf16.msra.mxu0 %v5236_v10  ;;  %4689 = vmatpush3.bf16.msra.mxu1 %v5237_v12 }
0x1d12   : > { %4668 = vmatprep.subr.bf16.mxu0 %v5238_v13  ;;  %4690 = vmatprep.subr.bf16.mxu1 %v5239_v14 }
0x1d15   : > { %4669 = vmatpush3.bf16.msra.mxu0 %v5240_v15  ;;  %4691 = vmatpush3.bf16.msra.mxu1 %v5241_v16 }
0x1d16   : > { %4670 = vmatprep.subr.bf16.mxu0 %v5242_v17  ;;  %4692 = vmatprep.subr.bf16.mxu1 %v5243_v58 }
0x1d19   : > { %4671 = vmatpush3.bf16.msra.mxu0 %v5244_v60  ;;  %4693 = vmatpush3.bf16.msra.mxu1 %v5245_v18 }
0x1dbf   : > { %v3508_v23 = vpop.f32.mrb[56].mxu0  ;;  %v3549_v24 = vpop.f32.mrb[64].mxu1 }
0x1dc0   : > { %v3510_v26 = vpop.f32.mrb[57].mxu0  ;;  %v3551_v27 = vpop.f32.mrb[65].mxu1 }
0x1dc1   : > { %v4067_v28 = vcombine.low %v3508_v23, %v3510_v26  ;;  %v4068_v37 = vcombine.low %v3549_v24, %v3551_v27  ;;  %v3512_v29 = vpop.f32.mrb[58].mxu0  ;;  %v3553_v31 = vpop.f32.mrb[66].mxu1 }
0x1dc2   : > { %v3513_v32 = vpop.f32.mrb[59].mxu0  ;;  %v3554_v34 = vpop.f32.mrb[67].mxu1 }
0x1dc3   : > { %v4075_v8 = vrot.slane %v4067_v28, %v4074_v25  ;;  %v4082_v35 = vrot.slane %v4068_v37, %v4074_v25 }
0x1dc5   : > { %v4083_v36 = vcombine.low %v4075_v8, %v4082_v35 }
0x1dc7   : > { %v4090_v7 = vrot.slane %v4083_v36, %v4074_v25 }
0x1dc9   : > { %4096 = vst.msk [vmem:[%s514_s23] sm:$0xf] %vm4094_vm0, %v4090_v7 }
0x1dcf   : > { %v3673_v57 = vpop.f32.mrb[60].mxu0  ;;  %v3714_v11 = vpop.f32.mrb[68].mxu1 }
0x1dd0   : > { %v3674_v38 = vadd.f32 %v3673_v57, %v3508_v23  ;;  %v3715_v41 = vadd.f32 %v3714_v11, %v3549_v24  ;;  %v3675_v42 = vpop.f32.mrb[61].mxu0  ;;  %v3716_v43 = vpop.f32.mrb[69].mxu1 }
0x1dd1   : > { %v3676_v45 = vadd.f32 %v3675_v42, %v3510_v26  ;;  %v3717_v47 = vadd.f32 %v3716_v43, %v3551_v27  ;;  %v3677_v48 = vpop.f32.mrb[62].mxu0  ;;  %v3718_v49 = vpop.f32.mrb[70].mxu1 }
0x1dd2   : > { %v3678_v50 = vpop.f32.mrb[63].mxu0  ;;  %v3719_v0 = vpop.f32.mrb[71].mxu1  ;;  %v3785_v33 = vpack.c.bf16 %v3674_v38, %v3674_v38  ;;  %v3787_v3 = vpack.c.bf16 %v3715_v41, %v3715_v41 }
0x1dd3   : > { %v3786_v51 = vpack.c.bf16 %v3676_v45, %v3676_v45  ;;  %v3788_v55 = vpack.c.bf16 %v3717_v47, %v3717_v47 }
0x1dd5   : > { %4014 = vmatprep.mubr.bf16.mxu0 %v3786_v51  ;;  %4054 = vmatprep.mubr.bf16.mxu1 %v3788_v55 }
0x1dd6   : > { %4015 = vmatmul.mubr.bf16.vlgmr.msra.gmra.mrb[64].mxu0 %v3785_v33  ;;  %4055 = vmatmul.mubr.bf16.vlgmr.msra.gmra.mrb[72].mxu1 %v3787_v3 }
0x1dd7   : > { %5389 = shalt.err (!%p5386_p11)
}
0x1dd8   : > { %s5390_s27 = scalar_lea.hbm %s6388_s19, 64  ;;  %s5394_s23 = scalar_lea.hbm %s6509_s14, 128 }
0x1dd9   : > { %p5391_p13 = scmp.ne.s32.totalorder %s6388_s19, %s5390_s27  ;;  %p5395_p6 = scmp.lt.u32.totalorder %s6388_s19, %s6509_s14 }
0x1dda   : > { %p5396_p9 = scmp.lt.u32.totalorder %s5394_s23, %s5390_s27  ;;  %p5398_p10 = scmp.lt.u32.totalorder %s5390_s27, %s6388_s19 }
0x1ddb   : > { %p5392_p5 = pnand %p5391_p13, %p6510_p1 }
0x1ddc   : > { %p5397_p12 = por %p5396_p9, %p5395_p6 }
0x1ddd   : > { %p5393_p0 = pneg %p5392_p5 }
0x1dde   : > { %p5399_p2 = por %p5398_p10, %p5397_p12 }
0x1de0   : > { %p5400_p3 = pnand %p5399_p2, %p5393_p0 }
0x1de2   : > { %5403 = shalt.err (!%p5400_p3)
}
0x1de3   : > { %4963 = dma.vmem_to_hbm [thread:$0]  (%p6510_p1), %s4130_s28, 64, %s6388_s19, %s4102_s24   ;;  %v3789_v59 = vld [vmem:[%s6461_s2 + $0xb] sm:$0x1] }
0x1de4   : > { %s4505_s15 = sshll.u32 %s5590_s17, 4  ;;  %s507_s18 = scalar_lea.vmem [#allocation8], %s6380_s21 }
0x1de5   : > { %s4115_s22 = sshll.u32 %s507_s18, 4  ;;  %s6511_s24 = sld [smem:[#allocation23_spill]]  ;;  %s6418_s22 = int_to_ptr.vmem [resolvable:$true] %s4115_s22 }
0x1de6   : > { %s4098_s20 = scalar_lea.sflag [#allocation4], %s6380_s21  ;;  %s5404_s16 = scalar_lea.vmem %s6418_s22, 16 }
0x1de7   : > { %p5405_p4 = scmp.ne.s32.totalorder %s6418_s22, %s5404_s16  ;;  %s5493_s17 = smov [#allocation8]  }
0x1de8   : > { %s5408_s23 = sshll.u32 %s5493_s17, 4  ;;  %s5409_s23 = int_to_ptr.vmem [resolvable:$false] %s5408_s23 }
0x1de9   : > { %p5406_p7 = pnand %p5405_p4, %p6510_p1  ;;  %s5410_s25 = scalar_lea.vmem %s5409_s23, 32 }
0x1dea   : > { %p5411_p11 = scmp.lt.s32.totalorder %s6418_s22, %s5409_s23  ;;  %p5412_p13 = scmp.lt.s32.totalorder %s5410_s25, %s5404_s16 }
0x1deb   : > { %s6416_s27 = scalar_lea.hbm %s6511_s24, %s4505_s15  ;;  %p5407_p8 = pneg %p5406_p7 }
0x1dec   : > { %p5413_p5 = por %p5412_p13, %p5411_p11 }
0x1dee   : > { %p5414_p0 = pnand %p5413_p5, %p5407_p8 }
0x1ea9   : > { %v4672_v52 = vpop.f32.mrb[64].mxu0  ;;  %v4694_v30 = vpop.f32.mrb[72].mxu1 }
0x1eaa   : > { %v4673_v46 = vpop.f32.mrb[65].mxu0  ;;  %v4695_v21 = vpop.f32.mrb[73].mxu1 }
0x1eab   : > { %v4674_v44 = vadd.f32 %v4673_v46, %v4672_v52  ;;  %v4696_v53 = vadd.f32 %v4695_v21, %v4694_v30  ;;  %v4675_v54 = vpop.f32.mrb[66].mxu0  ;;  %v4697_v56 = vpop.f32.mrb[74].mxu1 }
0x1eac   : > { %v4676_v61 = vpop.f32.mrb[67].mxu0  ;;  %v4698_v62 = vpop.f32.mrb[75].mxu1 }
0x1ead   : > { %v4017_v39 = vadd.f32 %v4674_v44, %v3789_v59 }
0x1eaf   : > { %v4057_v40 = vadd.f32 %v4696_v53, %v4017_v39 }
0x1eb1   : > { %4062 = vst [vmem:[%s507_s18] sm:$0x1] %v4057_v40 }
0x1eb2   : > { %5417 = shalt.err (!%p5414_p0)
}
0x1eb3   : > { %s5418_s21 = scalar_lea.hbm %s6416_s27, 16  ;;  %s5422_s29 = scalar_lea.hbm %s6511_s24, 32 }
0x1eb4   : > { %p5419_p6 = scmp.ne.s32.totalorder %s6416_s27, %s5418_s21  ;;  %p5423_p10 = scmp.lt.u32.totalorder %s6416_s27, %s6511_s24 }
0x1eb5   : > { %p5424_p2 = scmp.lt.u32.totalorder %s5422_s29, %s5418_s21  ;;  %p5426_p4 = scmp.lt.u32.totalorder %s5418_s21, %s6416_s27 }
0x1eb6   : > { %p5420_p9 = pnand %p5419_p6, %p6510_p1 }
0x1eb7   : > { %p5425_p3 = por %p5424_p2, %p5423_p10 }
0x1eb8   : > { %p5421_p12 = pneg %p5420_p9 }
0x1eb9   : > { %p5427_p7 = por %p5426_p4, %p5425_p3 }
0x1ebb   : > { %p5428_p8 = pnand %p5427_p7, %p5421_p12 }
0x1ebd   : > { %5431 = shalt.err (!%p5428_p8)
}
0x1ebe   : > { %4962 = dma.vmem_to_hbm [thread:$0]  (%p6510_p1), %s6418_s22, 16, %s6416_s27, %s4098_s20  }
0x1ebf PF: > { %s6512_s28 = sld [smem:[#allocation17_spill]]  ;;  %s6513_s19 = sld [smem:[#allocation15_spill]] }
0x1ec0   : > { %s6514_s16 = sld [smem:[#allocation21_spill]] }
0x1ec5   : > { %p4989_p11 = scmp.ge.s32.totalorder %s6512_s28, 2  ;;  %s4141_s17 = sand.u32 1, %s6513_s19  }
0x1ec6   : > { %p6515_p13 = scmp.ne.s32.totalorder %s6514_s16, 0  ;;  %s4142_s23 = scalar_lea.sflag [#allocation4], %s4141_s17 }
0x1ec8   : > { %p4977_p5 = pnand %p4989_p11, %p6515_p13 }
0x1eca   : > { %5457 = dma.done.wait (!%p4977_p5), %s4142_s23, 16  }
0x1ecb   : > { %5459 = vsyncadd (!%p4977_p5), %s4142_s23, 4294967280  ;;  %s4150_s25 = scalar_lea.sflag [#allocation10], %s4141_s17 }
0x1ecc   : > { %5461 = dma.done.wait (!%p4977_p5), %s4150_s25, 64  }
0x1ecd   : > { %5463 = vsyncadd (!%p4977_p5), %s4150_s25, 4294967232  ;;  %s6516_s16 = sld [smem:[#allocation18_spill]]  ;;  %s6517_s11 = sld [smem:[#allocation16_spill]] }
0x1ece   : > { %s6518_s15 = sld [smem:[#allocation19_spill]]  ;;  %s6519_s29 = smov %s5470_s30 }
0x1ed3   : > { %p30_p1 = scmp.ge.s32.totalorder %s6516_s16, 4   ;;  %s6520_s30 = smov %s6517_s11 }
0x1ed5   :  { %32 = sbr.rel (!%p30_p1) target bundleno = 11 (0xb), region = 138 }
0x1edc   :  { %4155 = vsyncpa [#allocation3], 1 }
0x1edd   :  { %4157 = vsyncpa [#allocation3 + $0x1], 1 }
0x1ede   :  { %4158 = vsyncpa [#allocation6], 1 }
0x1edf   :  { %4159 = vsyncpa [#allocation4], 1 }
0x1ee0   :  { %4161 = vsyncpa [#allocation4 + $0x1], 1 }
0x1ee1   :  { %4162 = vsyncpa [#allocation10], 1 }
0x1ee2   :  { %4164 = vsyncpa [#allocation10 + $0x1], 1 }

</bundles_post_ra>
